<compile_context>
chip_gen: v7x
topology: tpu7x:2x2x1
jax: 0.10.0
libtpu: 0.0.40
codegen_flags: <defaults>
</compile_context>

<pallas_src>
import jax
import jax.numpy as jnp
from jax import lax
from jax.experimental import pallas as pl
from jax.experimental.pallas import tpu as pltpu


def _round_up(x, m):
    return ((x + m - 1) // m) * m


def _shift_rows_up(x, t):
    """out[r] = x[r + t] for r < R - t; trailing t rows are zeros."""
    if t == 0:
        return x
    pad = jnp.zeros((t, x.shape[1]), x.dtype)
    return jnp.concatenate([x[t:, :], pad], axis=0)


# ---------------------------------------------------------------------------
# Fused kernel (one grid step = B samples)
# ---------------------------------------------------------------------------

def _make_fused_kernel(Ks, Co, D, Da, K3, B, L_pad, Lp_pad, Louts, La_out,
                       stage_window_in_vmem, emit_xy):
    nK = len(Ks)
    n_in = 8 + 2 * nK                 # feat, asp, w3, b3, wfa, bfa, (w12,b12)*nK, wfc, bfc
    n_out = 1 + (nK if emit_xy else 0)

    def kernel(*refs):
        feat_ref, asp_ref, w3_ref, b3_ref, wfa_ref, bfa_ref = refs[:6]
        kw_refs = refs[6:6 + 2 * nK]
        wfc_ref = refs[6 + 2 * nK]
        bfc_ref = refs[7 + 2 * nK]
        logit_ref = refs[n_in]
        xy_refs = refs[n_in + 1:n_in + n_out]
        win_a_ref = None
        win_refs = [None] * nK
        if stage_window_in_vmem:
            win_a_ref = refs[n_in + n_out]
            win_refs = list(refs[n_in + n_out + 1:n_in + n_out + 1 + nK])

        def build_window(x2d, K, Cin, win_ref):
            # (R, Cin) -> (R, K*Cin) im2col window: row r, lane block t = x2d[r+t].
            if not stage_window_in_vmem:
                return jnp.concatenate(
                    [_shift_rows_up(x2d, t) for t in range(K)], axis=-1)
            # Fallback path only: stage taps through a VMEM scratch.
            win_ref[...] = jnp.zeros_like(win_ref)
            R = x2d.shape[0]
            for t in range(K):
                if t == 0:
                    win_ref[:, :Cin] = x2d
                else:
                    win_ref[0:R - t, t * Cin:(t + 1) * Cin] = x2d[t:, :]
            return win_ref[...]

        # ---- aspect branch: gate = fc_aspect(maxpool(relu(conv3(aspect)))) ----
        asp2d = asp_ref[...]                                     # (B*Lp_pad, Da) f32
        win_a = build_window(asp2d, K3, Da, win_a_ref)           # (B*Lp_pad, K3*Da)
        a2d = jnp.dot(win_a.astype(jnp.bfloat16), w3_ref[...],
                      preferred_element_type=jnp.float32) + b3_ref[...]
        a2d = jnp.maximum(a2d, 0.0)                              # (B*Lp_pad, Co)
        a3 = a2d.reshape(B, Lp_pad, Co)                          # trivial (Lp_pad % 8 == 0)
        row_a = lax.broadcasted_iota(jnp.int32, (B, Lp_pad, Co), 1)
        aspect_v = jnp.max(jnp.where(row_a < La_out, a3, -jnp.inf), axis=1)   # (B, Co)
        gate = jnp.dot(aspect_v, wfa_ref[...],
                       preferred_element_type=jnp.float32) + bfa_ref[...]     # (B, Co)

        # ---- gated convs: one (B*L_pad, K*D) x (K*D, 2*Co) matmul per K ----
        feat2d = feat_ref[...]                                   # (B*L_pad, D) f32
        row_f = lax.broadcasted_iota(jnp.int32, (B, L_pad, Co), 1)
        pooled = []
        for ki, K in enumerate(Ks):
            Lout = Louts[ki]
            w12_ref, b12_ref = kw_refs[2 * ki], kw_refs[2 * ki + 1]
            win = build_window(feat2d, K, D, win_refs[ki])       # (B*L_pad, K*D)
            xy2d = jnp.dot(win.astype(jnp.bfloat16), w12_ref[...],
                           preferred_element_type=jnp.float32) + b12_ref[...]
            xy3 = xy2d.reshape(B, L_pad, 2 * Co)                 # trivial (L_pad % 8 == 0)
            x_t = jnp.tanh(xy3[..., :Co])                        # conv1 branch
            y_r = jnp.maximum(xy3[..., Co:] + gate[:, None, :], 0.0)   # conv2 + gate
            prod = x_t * y_r                                     # returned "x" (gated product)
            pooled.append(jnp.max(jnp.where(row_f < Lout, prod, -jnp.inf), axis=1))
            if emit_xy:
                # single full-width store of the (prod | y) slab, valid rows only
                xy_refs[ki][...] = jnp.concatenate([prod, y_r], axis=-1)[:, :Lout, :]

        # ---- final classifier fused into the epilogue ----
        pooled_all = jnp.concatenate(pooled, axis=-1)            # (B, nK*Co)
        logit_ref[...] = jnp.dot(pooled_all, wfc_ref[...],
                                 preferred_element_type=jnp.float32) + bfc_ref[...]

    return kernel


# ---------------------------------------------------------------------------
# Pallas wrapper (one call for the whole forward)
# ---------------------------------------------------------------------------

def fused_forward(feat, asp_p, pp, *, block_b=8, return_xy=True,
                  stage_window_in_vmem=False,
                  vmem_limit_bytes=48 * 1024 * 1024):
    """feat: (N, L, D) f32; asp_p: (N, Lp, Da) f32 (conv3 zero-padding applied)."""
    N, L, D = feat.shape
    _, Lp, Da = asp_p.shape
    Ks, Co = pp["Ks"], pp["Co"]
    nK = len(Ks)
    C = pp["wfc_t"].shape[1]
    K3 = pp["w3_packed"].shape[0] // Da
    La_out = Lp - K3 + 1
    Louts = [L - K + 1 for K in Ks]

    B = max(8, _round_up(block_b, 8))          # sublane-aligned batch tile
    N_pad = _round_up(N, B)
    L_pad = _round_up(L, 8)
    Lp_pad = _round_up(Lp, 8)

    feat_p = jnp.pad(feat, ((0, N_pad - N), (0, L_pad - L), (0, 0)))
    asp_pp = jnp.pad(asp_p, ((0, N_pad - N), (0, Lp_pad - Lp), (0, 0)))
    feat2d = feat_p.reshape(N_pad * L_pad, D).astype(jnp.float32)
    asp2d = asp_pp.reshape(N_pad * Lp_pad, Da).astype(jnp.float32)

    def whole(a):      # full-array block: weights stay resident across the grid
        return pl.BlockSpec(a.shape, lambda n, _nd=a.ndim: (0,) * _nd)

    in_arrays = [feat2d, asp2d, pp["w3_packed"], pp["b3"], pp["wfa_t"], pp["bfa"]]
    in_specs = [
        pl.BlockSpec((B * L_pad, D), lambda n: (n, 0)),
        pl.BlockSpec((B * Lp_pad, Da), lambda n: (n, 0)),
        whole(pp["w3_packed"]), whole(pp["b3"]),
        whole(pp["wfa_t"]), whole(pp["bfa"]),
    ]
    for w12, b12 in zip(pp["w12"], pp["b12"]):
        in_arrays += [w12, b12]
        in_specs += [whole(w12), whole(b12)]
    in_arrays += [pp["wfc_t"], pp["bfc"]]
    in_specs += [whole(pp["wfc_t"]), whole(pp["bfc"])]

    out_shapes = [jax.ShapeDtypeStruct((N_pad, C), jnp.float32)]
    out_specs = [pl.BlockSpec((B, C), lambda n: (n, 0))]
    if return_xy:
        for Lout in Louts:
            out_shapes.append(jax.ShapeDtypeStruct((N_pad, Lout, 2 * Co), jnp.float32))
            out_specs.append(pl.BlockSpec((B, Lout, 2 * Co), lambda n: (n, 0, 0)))

    scratch_shapes = []
    if stage_window_in_vmem:                   # fallback path only
        scratch_shapes.append(pltpu.VMEM((B * Lp_pad, K3 * Da), jnp.float32))
        scratch_shapes += [pltpu.VMEM((B * L_pad, K * D), jnp.float32) for K in Ks]

    kernel = _make_fused_kernel(tuple(Ks), Co, D, Da, K3, B, L_pad, Lp_pad,
                                tuple(Louts), La_out, stage_window_in_vmem,
                                return_xy)

    outs = pl.pallas_call(
        kernel,
        out_shape=tuple(out_shapes),
        grid=(N_pad // B,),
        in_specs=in_specs,
        out_specs=tuple(out_specs),
        scratch_shapes=tuple(scratch_shapes),
        compiler_params=pltpu.CompilerParams(
            dimension_semantics=("parallel",),
            vmem_limit_bytes=vmem_limit_bytes),
    )(*in_arrays)

    logit = outs[0][:N]
    xy_list = [o[:N] for o in outs[1:]] if return_xy else []
    return logit, xy_list


# ---------------------------------------------------------------------------
# One-time weight repack (hoisted off the forward path)
# ---------------------------------------------------------------------------

def prepare_params(raw, Ks):
    Co = raw["w_fc_aspect"].shape[0]

    def im2col_w(w, dtype):   # Conv1d weight (Co, Cin, K) -> im2col matrix (K*Cin, Co)
        Cout, Cin, K = w.shape
        return jnp.transpose(w, (2, 1, 0)).reshape(K * Cin, Cout).astype(dtype)

    return {
        "embedding": raw["embedding"],
        "aspect_embedding": raw["aspect_embedding"],
        "Ks": tuple(Ks),
        "Co": Co,
        # conv weights feed the MXU -> bf16 (f32 accumulation in-kernel)
        "w3_packed": im2col_w(raw["w3"], jnp.bfloat16),                 # (K3*Da, Co)
        "b3": raw["b3"][None, :].astype(jnp.float32),
        "wfa_t": jnp.transpose(raw["w_fc_aspect"], (1, 0)).astype(jnp.float32),
        "bfa": raw["b_fc_aspect"][None, :].astype(jnp.float32),
        "w12": [jnp.concatenate([im2col_w(w1, jnp.bfloat16),
                                 im2col_w(w2, jnp.bfloat16)], axis=1)   # (K*D, 2*Co)
                for w1, w2 in zip(raw["w1"], raw["w2"])],
        "b12": [jnp.concatenate([b1, b2])[None, :].astype(jnp.float32)  # (1, 2*Co)
                for b1, b2 in zip(raw["b1"], raw["b2"])],
        "wfc_t": jnp.transpose(raw["w_fc"], (1, 0)).astype(jnp.float32),  # (nK*Co, C)
        "bfc": raw["b_fc"][None, :].astype(jnp.float32),
    }


# ---------------------------------------------------------------------------
# Model forward (glue: embedding gathers, conv3 padding, output layout)
# ---------------------------------------------------------------------------

def cnn_gate_aspect_forward(feature_ids, aspect_ids, pp, *, block_b=8,
                            return_xy=True, ncl_layout=False):
    feat = pp["embedding"][feature_ids]              # (N, L, D) gather in plain JAX
    asp = pp["aspect_embedding"][aspect_ids]         # (N, La, Da)
    asp_p = jnp.pad(asp, ((0, 0), (1, 1), (0, 0)))   # conv3 padding = K3 - 2 = 1

    try:
        logit, xy_list = fused_forward(feat, asp_p, pp, block_b=block_b,
                                       return_xy=return_xy,
                                       stage_window_in_vmem=False)
        jax.block_until_ready(logit)
    except Exception:
        # Fallback: stage the im2col window through VMEM scratch (older Mosaic).
        logit, xy_list = fused_forward(feat, asp_p, pp, block_b=block_b,
                                       return_xy=return_xy,
                                       stage_window_in_vmem=True)

    if not return_xy:
        return logit, [], []

    Co = pp["Co"]
    # NOTE: the module returns x AFTER `x = [i*j ...]`, i.e. the gated product,
    # alongside y.  Default layout is lane-dense NLC (N, Lout, Co); set
    # ncl_layout=True for the PyTorch (N, Co, Lout) layout (extra transposes).
    x_out = [xy[..., :Co] for xy in xy_list]
    y_out = [xy[..., Co:] for xy in xy_list]
    if ncl_layout:
        x_out = [jnp.transpose(t, (0, 2, 1)) for t in x_out]
        y_out = [jnp.transpose(t, (0, 2, 1)) for t in y_out]
    return logit, x_out, y_out


# ---------------------------------------------------------------------------
# Pure-JAX reference (mirrors the PyTorch module exactly, f32)
# ---------------------------------------------------------------------------

def _conv1d_ref(x, w, b, padding):
    # x: (N, Cin, L), w: (Cout, Cin, K)
    out = jax.lax.conv_general_dilated(
        x, w, window_strides=(1,), padding=[(padding, padding)],
        dimension_numbers=("NCH", "OIH", "NCH"))
    return out + b[None, :, None]


def reference_forward(feature_ids, aspect_ids, raw):
    feat = raw["embedding"][feature_ids]
    asp = raw["aspect_embedding"][aspect_ids]
    asp_t = jnp.transpose(asp, (0, 2, 1))
    a = jax.nn.relu(_conv1d_ref(asp_t, raw["w3"], raw["b3"], padding=1))
    aspect_v = jnp.max(a, axis=2)                                   # (N, Co)
    gate = aspect_v @ raw["w_fc_aspect"].T + raw["b_fc_aspect"]
    feat_t = jnp.transpose(feat, (0, 2, 1))
    x_list = [jnp.tanh(_conv1d_ref(feat_t, w, b, 0))
              for w, b in zip(raw["w1"], raw["b1"])]
    y_list = [jax.nn.relu(_conv1d_ref(feat_t, w, b, 0) + gate[:, :, None])
              for w, b in zip(raw["w2"], raw["b2"])]
    prod = [i * j for i, j in zip(x_list, y_list)]
    pooled = [jnp.max(i, axis=2) for i in prod]
    x0 = jnp.concatenate(pooled, axis=1)
    logit = x0 @ raw["w_fc"].T + raw["b_fc"]
    return logit, prod, y_list                      # (logit, gated product, relu branch)


# ---------------------------------------------------------------------------
# Main
# ---------------------------------------------------------------------------

if __name__ == "__main__":
    # small synthetic config consistent with the module's __init__
    V, D = 50, 32          # embed_num, embed_dim
    A, Da = 6, 32          # aspect_num, aspect_embed_dim
    C = 3                  # class_num
    Co = 16                # kernel_num
    Ks = [3, 4]            # kernel_sizes
    N, L, La = 32, 16, 4   # batch, sentence length, aspect length
    B = 8                  # batch tile -> grid of 4 "parallel" steps

    key = jax.random.PRNGKey(0)
    keys = jax.random.split(key, 18)

    def init(k, shape, scale=0.1):
        return (scale * jax.random.normal(k, shape)).astype(jnp.float32)

    raw = {
        "embedding":        init(keys[0], (V, D)),
        "aspect_embedding": init(keys[1], (A, Da)),
        "w1": [init(keys[2 + i], (Co, D, K)) for i, K in enumerate(Ks)],
        "b1": [init(keys[4 + i], (Co,)) for i, _ in enumerate(Ks)],
        "w2": [init(keys[6 + i], (Co, D, K)) for i, K in enumerate(Ks)],
        "b2": [init(keys[8 + i], (Co,)) for i, _ in enumerate(Ks)],
        "w3": init(keys[10], (Co, Da, 3)),
        "b3": init(keys[11], (Co,)),
        "w_fc_aspect": init(keys[12], (Co, Co)),
        "b_fc_aspect": init(keys[13], (Co,)),
        "w_fc": init(keys[14], (C, len(Ks) * Co)),
        "b_fc": init(keys[15], (C,)),
    }
    # TODO(synk): nn.Dropout(0.2) is declared in __init__ but never applied in
    # forward(), so it is intentionally omitted here.

    pp = prepare_params(raw, Ks)   # one-time weight repack (off the forward path)

    feature_ids = jax.random.randint(keys[16], (N, L), 0, V, dtype=jnp.int32)
    aspect_ids = jax.random.randint(keys[17], (N, La), 0, A, dtype=jnp.int32)

    logit, x_out, y_out = cnn_gate_aspect_forward(feature_ids, aspect_ids, pp,
                                                  block_b=B)
    jax.block_until_ready(logit)
    for t in x_out + y_out:
        jax.block_until_ready(t)

    # correctness check against the pure-f32 XLA reference; bf16 MXU operands
    # with f32 accumulation -> ~1e-2 tolerance (per review guidance)
    ref_logit, ref_x, ref_y = reference_forward(feature_ids, aspect_ids, raw)
    assert jnp.allclose(logit, ref_logit, atol=1e-2, rtol=1e-2)
    for a, b in zip(x_out, ref_x):
        b_nlc = jnp.transpose(b, (0, 2, 1))       # kernel returns lane-dense NLC
        assert a.shape == b_nlc.shape and jnp.allclose(a, b_nlc, atol=1e-2, rtol=1e-2)
    for a, b in zip(y_out, ref_y):
        b_nlc = jnp.transpose(b, (0, 2, 1))
        assert a.shape == b_nlc.shape and jnp.allclose(a, b_nlc, atol=1e-2, rtol=1e-2)

    print("KERNEL_OK")
</pallas_src>

<mosaic_0001>
module attributes {stable_mosaic.version = 11 : i64} {
  func.func @kernel(%arg0: i32, %arg1: memref<128x32xf32, #tpu.memory_space<vmem>>, %arg2: memref<64x32xf32, #tpu.memory_space<vmem>>, %arg3: memref<96x16xbf16, #tpu.memory_space<vmem>>, %arg4: memref<1x16xf32, #tpu.memory_space<vmem>>, %arg5: memref<16x16xf32, #tpu.memory_space<vmem>>, %arg6: memref<1x16xf32, #tpu.memory_space<vmem>>, %arg7: memref<96x32xbf16, #tpu.memory_space<vmem>>, %arg8: memref<1x32xf32, #tpu.memory_space<vmem>>, %arg9: memref<128x32xbf16, #tpu.memory_space<vmem>>, %arg10: memref<1x32xf32, #tpu.memory_space<vmem>>, %arg11: memref<32x3xf32, #tpu.memory_space<vmem>>, %arg12: memref<1x3xf32, #tpu.memory_space<vmem>>, %arg13: memref<8x3xf32, #tpu.memory_space<vmem>>, %arg14: memref<8x14x32xf32, #tpu.memory_space<vmem>>, %arg15: memref<8x13x32xf32, #tpu.memory_space<vmem>>) attributes {dimension_semantics = [#tpu.dimension_semantics<parallel>], iteration_bounds = array<i64: 4>, scalar_prefetch = 0 : i64, scratch_operands = 0 : i64, tpu.core_type = #tpu.core_type<tc>, window_params = [{transform_indices = @transform_0, window_bounds = array<i64: 128, 32>}, {transform_indices = @transform_1, window_bounds = array<i64: 64, 32>}, {pipeline_mode = #tpu.pipeline_mode<synchronous>, transform_indices = @transform_2, window_bounds = array<i64: 96, 16>}, {pipeline_mode = #tpu.pipeline_mode<synchronous>, transform_indices = @transform_3, window_bounds = array<i64: 1, 16>}, {pipeline_mode = #tpu.pipeline_mode<synchronous>, transform_indices = @transform_4, window_bounds = array<i64: 16, 16>}, {pipeline_mode = #tpu.pipeline_mode<synchronous>, transform_indices = @transform_5, window_bounds = array<i64: 1, 16>}, {pipeline_mode = #tpu.pipeline_mode<synchronous>, transform_indices = @transform_6, window_bounds = array<i64: 96, 32>}, {pipeline_mode = #tpu.pipeline_mode<synchronous>, transform_indices = @transform_7, window_bounds = array<i64: 1, 32>}, {pipeline_mode = #tpu.pipeline_mode<synchronous>, transform_indices = @transform_8, window_bounds = array<i64: 128, 32>}, {pipeline_mode = #tpu.pipeline_mode<synchronous>, transform_indices = @transform_9, window_bounds = array<i64: 1, 32>}, {pipeline_mode = #tpu.pipeline_mode<synchronous>, transform_indices = @transform_10, window_bounds = array<i64: 32, 3>}, {pipeline_mode = #tpu.pipeline_mode<synchronous>, transform_indices = @transform_11, window_bounds = array<i64: 1, 3>}, {transform_indices = @transform_12, window_bounds = array<i64: 8, 3>}, {transform_indices = @transform_13, window_bounds = array<i64: 8, 14, 32>}, {transform_indices = @transform_14, window_bounds = array<i64: 8, 13, 32>}]} {
    %c0 = arith.constant 0 : index
    %c0_0 = arith.constant 0 : index
    %0 = vector.load %arg2[%c0, %c0_0] : memref<64x32xf32, #tpu.memory_space<vmem>>, vector<64x32xf32>
    %cst = arith.constant 0.000000e+00 : f32
    %1 = vector.broadcast %cst : f32 to vector<1x32xf32>
    %2 = vector.extract_strided_slice %0 {offsets = [1, 0], sizes = [63, 32], strides = [1, 1]} : vector<64x32xf32> to vector<63x32xf32>
    %3 = tpu.concatenate %2, %1 in 0 : vector<63x32xf32>, vector<1x32xf32> -> vector<64x32xf32>
    %cst_1 = arith.constant 0.000000e+00 : f32
    %4 = vector.broadcast %cst_1 : f32 to vector<2x32xf32>
    %5 = vector.extract_strided_slice %0 {offsets = [2, 0], sizes = [62, 32], strides = [1, 1]} : vector<64x32xf32> to vector<62x32xf32>
    %6 = tpu.concatenate %5, %4 in 0 : vector<62x32xf32>, vector<2x32xf32> -> vector<64x32xf32>
    %7 = tpu.concatenate %0, %3, %6 in 1 : vector<64x32xf32>, vector<64x32xf32>, vector<64x32xf32> -> vector<64x96xf32>
    %8 = arith.truncf %7 : vector<64x96xf32> to vector<64x96xbf16>
    %c0_2 = arith.constant 0 : index
    %c0_3 = arith.constant 0 : index
    %9 = vector.load %arg3[%c0_2, %c0_3] : memref<96x16xbf16, #tpu.memory_space<vmem>>, vector<96x16xbf16>
    %cst_4 = arith.constant dense<0.000000e+00> : vector<64x16xf32>
    %10 = tpu.matmul %8, %9, %cst_4 {dimension_numbers = #tpu.dot_dimension_numbers<[1], [0], [0], [1], [0, 0, 1, 1], [], []>} : vector<64x96xbf16>, vector<96x16xbf16>, vector<64x16xf32> -> vector<64x16xf32>
    %c0_5 = arith.constant 0 : index
    %c0_6 = arith.constant 0 : index
    %11 = vector.load %arg4[%c0_5, %c0_6] : memref<1x16xf32, #tpu.memory_space<vmem>>, vector<1x16xf32>
    %12 = vector.broadcast %11 : vector<1x16xf32> to vector<64x16xf32>
    %13 = arith.addf %10, %12 : vector<64x16xf32>
    %cst_7 = arith.constant 0.000000e+00 : f32
    %14 = vector.broadcast %cst_7 : f32 to vector<64x16xf32>
    %15 = arith.maximumf %13, %14 : vector<64x16xf32>
    %16 = vector.shape_cast %15 : vector<64x16xf32> to vector<8x8x16xf32>
    %17 = tpu.iota {dimensions = array<i32: 1>} : vector<8x8x16xi32>
    %c4_i32 = arith.constant 4 : i32
    %18 = vector.broadcast %c4_i32 : i32 to vector<8x8x16xi32>
    %19 = arith.cmpi slt, %17, %18 : vector<8x8x16xi32>
    %cst_8 = arith.constant 0xFF800000 : f32
    %20 = vector.broadcast %cst_8 : f32 to vector<8x8x16xf32>
    %21 = arith.select %19, %16, %20 : vector<8x8x16xi1>, vector<8x8x16xf32>
    %cst_9 = arith.constant dense<0xFF800000> : vector<8x16xf32>
    %22 = vector.multi_reduction <maximumf>, %21, %cst_9 [1] : vector<8x8x16xf32> to vector<8x16xf32>
    %c0_10 = arith.constant 0 : index
    %c0_11 = arith.constant 0 : index
    %23 = vector.load %arg5[%c0_10, %c0_11] : memref<16x16xf32, #tpu.memory_space<vmem>>, vector<16x16xf32>
    %cst_12 = arith.constant dense<0.000000e+00> : vector<8x16xf32>
    %24 = tpu.matmul %22, %23, %cst_12 {dimension_numbers = #tpu.dot_dimension_numbers<[1], [0], [0], [1], [0, 0, 1, 1], [], []>} : vector<8x16xf32>, vector<16x16xf32>, vector<8x16xf32> -> vector<8x16xf32>
    %c0_13 = arith.constant 0 : index
    %c0_14 = arith.constant 0 : index
    %25 = vector.load %arg6[%c0_13, %c0_14] : memref<1x16xf32, #tpu.memory_space<vmem>>, vector<1x16xf32>
    %26 = vector.broadcast %25 : vector<1x16xf32> to vector<8x16xf32>
    %27 = arith.addf %24, %26 : vector<8x16xf32>
    %c0_15 = arith.constant 0 : index
    %c0_16 = arith.constant 0 : index
    %28 = vector.load %arg1[%c0_15, %c0_16] : memref<128x32xf32, #tpu.memory_space<vmem>>, vector<128x32xf32>
    %29 = tpu.iota {dimensions = array<i32: 1>} : vector<8x16x16xi32>
    %cst_17 = arith.constant 0.000000e+00 : f32
    %30 = vector.broadcast %cst_17 : f32 to vector<1x32xf32>
    %31 = vector.extract_strided_slice %28 {offsets = [1, 0], sizes = [127, 32], strides = [1, 1]} : vector<128x32xf32> to vector<127x32xf32>
    %32 = tpu.concatenate %31, %30 in 0 : vector<127x32xf32>, vector<1x32xf32> -> vector<128x32xf32>
    %cst_18 = arith.constant 0.000000e+00 : f32
    %33 = vector.broadcast %cst_18 : f32 to vector<2x32xf32>
    %34 = vector.extract_strided_slice %28 {offsets = [2, 0], sizes = [126, 32], strides = [1, 1]} : vector<128x32xf32> to vector<126x32xf32>
    %35 = tpu.concatenate %34, %33 in 0 : vector<126x32xf32>, vector<2x32xf32> -> vector<128x32xf32>
    %36 = tpu.concatenate %28, %32, %35 in 1 : vector<128x32xf32>, vector<128x32xf32>, vector<128x32xf32> -> vector<128x96xf32>
    %37 = arith.truncf %36 : vector<128x96xf32> to vector<128x96xbf16>
    %c0_19 = arith.constant 0 : index
    %c0_20 = arith.constant 0 : index
    %38 = vector.load %arg7[%c0_19, %c0_20] : memref<96x32xbf16, #tpu.memory_space<vmem>>, vector<96x32xbf16>
    %cst_21 = arith.constant dense<0.000000e+00> : vector<128x32xf32>
    %39 = tpu.matmul %37, %38, %cst_21 {dimension_numbers = #tpu.dot_dimension_numbers<[1], [0], [0], [1], [0, 0, 1, 1], [], []>} : vector<128x96xbf16>, vector<96x32xbf16>, vector<128x32xf32> -> vector<128x32xf32>
    %c0_22 = arith.constant 0 : index
    %c0_23 = arith.constant 0 : index
    %40 = vector.load %arg8[%c0_22, %c0_23] : memref<1x32xf32, #tpu.memory_space<vmem>>, vector<1x32xf32>
    %41 = vector.broadcast %40 : vector<1x32xf32> to vector<128x32xf32>
    %42 = arith.addf %39, %41 : vector<128x32xf32>
    %43 = vector.shape_cast %42 : vector<128x32xf32> to vector<8x16x32xf32>
    %44 = vector.extract_strided_slice %43 {offsets = [0, 0, 0], sizes = [8, 16, 16], strides = [1, 1, 1]} : vector<8x16x32xf32> to vector<8x16x16xf32>
    %45 = math.tanh %44 : vector<8x16x16xf32>
    %46 = vector.extract_strided_slice %43 {offsets = [0, 0, 16], sizes = [8, 16, 16], strides = [1, 1, 1]} : vector<8x16x32xf32> to vector<8x16x16xf32>
    %47 = vector.shape_cast %27 : vector<8x16xf32> to vector<8x1x16xf32>
    %48 = vector.broadcast %47 : vector<8x1x16xf32> to vector<8x16x16xf32>
    %49 = arith.addf %46, %48 : vector<8x16x16xf32>
    %cst_24 = arith.constant 0.000000e+00 : f32
    %50 = vector.broadcast %cst_24 : f32 to vector<8x16x16xf32>
    %51 = arith.maximumf %49, %50 : vector<8x16x16xf32>
    %52 = arith.mulf %45, %51 : vector<8x16x16xf32>
    %c14_i32 = arith.constant 14 : i32
    %53 = vector.broadcast %c14_i32 : i32 to vector<8x16x16xi32>
    %54 = arith.cmpi slt, %29, %53 : vector<8x16x16xi32>
    %cst_25 = arith.constant 0xFF800000 : f32
    %55 = vector.broadcast %cst_25 : f32 to vector<8x16x16xf32>
    %56 = arith.select %54, %52, %55 : vector<8x16x16xi1>, vector<8x16x16xf32>
    %cst_26 = arith.constant dense<0xFF800000> : vector<8x16xf32>
    %57 = vector.multi_reduction <maximumf>, %56, %cst_26 [1] : vector<8x16x16xf32> to vector<8x16xf32>
    %58 = tpu.concatenate %52, %51 in 2 : vector<8x16x16xf32>, vector<8x16x16xf32> -> vector<8x16x32xf32>
    %59 = vector.extract_strided_slice %58 {offsets = [0, 0, 0], sizes = [8, 14, 32], strides = [1, 1, 1]} : vector<8x16x32xf32> to vector<8x14x32xf32>
    %c0_27 = arith.constant 0 : index
    %c0_28 = arith.constant 0 : index
    %c0_29 = arith.constant 0 : index
    %60 = vector.load %arg14[%c0_27, %c0_28, %c0_29] : memref<8x14x32xf32, #tpu.memory_space<vmem>>, vector<8x14x32xf32>
    tpu.vector_store %arg14[%c0_27, %c0_28, %c0_29], %59 {strides = array<i32>} : memref<8x14x32xf32, #tpu.memory_space<vmem>>, vector<8x14x32xf32>,
    %cst_30 = arith.constant 0.000000e+00 : f32
    %61 = vector.broadcast %cst_30 : f32 to vector<1x32xf32>
    %62 = vector.extract_strided_slice %28 {offsets = [1, 0], sizes = [127, 32], strides = [1, 1]} : vector<128x32xf32> to vector<127x32xf32>
    %63 = tpu.concatenate %62, %61 in 0 : vector<127x32xf32>, vector<1x32xf32> -> vector<128x32xf32>
    %cst_31 = arith.constant 0.000000e+00 : f32
    %64 = vector.broadcast %cst_31 : f32 to vector<2x32xf32>
    %65 = vector.extract_strided_slice %28 {offsets = [2, 0], sizes = [126, 32], strides = [1, 1]} : vector<128x32xf32> to vector<126x32xf32>
    %66 = tpu.concatenate %65, %64 in 0 : vector<126x32xf32>, vector<2x32xf32> -> vector<128x32xf32>
    %cst_32 = arith.constant 0.000000e+00 : f32
    %67 = vector.broadcast %cst_32 : f32 to vector<3x32xf32>
    %68 = vector.extract_strided_slice %28 {offsets = [3, 0], sizes = [125, 32], strides = [1, 1]} : vector<128x32xf32> to vector<125x32xf32>
    %69 = tpu.concatenate %68, %67 in 0 : vector<125x32xf32>, vector<3x32xf32> -> vector<128x32xf32>
    %70 = tpu.concatenate %28, %63, %66, %69 in 1 : vector<128x32xf32>, vector<128x32xf32>, vector<128x32xf32>, vector<128x32xf32> -> vector<128x128xf32>
    %71 = arith.truncf %70 : vector<128x128xf32> to vector<128x128xbf16>
    %c0_33 = arith.constant 0 : index
    %c0_34 = arith.constant 0 : index
    %72 = vector.load %arg9[%c0_33, %c0_34] : memref<128x32xbf16, #tpu.memory_space<vmem>>, vector<128x32xbf16>
    %cst_35 = arith.constant dense<0.000000e+00> : vector<128x32xf32>
    %73 = tpu.matmul %71, %72, %cst_35 {dimension_numbers = #tpu.dot_dimension_numbers<[1], [0], [0], [1], [0, 0, 1, 1], [], []>} : vector<128x128xbf16>, vector<128x32xbf16>, vector<128x32xf32> -> vector<128x32xf32>
    %c0_36 = arith.constant 0 : index
    %c0_37 = arith.constant 0 : index
    %74 = vector.load %arg10[%c0_36, %c0_37] : memref<1x32xf32, #tpu.memory_space<vmem>>, vector<1x32xf32>
    %75 = vector.broadcast %74 : vector<1x32xf32> to vector<128x32xf32>
    %76 = arith.addf %73, %75 : vector<128x32xf32>
    %77 = vector.shape_cast %76 : vector<128x32xf32> to vector<8x16x32xf32>
    %78 = vector.extract_strided_slice %77 {offsets = [0, 0, 0], sizes = [8, 16, 16], strides = [1, 1, 1]} : vector<8x16x32xf32> to vector<8x16x16xf32>
    %79 = math.tanh %78 : vector<8x16x16xf32>
    %80 = vector.extract_strided_slice %77 {offsets = [0, 0, 16], sizes = [8, 16, 16], strides = [1, 1, 1]} : vector<8x16x32xf32> to vector<8x16x16xf32>
    %81 = vector.shape_cast %27 : vector<8x16xf32> to vector<8x1x16xf32>
    %82 = vector.broadcast %81 : vector<8x1x16xf32> to vector<8x16x16xf32>
    %83 = arith.addf %80, %82 : vector<8x16x16xf32>
    %cst_38 = arith.constant 0.000000e+00 : f32
    %84 = vector.broadcast %cst_38 : f32 to vector<8x16x16xf32>
    %85 = arith.maximumf %83, %84 : vector<8x16x16xf32>
    %86 = arith.mulf %79, %85 : vector<8x16x16xf32>
    %c13_i32 = arith.constant 13 : i32
    %87 = vector.broadcast %c13_i32 : i32 to vector<8x16x16xi32>
    %88 = arith.cmpi slt, %29, %87 : vector<8x16x16xi32>
    %cst_39 = arith.constant 0xFF800000 : f32
    %89 = vector.broadcast %cst_39 : f32 to vector<8x16x16xf32>
    %90 = arith.select %88, %86, %89 : vector<8x16x16xi1>, vector<8x16x16xf32>
    %cst_40 = arith.constant dense<0xFF800000> : vector<8x16xf32>
    %91 = vector.multi_reduction <maximumf>, %90, %cst_40 [1] : vector<8x16x16xf32> to vector<8x16xf32>
    %92 = tpu.concatenate %86, %85 in 2 : vector<8x16x16xf32>, vector<8x16x16xf32> -> vector<8x16x32xf32>
    %93 = vector.extract_strided_slice %92 {offsets = [0, 0, 0], sizes = [8, 13, 32], strides = [1, 1, 1]} : vector<8x16x32xf32> to vector<8x13x32xf32>
    %c0_41 = arith.constant 0 : index
    %c0_42 = arith.constant 0 : index
    %c0_43 = arith.constant 0 : index
    %94 = vector.load %arg15[%c0_41, %c0_42, %c0_43] : memref<8x13x32xf32, #tpu.memory_space<vmem>>, vector<8x13x32xf32>
    tpu.vector_store %arg15[%c0_41, %c0_42, %c0_43], %93 {strides = array<i32>} : memref<8x13x32xf32, #tpu.memory_space<vmem>>, vector<8x13x32xf32>,
    %95 = tpu.concatenate %57, %91 in 1 : vector<8x16xf32>, vector<8x16xf32> -> vector<8x32xf32>
    %c0_44 = arith.constant 0 : index
    %c0_45 = arith.constant 0 : index
    %96 = vector.load %arg11[%c0_44, %c0_45] : memref<32x3xf32, #tpu.memory_space<vmem>>, vector<32x3xf32>
    %cst_46 = arith.constant dense<0.000000e+00> : vector<8x3xf32>
    %97 = tpu.matmul %95, %96, %cst_46 {dimension_numbers = #tpu.dot_dimension_numbers<[1], [0], [0], [1], [0, 0, 1, 1], [], []>} : vector<8x32xf32>, vector<32x3xf32>, vector<8x3xf32> -> vector<8x3xf32>
    %c0_47 = arith.constant 0 : index
    %c0_48 = arith.constant 0 : index
    %98 = vector.load %arg12[%c0_47, %c0_48] : memref<1x3xf32, #tpu.memory_space<vmem>>, vector<1x3xf32>
    %99 = vector.broadcast %98 : vector<1x3xf32> to vector<8x3xf32>
    %100 = arith.addf %97, %99 : vector<8x3xf32>
    %c0_49 = arith.constant 0 : index
    %c0_50 = arith.constant 0 : index
    %101 = vector.load %arg13[%c0_49, %c0_50] : memref<8x3xf32, #tpu.memory_space<vmem>>, vector<8x3xf32>
    tpu.vector_store %arg13[%c0_49, %c0_50], %100 {strides = array<i32>} : memref<8x3xf32, #tpu.memory_space<vmem>>, vector<8x3xf32>,
    return
  }
  func.func @transform_0(%arg0: i32) -> (i32, i32) {
    %c0_i32 = arith.constant 0 : i32
    %c0_i32_0 = arith.constant 0 : i32
    return %arg0, %c0_i32 : i32, i32
  }
  func.func @transform_1(%arg0: i32) -> (i32, i32) {
    %c0_i32 = arith.constant 0 : i32
    %c0_i32_0 = arith.constant 0 : i32
    return %arg0, %c0_i32 : i32, i32
  }
  func.func @transform_2(%arg0: i32) -> (i32, i32) {
    %c0_i32 = arith.constant 0 : i32
    %c0_i32_0 = arith.constant 0 : i32
    %c0_i32_1 = arith.constant 0 : i32
    return %c0_i32, %c0_i32_0 : i32, i32
  }
  func.func @transform_3(%arg0: i32) -> (i32, i32) {
    %c0_i32 = arith.constant 0 : i32
    %c0_i32_0 = arith.constant 0 : i32
    %c0_i32_1 = arith.constant 0 : i32
    return %c0_i32, %c0_i32_0 : i32, i32
  }
  func.func @transform_4(%arg0: i32) -> (i32, i32) {
    %c0_i32 = arith.constant 0 : i32
    %c0_i32_0 = arith.constant 0 : i32
    %c0_i32_1 = arith.constant 0 : i32
    return %c0_i32, %c0_i32_0 : i32, i32
  }
  func.func @transform_5(%arg0: i32) -> (i32, i32) {
    %c0_i32 = arith.constant 0 : i32
    %c0_i32_0 = arith.constant 0 : i32
    %c0_i32_1 = arith.constant 0 : i32
    return %c0_i32, %c0_i32_0 : i32, i32
  }
  func.func @transform_6(%arg0: i32) -> (i32, i32) {
    %c0_i32 = arith.constant 0 : i32
    %c0_i32_0 = arith.constant 0 : i32
    %c0_i32_1 = arith.constant 0 : i32
    return %c0_i32, %c0_i32_0 : i32, i32
  }
  func.func @transform_7(%arg0: i32) -> (i32, i32) {
    %c0_i32 = arith.constant 0 : i32
    %c0_i32_0 = arith.constant 0 : i32
    %c0_i32_1 = arith.constant 0 : i32
    return %c0_i32, %c0_i32_0 : i32, i32
  }
  func.func @transform_8(%arg0: i32) -> (i32, i32) {
    %c0_i32 = arith.constant 0 : i32
    %c0_i32_0 = arith.constant 0 : i32
    %c0_i32_1 = arith.constant 0 : i32
    return %c0_i32, %c0_i32_0 : i32, i32
  }
  func.func @transform_9(%arg0: i32) -> (i32, i32) {
    %c0_i32 = arith.constant 0 : i32
    %c0_i32_0 = arith.constant 0 : i32
    %c0_i32_1 = arith.constant 0 : i32
    return %c0_i32, %c0_i32_0 : i32, i32
  }
  func.func @transform_10(%arg0: i32) -> (i32, i32) {
    %c0_i32 = arith.constant 0 : i32
    %c0_i32_0 = arith.constant 0 : i32
    %c0_i32_1 = arith.constant 0 : i32
    return %c0_i32, %c0_i32_0 : i32, i32
  }
  func.func @transform_11(%arg0: i32) -> (i32, i32) {
    %c0_i32 = arith.constant 0 : i32
    %c0_i32_0 = arith.constant 0 : i32
    %c0_i32_1 = arith.constant 0 : i32
    return %c0_i32, %c0_i32_0 : i32, i32
  }
  func.func @transform_12(%arg0: i32) -> (i32, i32) {
    %c0_i32 = arith.constant 0 : i32
    %c0_i32_0 = arith.constant 0 : i32
    return %arg0, %c0_i32 : i32, i32
  }
  func.func @transform_13(%arg0: i32) -> (i32, i32, i32) {
    %c0_i32 = arith.constant 0 : i32
    %c0_i32_0 = arith.constant 0 : i32
    %c0_i32_1 = arith.constant 0 : i32
    return %arg0, %c0_i32, %c0_i32_0 : i32, i32, i32
  }
  func.func @transform_14(%arg0: i32) -> (i32, i32, i32) {
    %c0_i32 = arith.constant 0 : i32
    %c0_i32_0 = arith.constant 0 : i32
    %c0_i32_1 = arith.constant 0 : i32
    return %arg0, %c0_i32, %c0_i32_0 : i32, i32, i32
  }
}

module attributes {stable_mosaic.version = 11 : i64} {
  func.func @kernel(%arg0: i32, %arg1: memref<128x32xf32, #tpu.memory_space<vmem>>, %arg2: memref<64x32xf32, #tpu.memory_space<vmem>>, %arg3: memref<96x16xbf16, #tpu.memory_space<vmem>>, %arg4: memref<1x16xf32, #tpu.memory_space<vmem>>, %arg5: memref<16x16xf32, #tpu.memory_space<vmem>>, %arg6: memref<1x16xf32, #tpu.memory_space<vmem>>, %arg7: memref<96x32xbf16, #tpu.memory_space<vmem>>, %arg8: memref<1x32xf32, #tpu.memory_space<vmem>>, %arg9: memref<128x32xbf16, #tpu.memory_space<vmem>>, %arg10: memref<1x32xf32, #tpu.memory_space<vmem>>, %arg11: memref<32x3xf32, #tpu.memory_space<vmem>>, %arg12: memref<1x3xf32, #tpu.memory_space<vmem>>, %arg13: memref<8x3xf32, #tpu.memory_space<vmem>>, %arg14: memref<8x14x32xf32, #tpu.memory_space<vmem>>, %arg15: memref<8x13x32xf32, #tpu.memory_space<vmem>>, %arg16: memref<64x96xf32, #tpu.memory_space<vmem>>, %arg17: memref<128x96xf32, #tpu.memory_space<vmem>>, %arg18: memref<128x128xf32, #tpu.memory_space<vmem>>) attributes {dimension_semantics = [#tpu.dimension_semantics<parallel>], iteration_bounds = array<i64: 4>, scalar_prefetch = 0 : i64, scratch_operands = 3 : i64, tpu.core_type = #tpu.core_type<tc>, window_params = [{transform_indices = @transform_0, window_bounds = array<i64: 128, 32>}, {transform_indices = @transform_1, window_bounds = array<i64: 64, 32>}, {pipeline_mode = #tpu.pipeline_mode<synchronous>, transform_indices = @transform_2, window_bounds = array<i64: 96, 16>}, {pipeline_mode = #tpu.pipeline_mode<synchronous>, transform_indices = @transform_3, window_bounds = array<i64: 1, 16>}, {pipeline_mode = #tpu.pipeline_mode<synchronous>, transform_indices = @transform_4, window_bounds = array<i64: 16, 16>}, {pipeline_mode = #tpu.pipeline_mode<synchronous>, transform_indices = @transform_5, window_bounds = array<i64: 1, 16>}, {pipeline_mode = #tpu.pipeline_mode<synchronous>, transform_indices = @transform_6, window_bounds = array<i64: 96, 32>}, {pipeline_mode = #tpu.pipeline_mode<synchronous>, transform_indices = @transform_7, window_bounds = array<i64: 1, 32>}, {pipeline_mode = #tpu.pipeline_mode<synchronous>, transform_indices = @transform_8, window_bounds = array<i64: 128, 32>}, {pipeline_mode = #tpu.pipeline_mode<synchronous>, transform_indices = @transform_9, window_bounds = array<i64: 1, 32>}, {pipeline_mode = #tpu.pipeline_mode<synchronous>, transform_indices = @transform_10, window_bounds = array<i64: 32, 3>}, {pipeline_mode = #tpu.pipeline_mode<synchronous>, transform_indices = @transform_11, window_bounds = array<i64: 1, 3>}, {transform_indices = @transform_12, window_bounds = array<i64: 8, 3>}, {transform_indices = @transform_13, window_bounds = array<i64: 8, 14, 32>}, {transform_indices = @transform_14, window_bounds = array<i64: 8, 13, 32>}]} {
    %c0 = arith.constant 0 : index
    %c0_0 = arith.constant 0 : index
    %0 = vector.load %arg2[%c0, %c0_0] : memref<64x32xf32, #tpu.memory_space<vmem>>, vector<64x32xf32>
    %cst = arith.constant 0.000000e+00 : f32
    %1 = vector.broadcast %cst : f32 to vector<64x96xf32>
    %c0_1 = arith.constant 0 : index
    %c0_2 = arith.constant 0 : index
    %2 = vector.load %arg16[%c0_1, %c0_2] : memref<64x96xf32, #tpu.memory_space<vmem>>, vector<64x96xf32>
    tpu.vector_store %arg16[%c0_1, %c0_2], %1 {strides = array<i32>} : memref<64x96xf32, #tpu.memory_space<vmem>>, vector<64x96xf32>,
    %c0_3 = arith.constant 0 : index
    %c0_4 = arith.constant 0 : index
    %3 = vector.load %arg16[%c0_3, %c0_4] : memref<64x96xf32, #tpu.memory_space<vmem>>, vector<64x32xf32>
    tpu.vector_store %arg16[%c0_3, %c0_4], %0 {strides = array<i32>} : memref<64x96xf32, #tpu.memory_space<vmem>>, vector<64x32xf32>,
    %4 = vector.extract_strided_slice %0 {offsets = [1, 0], sizes = [63, 32], strides = [1, 1]} : vector<64x32xf32> to vector<63x32xf32>
    %c0_5 = arith.constant 0 : index
    %c32 = arith.constant 32 : index
    %5 = vector.load %arg16[%c0_5, %c32] : memref<64x96xf32, #tpu.memory_space<vmem>>, vector<63x32xf32>
    tpu.vector_store %arg16[%c0_5, %c32], %4 {strides = array<i32>} : memref<64x96xf32, #tpu.memory_space<vmem>>, vector<63x32xf32>,
    %6 = vector.extract_strided_slice %0 {offsets = [2, 0], sizes = [62, 32], strides = [1, 1]} : vector<64x32xf32> to vector<62x32xf32>
    %c0_6 = arith.constant 0 : index
    %c64 = arith.constant 64 : index
    %7 = vector.load %arg16[%c0_6, %c64] : memref<64x96xf32, #tpu.memory_space<vmem>>, vector<62x32xf32>
    tpu.vector_store %arg16[%c0_6, %c64], %6 {strides = array<i32>} : memref<64x96xf32, #tpu.memory_space<vmem>>, vector<62x32xf32>,
    %c0_7 = arith.constant 0 : index
    %c0_8 = arith.constant 0 : index
    %8 = vector.load %arg16[%c0_7, %c0_8] : memref<64x96xf32, #tpu.memory_space<vmem>>, vector<64x96xf32>
    %9 = arith.truncf %8 : vector<64x96xf32> to vector<64x96xbf16>
    %c0_9 = arith.constant 0 : index
    %c0_10 = arith.constant 0 : index
    %10 = vector.load %arg3[%c0_9, %c0_10] : memref<96x16xbf16, #tpu.memory_space<vmem>>, vector<96x16xbf16>
    %cst_11 = arith.constant dense<0.000000e+00> : vector<64x16xf32>
    %11 = tpu.matmul %9, %10, %cst_11 {dimension_numbers = #tpu.dot_dimension_numbers<[1], [0], [0], [1], [0, 0, 1, 1], [], []>} : vector<64x96xbf16>, vector<96x16xbf16>, vector<64x16xf32> -> vector<64x16xf32>
    %c0_12 = arith.constant 0 : index
    %c0_13 = arith.constant 0 : index
    %12 = vector.load %arg4[%c0_12, %c0_13] : memref<1x16xf32, #tpu.memory_space<vmem>>, vector<1x16xf32>
    %13 = vector.broadcast %12 : vector<1x16xf32> to vector<64x16xf32>
    %14 = arith.addf %11, %13 : vector<64x16xf32>
    %cst_14 = arith.constant 0.000000e+00 : f32
    %15 = vector.broadcast %cst_14 : f32 to vector<64x16xf32>
    %16 = arith.maximumf %14, %15 : vector<64x16xf32>
    %17 = vector.shape_cast %16 : vector<64x16xf32> to vector<8x8x16xf32>
    %18 = tpu.iota {dimensions = array<i32: 1>} : vector<8x8x16xi32>
    %c4_i32 = arith.constant 4 : i32
    %19 = vector.broadcast %c4_i32 : i32 to vector<8x8x16xi32>
    %20 = arith.cmpi slt, %18, %19 : vector<8x8x16xi32>
    %cst_15 = arith.constant 0xFF800000 : f32
    %21 = vector.broadcast %cst_15 : f32 to vector<8x8x16xf32>
    %22 = arith.select %20, %17, %21 : vector<8x8x16xi1>, vector<8x8x16xf32>
    %cst_16 = arith.constant dense<0xFF800000> : vector<8x16xf32>
    %23 = vector.multi_reduction <maximumf>, %22, %cst_16 [1] : vector<8x8x16xf32> to vector<8x16xf32>
    %c0_17 = arith.constant 0 : index
    %c0_18 = arith.constant 0 : index
    %24 = vector.load %arg5[%c0_17, %c0_18] : memref<16x16xf32, #tpu.memory_space<vmem>>, vector<16x16xf32>
    %cst_19 = arith.constant dense<0.000000e+00> : vector<8x16xf32>
    %25 = tpu.matmul %23, %24, %cst_19 {dimension_numbers = #tpu.dot_dimension_numbers<[1], [0], [0], [1], [0, 0, 1, 1], [], []>} : vector<8x16xf32>, vector<16x16xf32>, vector<8x16xf32> -> vector<8x16xf32>
    %c0_20 = arith.constant 0 : index
    %c0_21 = arith.constant 0 : index
    %26 = vector.load %arg6[%c0_20, %c0_21] : memref<1x16xf32, #tpu.memory_space<vmem>>, vector<1x16xf32>
    %27 = vector.broadcast %26 : vector<1x16xf32> to vector<8x16xf32>
    %28 = arith.addf %25, %27 : vector<8x16xf32>
    %c0_22 = arith.constant 0 : index
    %c0_23 = arith.constant 0 : index
    %29 = vector.load %arg1[%c0_22, %c0_23] : memref<128x32xf32, #tpu.memory_space<vmem>>, vector<128x32xf32>
    %30 = tpu.iota {dimensions = array<i32: 1>} : vector<8x16x16xi32>
    %cst_24 = arith.constant 0.000000e+00 : f32
    %31 = vector.broadcast %cst_24 : f32 to vector<128x96xf32>
    %c0_25 = arith.constant 0 : index
    %c0_26 = arith.constant 0 : index
    %32 = vector.load %arg17[%c0_25, %c0_26] : memref<128x96xf32, #tpu.memory_space<vmem>>, vector<128x96xf32>
    tpu.vector_store %arg17[%c0_25, %c0_26], %31 {strides = array<i32>} : memref<128x96xf32, #tpu.memory_space<vmem>>, vector<128x96xf32>,
    %c0_27 = arith.constant 0 : index
    %c0_28 = arith.constant 0 : index
    %33 = vector.load %arg17[%c0_27, %c0_28] : memref<128x96xf32, #tpu.memory_space<vmem>>, vector<128x32xf32>
    tpu.vector_store %arg17[%c0_27, %c0_28], %29 {strides = array<i32>} : memref<128x96xf32, #tpu.memory_space<vmem>>, vector<128x32xf32>,
    %34 = vector.extract_strided_slice %29 {offsets = [1, 0], sizes = [127, 32], strides = [1, 1]} : vector<128x32xf32> to vector<127x32xf32>
    %c0_29 = arith.constant 0 : index
    %c32_30 = arith.constant 32 : index
    %35 = vector.load %arg17[%c0_29, %c32_30] : memref<128x96xf32, #tpu.memory_space<vmem>>, vector<127x32xf32>
    tpu.vector_store %arg17[%c0_29, %c32_30], %34 {strides = array<i32>} : memref<128x96xf32, #tpu.memory_space<vmem>>, vector<127x32xf32>,
    %36 = vector.extract_strided_slice %29 {offsets = [2, 0], sizes = [126, 32], strides = [1, 1]} : vector<128x32xf32> to vector<126x32xf32>
    %c0_31 = arith.constant 0 : index
    %c64_32 = arith.constant 64 : index
    %37 = vector.load %arg17[%c0_31, %c64_32] : memref<128x96xf32, #tpu.memory_space<vmem>>, vector<126x32xf32>
    tpu.vector_store %arg17[%c0_31, %c64_32], %36 {strides = array<i32>} : memref<128x96xf32, #tpu.memory_space<vmem>>, vector<126x32xf32>,
    %c0_33 = arith.constant 0 : index
    %c0_34 = arith.constant 0 : index
    %38 = vector.load %arg17[%c0_33, %c0_34] : memref<128x96xf32, #tpu.memory_space<vmem>>, vector<128x96xf32>
    %39 = arith.truncf %38 : vector<128x96xf32> to vector<128x96xbf16>
    %c0_35 = arith.constant 0 : index
    %c0_36 = arith.constant 0 : index
    %40 = vector.load %arg7[%c0_35, %c0_36] : memref<96x32xbf16, #tpu.memory_space<vmem>>, vector<96x32xbf16>
    %cst_37 = arith.constant dense<0.000000e+00> : vector<128x32xf32>
    %41 = tpu.matmul %39, %40, %cst_37 {dimension_numbers = #tpu.dot_dimension_numbers<[1], [0], [0], [1], [0, 0, 1, 1], [], []>} : vector<128x96xbf16>, vector<96x32xbf16>, vector<128x32xf32> -> vector<128x32xf32>
    %c0_38 = arith.constant 0 : index
    %c0_39 = arith.constant 0 : index
    %42 = vector.load %arg8[%c0_38, %c0_39] : memref<1x32xf32, #tpu.memory_space<vmem>>, vector<1x32xf32>
    %43 = vector.broadcast %42 : vector<1x32xf32> to vector<128x32xf32>
    %44 = arith.addf %41, %43 : vector<128x32xf32>
    %45 = vector.shape_cast %44 : vector<128x32xf32> to vector<8x16x32xf32>
    %46 = vector.extract_strided_slice %45 {offsets = [0, 0, 0], sizes = [8, 16, 16], strides = [1, 1, 1]} : vector<8x16x32xf32> to vector<8x16x16xf32>
    %47 = math.tanh %46 : vector<8x16x16xf32>
    %48 = vector.extract_strided_slice %45 {offsets = [0, 0, 16], sizes = [8, 16, 16], strides = [1, 1, 1]} : vector<8x16x32xf32> to vector<8x16x16xf32>
    %49 = vector.shape_cast %28 : vector<8x16xf32> to vector<8x1x16xf32>
    %50 = vector.broadcast %49 : vector<8x1x16xf32> to vector<8x16x16xf32>
    %51 = arith.addf %48, %50 : vector<8x16x16xf32>
    %cst_40 = arith.constant 0.000000e+00 : f32
    %52 = vector.broadcast %cst_40 : f32 to vector<8x16x16xf32>
    %53 = arith.maximumf %51, %52 : vector<8x16x16xf32>
    %54 = arith.mulf %47, %53 : vector<8x16x16xf32>
    %c14_i32 = arith.constant 14 : i32
    %55 = vector.broadcast %c14_i32 : i32 to vector<8x16x16xi32>
    %56 = arith.cmpi slt, %30, %55 : vector<8x16x16xi32>
    %cst_41 = arith.constant 0xFF800000 : f32
    %57 = vector.broadcast %cst_41 : f32 to vector<8x16x16xf32>
    %58 = arith.select %56, %54, %57 : vector<8x16x16xi1>, vector<8x16x16xf32>
    %cst_42 = arith.constant dense<0xFF800000> : vector<8x16xf32>
    %59 = vector.multi_reduction <maximumf>, %58, %cst_42 [1] : vector<8x16x16xf32> to vector<8x16xf32>
    %60 = tpu.concatenate %54, %53 in 2 : vector<8x16x16xf32>, vector<8x16x16xf32> -> vector<8x16x32xf32>
    %61 = vector.extract_strided_slice %60 {offsets = [0, 0, 0], sizes = [8, 14, 32], strides = [1, 1, 1]} : vector<8x16x32xf32> to vector<8x14x32xf32>
    %c0_43 = arith.constant 0 : index
    %c0_44 = arith.constant 0 : index
    %c0_45 = arith.constant 0 : index
    %62 = vector.load %arg14[%c0_43, %c0_44, %c0_45] : memref<8x14x32xf32, #tpu.memory_space<vmem>>, vector<8x14x32xf32>
    tpu.vector_store %arg14[%c0_43, %c0_44, %c0_45], %61 {strides = array<i32>} : memref<8x14x32xf32, #tpu.memory_space<vmem>>, vector<8x14x32xf32>,
    %cst_46 = arith.constant 0.000000e+00 : f32
    %63 = vector.broadcast %cst_46 : f32 to vector<128x128xf32>
    %c0_47 = arith.constant 0 : index
    %c0_48 = arith.constant 0 : index
    %64 = vector.load %arg18[%c0_47, %c0_48] : memref<128x128xf32, #tpu.memory_space<vmem>>, vector<128x128xf32>
    tpu.vector_store %arg18[%c0_47, %c0_48], %63 {strides = array<i32>} : memref<128x128xf32, #tpu.memory_space<vmem>>, vector<128x128xf32>,
    %c0_49 = arith.constant 0 : index
    %c0_50 = arith.constant 0 : index
    %65 = vector.load %arg18[%c0_49, %c0_50] : memref<128x128xf32, #tpu.memory_space<vmem>>, vector<128x32xf32>
    tpu.vector_store %arg18[%c0_49, %c0_50], %29 {strides = array<i32>} : memref<128x128xf32, #tpu.memory_space<vmem>>, vector<128x32xf32>,
    %66 = vector.extract_strided_slice %29 {offsets = [1, 0], sizes = [127, 32], strides = [1, 1]} : vector<128x32xf32> to vector<127x32xf32>
    %c0_51 = arith.constant 0 : index
    %c32_52 = arith.constant 32 : index
    %67 = vector.load %arg18[%c0_51, %c32_52] : memref<128x128xf32, #tpu.memory_space<vmem>>, vector<127x32xf32>
    tpu.vector_store %arg18[%c0_51, %c32_52], %66 {strides = array<i32>} : memref<128x128xf32, #tpu.memory_space<vmem>>, vector<127x32xf32>,
    %68 = vector.extract_strided_slice %29 {offsets = [2, 0], sizes = [126, 32], strides = [1, 1]} : vector<128x32xf32> to vector<126x32xf32>
    %c0_53 = arith.constant 0 : index
    %c64_54 = arith.constant 64 : index
    %69 = vector.load %arg18[%c0_53, %c64_54] : memref<128x128xf32, #tpu.memory_space<vmem>>, vector<126x32xf32>
    tpu.vector_store %arg18[%c0_53, %c64_54], %68 {strides = array<i32>} : memref<128x128xf32, #tpu.memory_space<vmem>>, vector<126x32xf32>,
    %70 = vector.extract_strided_slice %29 {offsets = [3, 0], sizes = [125, 32], strides = [1, 1]} : vector<128x32xf32> to vector<125x32xf32>
    %c0_55 = arith.constant 0 : index
    %c96 = arith.constant 96 : index
    %71 = vector.load %arg18[%c0_55, %c96] : memref<128x128xf32, #tpu.memory_space<vmem>>, vector<125x32xf32>
    tpu.vector_store %arg18[%c0_55, %c96], %70 {strides = array<i32>} : memref<128x128xf32, #tpu.memory_space<vmem>>, vector<125x32xf32>,
    %c0_56 = arith.constant 0 : index
    %c0_57 = arith.constant 0 : index
    %72 = vector.load %arg18[%c0_56, %c0_57] : memref<128x128xf32, #tpu.memory_space<vmem>>, vector<128x128xf32>
    %73 = arith.truncf %72 : vector<128x128xf32> to vector<128x128xbf16>
    %c0_58 = arith.constant 0 : index
    %c0_59 = arith.constant 0 : index
    %74 = vector.load %arg9[%c0_58, %c0_59] : memref<128x32xbf16, #tpu.memory_space<vmem>>, vector<128x32xbf16>
    %cst_60 = arith.constant dense<0.000000e+00> : vector<128x32xf32>
    %75 = tpu.matmul %73, %74, %cst_60 {dimension_numbers = #tpu.dot_dimension_numbers<[1], [0], [0], [1], [0, 0, 1, 1], [], []>} : vector<128x128xbf16>, vector<128x32xbf16>, vector<128x32xf32> -> vector<128x32xf32>
    %c0_61 = arith.constant 0 : index
    %c0_62 = arith.constant 0 : index
    %76 = vector.load %arg10[%c0_61, %c0_62] : memref<1x32xf32, #tpu.memory_space<vmem>>, vector<1x32xf32>
    %77 = vector.broadcast %76 : vector<1x32xf32> to vector<128x32xf32>
    %78 = arith.addf %75, %77 : vector<128x32xf32>
    %79 = vector.shape_cast %78 : vector<128x32xf32> to vector<8x16x32xf32>
    %80 = vector.extract_strided_slice %79 {offsets = [0, 0, 0], sizes = [8, 16, 16], strides = [1, 1, 1]} : vector<8x16x32xf32> to vector<8x16x16xf32>
    %81 = math.tanh %80 : vector<8x16x16xf32>
    %82 = vector.extract_strided_slice %79 {offsets = [0, 0, 16], sizes = [8, 16, 16], strides = [1, 1, 1]} : vector<8x16x32xf32> to vector<8x16x16xf32>
    %83 = vector.shape_cast %28 : vector<8x16xf32> to vector<8x1x16xf32>
    %84 = vector.broadcast %83 : vector<8x1x16xf32> to vector<8x16x16xf32>
    %85 = arith.addf %82, %84 : vector<8x16x16xf32>
    %cst_63 = arith.constant 0.000000e+00 : f32
    %86 = vector.broadcast %cst_63 : f32 to vector<8x16x16xf32>
    %87 = arith.maximumf %85, %86 : vector<8x16x16xf32>
    %88 = arith.mulf %81, %87 : vector<8x16x16xf32>
    %c13_i32 = arith.constant 13 : i32
    %89 = vector.broadcast %c13_i32 : i32 to vector<8x16x16xi32>
    %90 = arith.cmpi slt, %30, %89 : vector<8x16x16xi32>
    %cst_64 = arith.constant 0xFF800000 : f32
    %91 = vector.broadcast %cst_64 : f32 to vector<8x16x16xf32>
    %92 = arith.select %90, %88, %91 : vector<8x16x16xi1>, vector<8x16x16xf32>
    %cst_65 = arith.constant dense<0xFF800000> : vector<8x16xf32>
    %93 = vector.multi_reduction <maximumf>, %92, %cst_65 [1] : vector<8x16x16xf32> to vector<8x16xf32>
    %94 = tpu.concatenate %88, %87 in 2 : vector<8x16x16xf32>, vector<8x16x16xf32> -> vector<8x16x32xf32>
    %95 = vector.extract_strided_slice %94 {offsets = [0, 0, 0], sizes = [8, 13, 32], strides = [1, 1, 1]} : vector<8x16x32xf32> to vector<8x13x32xf32>
    %c0_66 = arith.constant 0 : index
    %c0_67 = arith.constant 0 : index
    %c0_68 = arith.constant 0 : index
    %96 = vector.load %arg15[%c0_66, %c0_67, %c0_68] : memref<8x13x32xf32, #tpu.memory_space<vmem>>, vector<8x13x32xf32>
    tpu.vector_store %arg15[%c0_66, %c0_67, %c0_68], %95 {strides = array<i32>} : memref<8x13x32xf32, #tpu.memory_space<vmem>>, vector<8x13x32xf32>,
    %97 = tpu.concatenate %59, %93 in 1 : vector<8x16xf32>, vector<8x16xf32> -> vector<8x32xf32>
    %c0_69 = arith.constant 0 : index
    %c0_70 = arith.constant 0 : index
    %98 = vector.load %arg11[%c0_69, %c0_70] : memref<32x3xf32, #tpu.memory_space<vmem>>, vector<32x3xf32>
    %cst_71 = arith.constant dense<0.000000e+00> : vector<8x3xf32>
    %99 = tpu.matmul %97, %98, %cst_71 {dimension_numbers = #tpu.dot_dimension_numbers<[1], [0], [0], [1], [0, 0, 1, 1], [], []>} : vector<8x32xf32>, vector<32x3xf32>, vector<8x3xf32> -> vector<8x3xf32>
    %c0_72 = arith.constant 0 : index
    %c0_73 = arith.constant 0 : index
    %100 = vector.load %arg12[%c0_72, %c0_73] : memref<1x3xf32, #tpu.memory_space<vmem>>, vector<1x3xf32>
    %101 = vector.broadcast %100 : vector<1x3xf32> to vector<8x3xf32>
    %102 = arith.addf %99, %101 : vector<8x3xf32>
    %c0_74 = arith.constant 0 : index
    %c0_75 = arith.constant 0 : index
    %103 = vector.load %arg13[%c0_74, %c0_75] : memref<8x3xf32, #tpu.memory_space<vmem>>, vector<8x3xf32>
    tpu.vector_store %arg13[%c0_74, %c0_75], %102 {strides = array<i32>} : memref<8x3xf32, #tpu.memory_space<vmem>>, vector<8x3xf32>,
    return
  }
  func.func @transform_0(%arg0: i32) -> (i32, i32) {
    %c0_i32 = arith.constant 0 : i32
    %c0_i32_0 = arith.constant 0 : i32
    return %arg0, %c0_i32 : i32, i32
  }
  func.func @transform_1(%arg0: i32) -> (i32, i32) {
    %c0_i32 = arith.constant 0 : i32
    %c0_i32_0 = arith.constant 0 : i32
    return %arg0, %c0_i32 : i32, i32
  }
  func.func @transform_2(%arg0: i32) -> (i32, i32) {
    %c0_i32 = arith.constant 0 : i32
    %c0_i32_0 = arith.constant 0 : i32
    %c0_i32_1 = arith.constant 0 : i32
    return %c0_i32, %c0_i32_0 : i32, i32
  }
  func.func @transform_3(%arg0: i32) -> (i32, i32) {
    %c0_i32 = arith.constant 0 : i32
    %c0_i32_0 = arith.constant 0 : i32
    %c0_i32_1 = arith.constant 0 : i32
    return %c0_i32, %c0_i32_0 : i32, i32
  }
  func.func @transform_4(%arg0: i32) -> (i32, i32) {
    %c0_i32 = arith.constant 0 : i32
    %c0_i32_0 = arith.constant 0 : i32
    %c0_i32_1 = arith.constant 0 : i32
    return %c0_i32, %c0_i32_0 : i32, i32
  }
  func.func @transform_5(%arg0: i32) -> (i32, i32) {
    %c0_i32 = arith.constant 0 : i32
    %c0_i32_0 = arith.constant 0 : i32
    %c0_i32_1 = arith.constant 0 : i32
    return %c0_i32, %c0_i32_0 : i32, i32
  }
  func.func @transform_6(%arg0: i32) -> (i32, i32) {
    %c0_i32 = arith.constant 0 : i32
    %c0_i32_0 = arith.constant 0 : i32
    %c0_i32_1 = arith.constant 0 : i32
    return %c0_i32, %c0_i32_0 : i32, i32
  }
  func.func @transform_7(%arg0: i32) -> (i32, i32) {
    %c0_i32 = arith.constant 0 : i32
    %c0_i32_0 = arith.constant 0 : i32
    %c0_i32_1 = arith.constant 0 : i32
    return %c0_i32, %c0_i32_0 : i32, i32
  }
  func.func @transform_8(%arg0: i32) -> (i32, i32) {
    %c0_i32 = arith.constant 0 : i32
    %c0_i32_0 = arith.constant 0 : i32
    %c0_i32_1 = arith.constant 0 : i32
    return %c0_i32, %c0_i32_0 : i32, i32
  }
  func.func @transform_9(%arg0: i32) -> (i32, i32) {
    %c0_i32 = arith.constant 0 : i32
    %c0_i32_0 = arith.constant 0 : i32
    %c0_i32_1 = arith.constant 0 : i32
    return %c0_i32, %c0_i32_0 : i32, i32
  }
  func.func @transform_10(%arg0: i32) -> (i32, i32) {
    %c0_i32 = arith.constant 0 : i32
    %c0_i32_0 = arith.constant 0 : i32
    %c0_i32_1 = arith.constant 0 : i32
    return %c0_i32, %c0_i32_0 : i32, i32
  }
  func.func @transform_11(%arg0: i32) -> (i32, i32) {
    %c0_i32 = arith.constant 0 : i32
    %c0_i32_0 = arith.constant 0 : i32
    %c0_i32_1 = arith.constant 0 : i32
    return %c0_i32, %c0_i32_0 : i32, i32
  }
  func.func @transform_12(%arg0: i32) -> (i32, i32) {
    %c0_i32 = arith.constant 0 : i32
    %c0_i32_0 = arith.constant 0 : i32
    return %arg0, %c0_i32 : i32, i32
  }
  func.func @transform_13(%arg0: i32) -> (i32, i32, i32) {
    %c0_i32 = arith.constant 0 : i32
    %c0_i32_0 = arith.constant 0 : i32
    %c0_i32_1 = arith.constant 0 : i32
    return %arg0, %c0_i32, %c0_i32_0 : i32, i32, i32
  }
  func.func @transform_14(%arg0: i32) -> (i32, i32, i32) {
    %c0_i32 = arith.constant 0 : i32
    %c0_i32_0 = arith.constant 0 : i32
    %c0_i32_1 = arith.constant 0 : i32
    return %arg0, %c0_i32, %c0_i32_0 : i32, i32, i32
  }
}

</mosaic_0001>

<bundles_post_ra>
// kernel: tpu_custom_call.1
= control target key start
LH: loop header
LB: loop body
LE: loop exit
PB: predicated region body
PF: predicated region fallthrough
CT: control target
= control target key end

     0   :  { %s3095_s29 = smov 0   ;;  %s4563_s0 = inlined_call_operand.vmem [shape: f32[512,32], index: 0, kind: input, shape index: {}]   ;;  %s4564_s1 = inlined_call_operand.vmem [shape: f32[256,32], index: 1, kind: input, shape index: {}]   ;;  %s4565_s2 = inlined_call_operand.vmem [shape: bf16[96,16], index: 2, kind: input, shape index: {}]   ;;  %s4566_s3 = inlined_call_operand.vmem [shape: f32[1,16], index: 3, kind: input, shape index: {}]   ;;  %s4567_s4 = inlined_call_operand.vmem [shape: f32[16,16], index: 4, kind: input, shape index: {}]   ;;  %s4568_s5 = inlined_call_operand.vmem [shape: f32[1,16], index: 5, kind: input, shape index: {}]   ;;  %s4569_s6 = inlined_call_operand.vmem [shape: bf16[96,32], index: 6, kind: input, shape index: {}]   ;;  %s4570_s7 = inlined_call_operand.vmem [shape: f32[1,32], index: 7, kind: input, shape index: {}]   ;;  %s4571_s8 = inlined_call_operand.vmem [shape: bf16[128,32], index: 8, kind: input, shape index: {}]   ;;  %s4572_s9 = inlined_call_operand.vmem [shape: f32[1,32], index: 9, kind: input, shape index: {}]   ;;  %s4573_s10 = inlined_call_operand.vmem [shape: f32[32,3], index: 10, kind: input, shape index: {}]   ;;  %s4574_s11 = inlined_call_operand.vmem [shape: f32[1,3], index: 11, kind: input, shape index: {}]   ;;  %s4575_s12 = inlined_call_operand.vmem [shape: f32[32,3], index: 12, kind: output, shape index: {0}]   ;;  %s4576_s13 = inlined_call_operand.vmem [shape: f32[32,14,32], index: 13, kind: output, shape index: {1}]   ;;  %s4577_s14 = inlined_call_operand.vmem [shape: f32[32,13,32], index: 14, kind: output, shape index: {2}]  }
   0x1 LB: > { %s3101_s30 = sadd.s32 4294967295, %s3009_s29   ;;  %p2516_p0 = scmp.ge.s32.totalorder %s3009_s29, 1  ;;  %s3009_s29 = sphi %s3095_s29, %s25_s29  }
   0x2   : > { %p429_p1 = scmp.lt.s32.totalorder %s3009_s29, 5 }
   0x4   : > { %p430_p2 = pnand %p2516_p0, %p429_p1 }
   0x6   : > { %433 = sbr.rel (%p430_p2) target bundleno = 1236 (0x4d4), region = 68 }
   0xd   : > { %s2519_s15 = sshll.u32 %s3101_s30, 3  ;;  %v2919_v0 = vld [vmem:[%s4565_s2] sm:$0xff]   ;;  %v2920_v1 = vld [vmem:[%s4565_s2 + $0x8] sm:$0xff]   ;;  %v2921_v2 = vld [vmem:[%s4565_s2 + $0x10] sm:$0xff]   ;;  %vm556_vm0 = vcmask 1045504   ;;  %vm538_vm1 = vcmask 1046528  }
   0xe   : > { %p498_p3 = scmp.lt.s32.totalorder %s2519_s15, 31  ;;  %2619 = vmatprep.subr.bf16.mxu0 %v2919_v0  ;;  %v2922_v17 = vld [vmem:[%s4565_s2 + $0x18] sm:$0xff]   ;;  %v2923_v28 = vld [vmem:[%s4565_s2 + $0x20] sm:$0xff]   ;;  %s3011_s17 = smov 64   ;;  %v2924_v47 = vld [vmem:[%s4565_s2 + $0x28] sm:$0xff]   ;;  %vm1728_vm2 = vcmask 1044480  }
   0xf   : > { %2620 = vmatpush3.bf16.msra.mxu0 %v2919_v0  ;;  %s3012_s18 = smov 32   ;;  %s2517_s21 = sshll.u32 %s3101_s30, 4  ;;  %vm624_vm3 = vcmask 261120   ;;  %vm633_vm4 = vcmask 523264   ;;  %vm701_vm5 = vcmask 785408   ;;  %vm3015_vm6 = vmmov 0  }
  0x10   : > { %s4674_s15 = smov (!%p498_p3, %s2519_s15), 31  ;;  %2621 = vmatprep.subr.bf16.mxu0 %v2920_v1  ;;  %p492_p4 = scmp.lt.s32.totalorder %s2517_s21, 63  ;;  %vm798_vm8 = vcmask 130048   ;;  %vm872_vm9 = vcmask 1041409   ;;  %vm874_vm10 = vcmask 1042434   ;;  %vm876_vm11 = vcmask 1043459  }
  0x11   : > { %s2520_s20 = sshll.u32 %s4674_s15, 3  ;;  %s3013_s26 = smov 96   ;;  %vm878_vm12 = vcmask 1044484   ;;  %vm880_vm13 = vcmask 1045509   ;;  %vm882_vm14 = vcmask 1046534   ;;  %vm884_vm15 = vcmask 1047559  }
  0x12   : > { %s501_s25 = scalar_lea.vmem %s4564_s1, %s2520_s20  ;;  %s4676_s21 = smov (!%p492_p4, %s2517_s21), 63 }
  0x13   : > { %v3121_v3 = vld [vmem:[%s501_s25] sm:$0xff]  ;;  %v3123_v4 = vld [vmem:[%s501_s25 + $0x8] sm:$0xff]  ;;  %v3125_v5 = vld [vmem:[%s501_s25 + $0x10] sm:$0xff]  ;;  %2622 = vmatpush3.bf16.msra.mxu0 %v2920_v1  ;;  %s2518_s22 = sshll.u32 %s4676_s21, 3  ;;  %s3018_s24 = smov 16  }
  0x14   : > { %v557_v6 = vrot.slane %v3121_v3, 2  ;;  %v558_v7 = vrot.slane %v3123_v4, 2  ;;  %v560_v8 = vrot.slane %v3125_v5, 2  ;;  %v539_v9 = vrot.slane %v3121_v3, 1  ;;  %v3131_v10 = vld [vmem:[%s501_s25 + $0x18] sm:$0xff]  ;;  %v3133_v11 = vld [vmem:[%s501_s25 + $0x20] sm:$0xff]  ;;  %2623 = vmatprep.subr.bf16.mxu0 %v2921_v2 }
  0x15   : > { %v540_v12 = vrot.slane %v3123_v4, 1  ;;  %v542_v13 = vrot.slane %v3125_v5, 1  ;;  %v562_v14 = vrot.slane %v3131_v10, 2  ;;  %v564_v15 = vrot.slane %v3133_v11, 2  ;;  %v3139_v16 = vld [vmem:[%s501_s25 + $0x30] sm:$0xff]  ;;  %v3148_v22 = vld [vmem:[%s501_s25 + $0x38] sm:$0xff] }
  0x16   : > { %v559_v18 = vsel %vm556_vm0, %v557_v6, %v558_v7  ;;  %v561_v19 = vsel %vm556_vm0, %v558_v7, %v560_v8  ;;  %v544_v20 = vrot.slane %v3131_v10, 1  ;;  %v546_v21 = vrot.slane %v3133_v11, 1  ;;  %v3150_v23 = vld [vmem:[%s501_s25 + $0x28] sm:$0xff]  ;;  %s3189_s25 = scalar_lea.vmem %s4563_s0, %s2518_s22  ;;  %s3019_s27 = smov 112  }
  0x17   : > { %v2769_v24 = vpack.i.bf16 %v561_v19, %v559_v18  ;;  %v541_v25 = vsel %vm538_vm1, %v539_v9, %v540_v12  ;;  %v543_v26 = vsel %vm538_vm1, %v540_v12, %v542_v13  ;;  %v563_v27 = vsel %vm556_vm0, %v560_v8, %v562_v14  ;;  %2624 = vmatpush3.bf16.msra.mxu0 %v2921_v2  ;;  %v3193_v54 = vld [vmem:[%s3189_s25] sm:$0xff]  ;;  %v3196_v55 = vld [vmem:[%s3189_s25 + $0x8] sm:$0xff]  ;;  %v3199_v56 = vld [vmem:[%s3189_s25 + $0x10] sm:$0xff]  ;;  %p503_p5 = scmp.lt.s32.totalorder %s3101_s30, 3 }
  0x18   : > { %v2759_v29 = vpack.i.bf16 %v543_v26, %v541_v25  ;;  %v565_v30 = vsel %vm556_vm0, %v562_v14, %v564_v15  ;;  %v545_v31 = vsel %vm538_vm1, %v542_v13, %v544_v20  ;;  %v547_v32 = vsel %vm538_vm1, %v544_v20, %v546_v21  ;;  %2625 = vmatprep.subr.bf16.mxu0 %v2922_v17  ;;  %v3205_v60 = vld [vmem:[%s3189_s25 + $0x18] sm:$0xff]  ;;  %v3208_v61 = vld [vmem:[%s3189_s25 + $0x20] sm:$0xff]  ;;  %v3220_v12 = vld [vmem:[%s3189_s25 + $0x28] sm:$0xff] }
  0x19   : > { %2770 = vrot.lane.b32.xlu1 %v2769_v24, %s3011_s17  ;;  %v2774_v33 = vpack.i.bf16 %v565_v30, %v563_v27  ;;  %v550_v34 = vrot.slane %v3139_v16, 1  ;;  %v552_v35 = vrot.slane %v3148_v22, 1  ;;  %v2764_v36 = vpack.i.bf16 %v547_v32, %v545_v31  ;;  %v3223_v13 = vld [vmem:[%s3189_s25 + $0x30] sm:$0xff]  ;;  %v3229_v19 = vld [vmem:[%s3189_s25 + $0x38] sm:$0xff]  ;;  %v3232_v20 = vld [vmem:[%s3189_s25 + $0x40] sm:$0xff]  ;;  %s4678_s30 = smov (!%p503_p5, %s3101_s30), 3 }
  0x1a   : > { %2760 = vrot.lane.b32.xlu0 %v2759_v29, %s3012_s18  ;;  %v548_v37 = vrot.slane %v3150_v23, 1  ;;  %v568_v38 = vrot.slane %v3139_v16, 2  ;;  %v570_v39 = vrot.slane %v3148_v22, 2  ;;  %v566_v42 = vrot.slane %v3150_v23, 2 }
  0x1b   : > { %v553_v40 = vsel %vm538_vm1, %v550_v34, %v552_v35  ;;  %v555_v41 = vsel %vm538_vm1, %v552_v35, 0.0  ;;  %2626 = vmatpush3.bf16.msra.mxu0 %v2922_v17  ;;  %v991_v57 = vrot.slane %v3193_v54, 1  ;;  %v992_v58 = vrot.slane %v3196_v55, 1 }
  0x1c   : > { %v549_v43 = vsel %vm538_vm1, %v546_v21, %v548_v37  ;;  %v551_v44 = vsel %vm538_vm1, %v548_v37, %v550_v34  ;;  %v2784_v45 = vpack.i.bf16 %v555_v41, %v553_v40  ;;  %v573_v46 = vsel %vm556_vm0, %v570_v39, 0.0  ;;  %2627 = vmatprep.subr.bf16.mxu0 %v2923_v28  ;;  %v3252_v41 = vld [vmem:[%s3189_s25 + $0x48] sm:$0xff] }
  0x1d   : > { %2775 = vrot.lane.b32.xlu1 %v2774_v33, %s3011_s17  ;;  %v2779_v48 = vpack.i.bf16 %v551_v44, %v549_v43  ;;  %v571_v49 = vsel %vm556_vm0, %v568_v38, %v570_v39  ;;  %v567_v50 = vsel %vm556_vm0, %v564_v15, %v566_v42  ;;  %v569_v51 = vsel %vm556_vm0, %v566_v42, %v568_v38  ;;  %v3255_v42 = vld [vmem:[%s3189_s25 + $0x50] sm:$0xff] }
  0x1e   : > { %2765 = vrot.lane.b32.xlu0 %v2764_v36, %s3012_s18  ;;  %v2794_v52 = vpack.i.bf16 %v573_v46, %v571_v49  ;;  %v2789_v53 = vpack.i.bf16 %v569_v51, %v567_v50  ;;  %v994_v59 = vrot.slane %v3199_v56, 1  ;;  %v1024_v62 = vrot.slane %v3193_v54, 2 }
  0x1f   : > { %2628 = vmatpush3.bf16.msra.mxu0 %v2923_v28  ;;  %v996_v63 = vrot.slane %v3205_v60, 1  ;;  %v998_v0 = vrot.slane %v3208_v61, 1  ;;  %v1025_v1 = vrot.slane %v3196_v55, 2  ;;  %v1027_v2 = vrot.slane %v3199_v56, 2 }
  0x20   : > { %2629 = vmatprep.subr.bf16.mxu0 %v2924_v47  ;;  %v993_v6 = vsel %vm538_vm1, %v991_v57, %v992_v58  ;;  %v995_v7 = vsel %vm538_vm1, %v992_v58, %v994_v59  ;;  %v1029_v8 = vrot.slane %v3205_v60, 2  ;;  %v1031_v9 = vrot.slane %v3208_v61, 2 }
  0x21   : > { %2785 = vrot.lane.b32.xlu1 %v2784_v45, %s3012_s18  ;;  %v2799_v14 = vpack.i.bf16 %v995_v7, %v993_v6  ;;  %v997_v15 = vsel %vm538_vm1, %v994_v59, %v996_v63  ;;  %v999_v17 = vsel %vm538_vm1, %v996_v63, %v998_v0  ;;  %v1026_v18 = vsel %vm556_vm0, %v1024_v62, %v1025_v1 }
  0x22   : > { %2780 = vrot.lane.b32.xlu0 %v2779_v48, %s3012_s18  ;;  %v2804_v21 = vpack.i.bf16 %v999_v17, %v997_v15  ;;  %v1028_v24 = vsel %vm556_vm0, %v1025_v1, %v1027_v2  ;;  %v1030_v25 = vsel %vm556_vm0, %v1027_v2, %v1029_v8  ;;  %v1032_v26 = vsel %vm556_vm0, %v1029_v8, %v1031_v9 }
  0x23   : > { %2630 = vmatpush3.bf16.msra.mxu0 %v2924_v47  ;;  %v2809_v27 = vpack.i.bf16 %v1028_v24, %v1026_v18  ;;  %v2814_v28 = vpack.i.bf16 %v1032_v26, %v1030_v25  ;;  %v1000_v29 = vrot.slane %v3220_v12, 1  ;;  %v1002_v30 = vrot.slane %v3223_v13, 1 }
  0x24   : > { %v1004_v31 = vrot.slane %v3229_v19, 1  ;;  %v1006_v32 = vrot.slane %v3232_v20, 1  ;;  %v1033_v33 = vrot.slane %v3220_v12, 2  ;;  %v1035_v34 = vrot.slane %v3223_v13, 2 }
  0x25   : > { %2795 = vrot.lane.b32.xlu1 %v2794_v52, %s3011_s17  ;;  %v1001_v35 = vsel %vm538_vm1, %v998_v0, %v1000_v29  ;;  %v1003_v36 = vsel %vm538_vm1, %v1000_v29, %v1002_v30  ;;  %v1037_v37 = vrot.slane %v3229_v19, 2  ;;  %v1039_v38 = vrot.slane %v3232_v20, 2 }
  0x26   : > { %2790 = vrot.lane.b32.xlu0 %v2789_v53, %s3011_s17  ;;  %v1005_v39 = vsel %vm538_vm1, %v1002_v30, %v1004_v31  ;;  %v1007_v40 = vsel %vm538_vm1, %v1004_v31, %v1006_v32  ;;  %v2819_v43 = vpack.i.bf16 %v1003_v36, %v1001_v35  ;;  %v1034_v45 = vsel %vm556_vm0, %v1031_v9, %v1033_v33 }
  0x27   : > { %v2824_v44 = vpack.i.bf16 %v1007_v40, %v1005_v39  ;;  %v1036_v46 = vsel %vm556_vm0, %v1033_v33, %v1035_v34  ;;  %v1038_v47 = vsel %vm556_vm0, %v1035_v34, %v1037_v37  ;;  %v1040_v48 = vsel %vm556_vm0, %v1037_v37, %v1039_v38 }
  0x28   : > { %v1729_v49 = vrot.slane %v3193_v54, 3  ;;  %v1730_v50 = vrot.slane %v3196_v55, 3  ;;  %v1732_v51 = vrot.slane %v3199_v56, 3  ;;  %v1008_v52 = vrot.slane %v3252_v41, 1 }
  0x29   : > { %2805 = vrot.lane.b32.xlu1 %v2804_v21, %s3012_s18  ;;  %v1010_v53 = vrot.slane %v3255_v42, 1  ;;  %v2829_v57 = vpack.i.bf16 %v1036_v46, %v1034_v45  ;;  %v2834_v58 = vpack.i.bf16 %v1040_v48, %v1038_v47  ;;  %v1734_v63 = vrot.slane %v3205_v60, 3 }
  0x2a   : > { %2800 = vrot.lane.b32.xlu0 %v2799_v14, %s3012_s18  ;;  %v1731_v59 = vsel %vm1728_vm2, %v1729_v49, %v1730_v50  ;;  %v1733_v62 = vsel %vm1728_vm2, %v1730_v50, %v1732_v51  ;;  %v1736_v0 = vrot.slane %v3208_v61, 3  ;;  %v1009_v1 = vsel %vm538_vm1, %v1006_v32, %v1008_v52 }
  0x2b   : > { %v1011_v2 = vsel %vm538_vm1, %v1008_v52, %v1010_v53  ;;  %v2839_v6 = vpack.i.bf16 %v1733_v62, %v1731_v59  ;;  %v1735_v8 = vsel %vm1728_vm2, %v1732_v51, %v1734_v63 }
  0x2c   : > { %v2844_v7 = vpack.i.bf16 %v1011_v2, %v1009_v1  ;;  %v1737_v9 = vsel %vm1728_vm2, %v1734_v63, %v1736_v0 }
  0x2d   : > { %2815 = vrot.lane.b32.xlu1 %v2814_v28, %s3011_s17  ;;  %v2849_v14 = vpack.i.bf16 %v1737_v9, %v1735_v8  ;;  %v1041_v9 = vrot.slane %v3252_v41, 2 }
  0x2e   : > { %2810 = vrot.lane.b32.xlu0 %v2809_v27, %s3011_s17 }
  0x31   : > { %2825 = vrot.lane.b32.xlu1 %v2824_v44, %s3012_s18 }
  0x32   : > { %2820 = vrot.lane.b32.xlu0 %v2819_v43, %s3012_s18 }
  0x35   : > { %2835 = vrot.lane.b32.xlu1 %v2834_v58, %s3011_s17 }
  0x36   : > { %2830 = vrot.lane.b32.xlu0 %v2829_v57, %s3011_s17 }
  0x39   : > { %2845 = vrot.lane.b32.xlu1 %v2844_v7, %s3012_s18 }
  0x3a   : > { %2840 = vrot.lane.b32.xlu0 %v2839_v6, %s3013_s26 }
  0x3e   : > { %2850 = vrot.lane.b32.xlu0 %v2849_v14, %s3013_s26  ;;  %v1043_v14 = vrot.slane %v3255_v42, 2 }
  0x8b   : > { %v2771_v15 = vpop.permute.xlu1 %2770 }
  0x8c   : > { %v2773_v17 = vunpack.i.h.bf16 %v2771_v15  ;;  %v2772_v18 = vunpack.i.l.bf16 %v2771_v15  ;;  %v2761_v21 = vpop.permute.xlu0 %2760 }
  0x8d   : > { %v2763_v24 = vunpack.i.h.bf16 %v2761_v21  ;;  %v2762_v25 = vunpack.i.l.bf16 %v2761_v21 }
  0x8f   : > { %v2776_v26 = vpop.permute.xlu1 %2775  ;;  %v625_v27 = vsel %vm624_vm3, %v3121_v3, %v2762_v25  ;;  %v626_v28 = vsel %vm624_vm3, %v3123_v4, %v2763_v24  ;;  %v1044_v24 = vsel %vm556_vm0, %v1041_v9, %v1043_v14 }
  0x90   : > { %v2778_v29 = vunpack.i.h.bf16 %v2776_v26  ;;  %v2777_v30 = vunpack.i.l.bf16 %v2776_v26  ;;  %v2766_v31 = vpop.permute.xlu0 %2765  ;;  %v634_v32 = vsel %vm633_vm4, %v625_v27, %v2772_v18  ;;  %v635_v33 = vsel %vm633_vm4, %v626_v28, %v2773_v17 }
  0x91   : > { %v2768_v34 = vunpack.i.h.bf16 %v2766_v31  ;;  %v2767_v35 = vunpack.i.l.bf16 %v2766_v31  ;;  %v642_v36 = vpack.c.bf16 %v635_v33, %v634_v32  ;;  %v1042_v18 = vsel %vm556_vm0, %v1039_v38, %v1041_v9 }
  0x92   : > { %v2859_v25 = vpack.i.bf16 %v1044_v24, %v1042_v18  ;;  %v1740_v28 = vrot.slane %v3223_v13, 3  ;;  %v856_v18 = vld [vmem:[%s4567_s4 + $0x8] sm:$0xff]  ;;  %v4579_v24 = vmov 0.0|0.0  }
  0x93   : > { %v628_v37 = vsel %vm624_vm3, %v3131_v10, %v2768_v34  ;;  %v627_v3 = vsel %vm624_vm3, %v3125_v5, %v2767_v35  ;;  %2631 = vmatprep.mubr.msk.bf16.mxu0 %vm701_vm5, %v642_v36  ;;  %v2786_v4 = vpop.permute.xlu1 %2785  ;;  %v3350_v34 = vld [vmem:[%s3189_s25 + $0x68] sm:$0xff]  ;;  %v3353_v35 = vld [vmem:[%s3189_s25 + $0x70] sm:$0xff]  ;;  %2717 = vmatprep.subr.bf16.mxu1 %v4579_v24 }
  0x94   : > { %v2781_v39 = vpop.permute.xlu0 %2780  ;;  %v636_v40 = vsel %vm633_vm4, %v627_v3, %v2777_v30  ;;  %v637_v43 = vsel %vm633_vm4, %v628_v37, %v2778_v29  ;;  %v2788_v44 = vunpack.i.h.bf16 %v2786_v4  ;;  %v2787_v45 = vunpack.i.l.bf16 %v2786_v4  ;;  %2860 = vrot.lane.b32.xlu0 %v2859_v25, %s3011_s17 }
  0x95   : > { %v643_v46 = vpack.c.bf16 %v637_v43, %v636_v40  ;;  %v2783_v47 = vunpack.i.h.bf16 %v2781_v39  ;;  %v2782_v48 = vunpack.i.l.bf16 %v2781_v39  ;;  %v1016_v36 = vrot.slane %v3350_v34, 1 }
  0x96   : > { %v632_v51 = vsel %vm624_vm3, %v3148_v22, %v2788_v44  ;;  %v631_v52 = vsel %vm624_vm3, %v3139_v16, %v2787_v45  ;;  %v3318_v16 = vld [vmem:[%s3189_s25 + $0x58] sm:$0xff]  ;;  %v1018_v37 = vrot.slane %v3353_v35, 1  ;;  %v1742_v3 = vrot.slane %v3229_v19, 3 }
  0x97   : > { %2632 = vmatmul.mubr.msk.bf16.vlgmr.msra.gmra.mrb[0].mxu0 %vm701_vm5, %v643_v46  ;;  %v2796_v49 = vpop.permute.xlu1 %2795  ;;  %v630_v59 = vsel %vm624_vm3, %v3150_v23, %v2783_v47  ;;  %v629_v62 = vsel %vm624_vm3, %v3133_v11, %v2782_v48  ;;  %v3321_v23 = vld [vmem:[%s3189_s25 + $0x60] sm:$0xff]  ;;  %v1012_v11 = vrot.slane %v3318_v16, 1  ;;  %v1045_v26 = vrot.slane %v3318_v16, 2  ;;  %v3364_v46 = vld [vmem:[%s3189_s25 + $0x78] sm:$0xff] }
  0x98   : > { %v2798_v10 = vunpack.i.h.bf16 %v2796_v49  ;;  %v2797_v50 = vunpack.i.l.bf16 %v2796_v49  ;;  %v2791_v5 = vpop.permute.xlu0 %2790  ;;  %v1014_v8 = vrot.slane %v3321_v23, 1  ;;  %v1047_v27 = vrot.slane %v3321_v23, 2 }
  0x99   : > { %v2793_v57 = vunpack.i.h.bf16 %v2791_v5  ;;  %v2792_v58 = vunpack.i.l.bf16 %v2791_v5  ;;  %v1013_v15 = vsel %vm538_vm1, %v1010_v53, %v1012_v11  ;;  %v1738_v53 = vrot.slane %v3220_v12, 3 }
  0x9a   : > { %v640_v63 = vsel %vm633_vm4, %v631_v52, %v2797_v50  ;;  %v641_v1 = vsel %vm633_vm4, %v632_v51, %v2798_v10  ;;  %v1015_v17 = vsel %vm538_vm1, %v1012_v11, %v1014_v8  ;;  %v1046_v38 = vsel %vm556_vm0, %v1043_v14, %v1045_v26 }
  0x9b   : > { %v645_v2 = vpack.c.bf16 %v641_v1, %v640_v63  ;;  %v638_v6 = vsel %vm633_vm4, %v629_v62, %v2792_v58  ;;  %v639_v22 = vsel %vm633_vm4, %v630_v59, %v2793_v57  ;;  %v2854_v21 = vpack.i.bf16 %v1015_v17, %v1013_v15  ;;  %v855_v17 = vld [vmem:[%s4567_s4] sm:$0xff] }
  0x9c   : > { %v644_v7 = vpack.c.bf16 %v639_v22, %v638_v6  ;;  %v1048_v29 = vsel %vm556_vm0, %v1045_v26, %v1047_v27  ;;  %v1739_v31 = vsel %vm1728_vm2, %v1736_v0, %v1738_v53  ;;  %v1741_v32 = vsel %vm1728_vm2, %v1738_v53, %v1740_v28 }
  0x9d   : > { %2855 = vrot.lane.b32.xlu1 %v2854_v21, %s3012_s18  ;;  %v2864_v30 = vpack.i.bf16 %v1048_v29, %v1046_v38  ;;  %v2869_v33 = vpack.i.bf16 %v1741_v32, %v1739_v31  ;;  %v1744_v0 = vrot.slane %v3232_v20, 3  ;;  %v1017_v4 = vsel %vm538_vm1, %v1014_v8, %v1016_v36 }
  0x9e   : > { %2635 = vmatprep.mubr.msk.bf16.mxu0 %vm701_vm5, %v644_v7  ;;  %v1019_v39 = vsel %vm538_vm1, %v1016_v36, %v1018_v37  ;;  %v1743_v40 = vsel %vm1728_vm2, %v1740_v28, %v1742_v3  ;;  %v1020_v47 = vrot.slane %v3364_v46, 1  ;;  %v1049_v50 = vrot.slane %v3350_v34, 2  ;;  %v2801_v36 = vpop.permute.xlu0 %2800 }
  0x9f   : > { %2636 = vmatmul.mubr.msk.bf16.gmra.mrb[4].mxu0 %vm701_vm5, %v645_v2  ;;  %2870 = vrot.lane.b32.xlu0 %v2869_v33, %s3013_s26  ;;  %v1745_v43 = vsel %vm1728_vm2, %v1742_v3, %v1744_v0  ;;  %v2874_v44 = vpack.i.bf16 %v1019_v39, %v1017_v4  ;;  %v1051_v5 = vrot.slane %v3353_v35, 2  ;;  %v1053_v51 = vrot.slane %v3364_v46, 2  ;;  %v3410_v33 = vld [vmem:[%s4571_s8] sm:$0xff]   ;;  %v2806_v3 = vpop.permute.xlu1 %2805 }
  0xa0   : > { %v2879_v45 = vpack.i.bf16 %v1745_v43, %v1743_v40  ;;  %v1021_v48 = vsel %vm538_vm1, %v1018_v37, %v1020_v47  ;;  %v1023_v49 = vsel %vm538_vm1, %v1020_v47, 0.0  ;;  %v1050_v52 = vsel %vm556_vm0, %v1047_v27, %v1049_v50  ;;  %v3415_v37 = vld [vmem:[%s4571_s8 + $0x8] sm:$0xff]   ;;  %2674 = vmatprep.subr.bf16.mxu0 %v3410_v33 }
  0xa1   : > { %2865 = vrot.lane.b32.xlu1 %v2864_v30, %s3011_s17  ;;  %v2884_v10 = vpack.i.bf16 %v1023_v49, %v1021_v48  ;;  %v1052_v57 = vsel %vm556_vm0, %v1049_v50, %v1051_v5  ;;  %v1054_v59 = vsel %vm556_vm0, %v1051_v5, %v1053_v51  ;;  %v1056_v62 = vsel %vm556_vm0, %v1053_v51, 0.0  ;;  %2675 = vmatpush3.bf16.msra.mxu0 %v3410_v33 }
  0xa2   : > { %v2889_v58 = vpack.i.bf16 %v1052_v57, %v1050_v52  ;;  %v2894_v63 = vpack.i.bf16 %v1056_v62, %v1054_v59  ;;  %v1746_v1 = vrot.slane %v3252_v41, 3  ;;  %v1748_v2 = vrot.slane %v3255_v42, 3  ;;  %2676 = vmatprep.subr.bf16.mxu0 %v3415_v37  ;;  %v2811_v49 = vpop.permute.xlu0 %2810 }
  0xa3   : > { %2880 = vrot.lane.b32.xlu0 %v2879_v45, %s3013_s26  ;;  %v1750_v6 = vrot.slane %v3318_v16, 3  ;;  %v1752_v22 = vrot.slane %v3321_v23, 3  ;;  %v2718_v21 = vpack.c.bf16 %v856_v18, %v855_v17  ;;  %v4578_v25 = vmov 0.0   ;;  %v3488_v17 = vld [vmem:[%s4571_s8 + $0x28] sm:$0xff]  }
  0xa4   : > { %v1747_v7 = vsel %vm1728_vm2, %v1744_v0, %v1746_v1  ;;  %v1749_v11 = vsel %vm1728_vm2, %v1746_v1, %v1748_v2  ;;  %2643 = vmatprep.mubr.msk.f32.mxu1 %vm3015_vm6, %v4578_v25  ;;  %v1754_v26 = vrot.slane %v3350_v34, 3  ;;  %v1756_v27 = vrot.slane %v3353_v35, 3  ;;  %v3420_v0 = vld [vmem:[%s4569_s6] sm:$0xff]  }
  0xa5   : > { %2875 = vrot.lane.b32.xlu1 %v2874_v44, %s3012_s18  ;;  %v2899_v8 = vpack.i.bf16 %v1749_v11, %v1747_v7  ;;  %v1751_v9 = vsel %vm1728_vm2, %v1748_v2, %v1750_v6  ;;  %v1753_v14 = vsel %vm1728_vm2, %v1750_v6, %v1752_v22  ;;  %2719 = vmatpush3.bf16.msra.mxu1 %v2718_v21  ;;  %v1758_v53 = vrot.slane %v3364_v46, 3  ;;  %v3473_v11 = vld [vmem:[%s4571_s8 + $0x20] sm:$0xff]  }
  0xa6   : > { %v2904_v15 = vpack.i.bf16 %v1753_v14, %v1751_v9  ;;  %v1755_v28 = vsel %vm1728_vm2, %v1752_v22, %v1754_v26  ;;  %v1757_v38 = vsel %vm1728_vm2, %v1754_v26, %v1756_v27  ;;  %v2803_v4 = vunpack.i.h.bf16 %v2801_v36  ;;  %2646 = vmatprep.subr.bf16.mxu1 %v3420_v0  ;;  %2677 = vmatpush3.bf16.msra.mxu0 %v3415_v37  ;;  %v2821_v62 = vpop.permute.xlu0 %2820  ;;  %v3495_v26 = vld [vmem:[%s4571_s8 + $0x30] sm:$0xff]  }
  0xa7   : > { %2890 = vrot.lane.b32.xlu0 %v2889_v58, %s3011_s17  ;;  %v2909_v29 = vpack.i.bf16 %v1757_v38, %v1755_v28  ;;  %v1759_v30 = vsel %vm1728_vm2, %v1756_v27, %v1758_v53  ;;  %v1761_v31 = vsel %vm1728_vm2, %v1758_v53, 0.0  ;;  %v2802_v39 = vunpack.i.l.bf16 %v2801_v36  ;;  %v3502_v38 = vld [vmem:[%s4571_s8 + $0x38] sm:$0xff]  }
  0xa8   : > { %v2914_v32 = vpack.i.bf16 %v1761_v31, %v1759_v30  ;;  %v2808_v40 = vunpack.i.h.bf16 %v2806_v3  ;;  %v2807_v43 = vunpack.i.l.bf16 %v2806_v3  ;;  %v1156_v44 = vsel %vm624_vm3, %v3196_v55, %v2803_v4  ;;  %v2816_v55 = vpop.permute.xlu1 %2815 }
  0xa9   : > { %2885 = vrot.lane.b32.xlu1 %v2884_v10, %s3012_s18  ;;  %v1155_v45 = vsel %vm624_vm3, %v3193_v54, %v2802_v39  ;;  %v3439_v10 = vld [vmem:[%s4571_s8 + $0x10] sm:$0xff]   ;;  %v2813_v50 = vunpack.i.h.bf16 %v2811_v49  ;;  %v2812_v5 = vunpack.i.l.bf16 %v2811_v49  ;;  %v2818_v54 = vunpack.i.h.bf16 %v2816_v55 }
  0xaa   : > { %v1158_v47 = vsel %vm624_vm3, %v3205_v60, %v2808_v40  ;;  %v1157_v48 = vsel %vm624_vm3, %v3199_v56, %v2807_v43  ;;  %v2817_v51 = vunpack.i.l.bf16 %v2816_v55  ;;  %2678 = vmatprep.subr.bf16.mxu0 %v3439_v10  ;;  %v2823_v1 = vunpack.i.h.bf16 %v2821_v62  ;;  %v2831_v7 = vpop.permute.xlu0 %2830 }
  0xab   : > { %2900 = vrot.lane.b32.xlu0 %v2899_v8, %s3013_s26  ;;  %v3443_v60 = vsel %vm633_vm4, %v1155_v45, %v2812_v5  ;;  %v3446_v56 = vsel %vm633_vm4, %v1156_v44, %v2813_v50  ;;  %v3452_v57 = vsel %vm633_vm4, %v1158_v47, %v2818_v54  ;;  %v2822_v2 = vunpack.i.l.bf16 %v2821_v62  ;;  %2679 = vmatpush3.bf16.msra.mxu0 %v3439_v10  ;;  %v2528_v5 = vld [vmem:[%s4566_s3] ss:$0 sm:$0xff] }
  0xac   : > { %v3449_v52 = vsel %vm633_vm4, %v1157_v48, %v2817_v51  ;;  %v1187_v58 = vpack.c.bf16 %v3446_v56, %v3443_v60  ;;  %v1160_v6 = vsel %vm624_vm3, %v3220_v12, %v2823_v1  ;;  %v2833_v8 = vunpack.i.h.bf16 %v2831_v7  ;;  %v2826_v4 = vpop.permute.xlu1 %2825 }
  0xad   : > { %2895 = vrot.lane.b32.xlu1 %v2894_v63, %s3011_s17  ;;  %v3462_v63 = vld [vmem:[%s4571_s8 + $0x18] sm:$0xff]   ;;  %v1159_v22 = vsel %vm624_vm3, %v3208_v61, %v2822_v2  ;;  %v2832_v9 = vunpack.i.l.bf16 %v2831_v7  ;;  %v787_v44 = vlaneseq  ;;  %v2828_v51 = vunpack.i.h.bf16 %v2826_v4 }
  0xae   : > { %2680 = vmatprep.subr.bf16.mxu0 %v3462_v63  ;;  %v3480_v12 = vsel %vm633_vm4, %v1160_v6, %v2833_v8  ;;  %v2827_v62 = vunpack.i.l.bf16 %v2826_v4  ;;  %vm2238_vm1 = vcmask 258048  }
  0xaf   : > { %2910 = vrot.lane.b32.xlu0 %v2909_v29, %s3013_s26  ;;  %2681 = vmatpush3.bf16.msra.mxu0 %v3462_v63  ;;  %v3477_v14 = vsel %vm633_vm4, %v1159_v22, %v2832_v9  ;;  %v3528_v54 = vshrl.u32 %v787_v44, 7 }
  0xb0   : > { %2682 = vmatprep.subr.bf16.mxu0 %v3473_v11  ;;  %v2836_v39 = vpop.permute.xlu1 %2835 }
  0xb1   : > { %2905 = vrot.lane.b32.xlu1 %v2904_v15, %s3013_s26  ;;  %v2841_v15 = vpop.permute.xlu0 %2840  ;;  %v2838_v7 = vunpack.i.h.bf16 %v2836_v39  ;;  %v2837_v8 = vunpack.i.l.bf16 %v2836_v39  ;;  %vm789_vm7 = vcmp.lt.s32.totalorder %v3528_v54, 4 }
  0xb2   : > { %v2843_v18 = vunpack.i.h.bf16 %v2841_v15  ;;  %v2842_v21 = vunpack.i.l.bf16 %v2841_v15 }
  0xb3   : > { %2683 = vmatpush3.bf16.msra.mxu0 %v3473_v11 }
  0xb4   : > { %2684 = vmatprep.subr.bf16.mxu0 %v3488_v17  ;;  %v1811_v29 = vsel %vm701_vm5, %v3443_v60, %v2842_v21  ;;  %v1812_v30 = vsel %vm701_vm5, %v3446_v56, %v2843_v18  ;;  %v3515_v40 = vpop.permute.xlu1 %2845  ;;  %v1162_v18 = vsel %vm624_vm3, %v3229_v19, %v2828_v51  ;;  %v1161_v21 = vsel %vm624_vm3, %v3223_v13, %v2827_v62  ;;  %v2937_v60 = vld [vmem:[%s4569_s6 + $0x28] sm:$0xff]  }
  0xb5   : > { %2915 = vrot.lane.b32.xlu1 %v2914_v32, %s3013_s26  ;;  %v2851_v27 = vpop.permute.xlu0 %2850  ;;  %v1827_v31 = vpack.c.bf16 %v1812_v30, %v1811_v29  ;;  %v3543_v19 = vsel %vm633_vm4, %v1162_v18, %v2838_v7  ;;  %v4621_v56 = vpack.c.bf16 %v3452_v57, %v3449_v52  ;;  %s2569_s26 = sshll.u32 %s4674_s15, 4  ;;  %s2521_s15 = sshll.u32 %s4678_s30, 3 }
  0xb6   : > { %v2853_v53 = vunpack.i.h.bf16 %v2851_v27  ;;  %v2852_v28 = vunpack.i.l.bf16 %v2851_v27  ;;  %s4223_s16 = scalar_lea.vmem %s4577_s14, %s2569_s26  ;;  %s4399_s19 = scalar_lea.vmem %s4576_s13, %s2569_s26 }
  0xb7   : > { %2685 = vmatpush3.bf16.msra.mxu0 %v3488_v17  ;;  %2690 = vmatprep.mubr.bf16.mxu0 %v1827_v31  ;;  %s506_s23 = scalar_lea.vmem %s4575_s12, %s2521_s15 }
  0xb8   : > { %2686 = vmatprep.subr.bf16.mxu0 %v3495_v26  ;;  %v1814_v32 = vsel %vm701_vm5, %v3452_v57, %v2853_v53  ;;  %v1813_v36 = vsel %vm701_vm5, %v3449_v52, %v2852_v28 }
  0xb9   : > { %v1828_v3 = vpack.c.bf16 %v1814_v32, %v1813_v36 }
  0xbb   : > { %2687 = vmatpush3.bf16.msra.mxu0 %v3495_v26 }
  0xbc   : > { %2688 = vmatprep.subr.bf16.mxu0 %v3502_v38 }
  0xbf   : > { %2689 = vmatpush3.bf16.msra.mxu0 %v3502_v38 }
  0xc2   : > { %2691 = vmatmul.mubr.bf16.vlgmr.msra.gmra.mrb[8].mxu0 %v1828_v3  ;;  %v3540_v3 = vsel %vm633_vm4, %v1161_v21, %v2837_v8 }
 0x106   : > { %v3517_v43 = vpop.permute.xlu0 %2860 }
 0x10f   : > { %v3519_v49 = vpop.permute.xlu1 %2855 }
 0x111   : > { %v2871_v45 = vpop.permute.xlu0 %2870 }
 0x112   : > { %v2873_v47 = vunpack.i.h.bf16 %v2871_v45  ;;  %v2872_v48 = vunpack.i.l.bf16 %v2871_v45  ;;  %v2848_v45 = vunpack.i.h.bf16 %v3515_v40 }
 0x113   : > { %v3535_v27 = vpop.permute.xlu1 %2865 }
 0x114   : > { %v1815_v55 = vsel %vm701_vm5, %v3477_v14, %v2872_v48  ;;  %v1816_v50 = vsel %vm701_vm5, %v3480_v12, %v2873_v47 }
 0x115   : > { %v1829_v1 = vpack.c.bf16 %v1816_v50, %v1815_v55  ;;  %v3545_v4 = vpop.permute.xlu0 %2880  ;;  %v2847_v50 = vunpack.i.l.bf16 %v3515_v40 }
 0x117   : > { %2694 = vmatprep.mubr.bf16.mxu0 %v1829_v1 }
 0x16a   : > { %v2633_v2 = vpop.f32.mrb[0].mxu0 }
 0x16b   : > { %v757_v6 = vadd.f32 %v2633_v2, %v2528_v5  ;;  %v748_v22 = vpop.f32.mrb[1].mxu0 }
 0x16c   : > { %v749_v9 = vadd.f32 %v2528_v5, %v748_v22  ;;  %v2634_v15 = vpop.f32.mrb[2].mxu0  ;;  %v2883_v22 = vunpack.i.h.bf16 %v3545_v4 }
 0x16d   : > { %v781_v53 = vmax.f32 %v757_v6, 0.0  ;;  %v760_v28 = vadd.f32 %v2634_v15, %v2528_v5  ;;  %v751_v29 = vpop.f32.mrb[3].mxu0  ;;  %v3558_v6 = vpop.permute.xlu1 %2875 }
 0x16e   : > { %v779_v30 = vmax.f32 %v749_v9, 0.0  ;;  %v752_v31 = vadd.f32 %v2528_v5, %v751_v29  ;;  %v1818_v61 = vsel %vm701_vm5, %v3543_v19, %v2883_v22  ;;  %v2863_v22 = vunpack.i.h.bf16 %v3517_v43 }
 0x16f   : > { %v792_v32 = vsel %vm789_vm7, %v781_v53, -inf  ;;  %v782_v36 = vmax.f32 %v760_v28, 0.0 }
 0x170   : > { %v813_v13 = vsel %vm798_vm8, %v792_v32, -inf  ;;  %v790_v39 = vsel %vm789_vm7, %v779_v30, -inf  ;;  %v780_v44 = vmax.f32 %v752_v31, 0.0  ;;  %v2882_v30 = vunpack.i.l.bf16 %v3545_v4 }
 0x171   : > { %v814_v47 = vrot.slane %v813_v13, 4  ;;  %v799_v48 = vsel %vm798_vm8, %v790_v39, -inf  ;;  %v793_v55 = vsel %vm789_vm7, %v782_v36, -inf }
 0x172   : > { %v800_v51 = vrot.slane %v799_v48, 4  ;;  %v820_v62 = vsel %vm798_vm8, %v793_v55, -inf  ;;  %v791_v1 = vsel %vm789_vm7, %v780_v44, -inf  ;;  %v2637_v2 = vpop.f32.mrb[4].mxu0 }
 0x173   : > { %v815_v7 = vmax.f32 %v813_v13, %v814_v47  ;;  %v821_v8 = vrot.slane %v820_v62, 4  ;;  %v806_v9 = vsel %vm798_vm8, %v791_v1, -inf  ;;  %v773_v15 = vadd.f32 %v2637_v2, %v2528_v5  ;;  %v764_v18 = vpop.f32.mrb[5].mxu0 }
 0x174   : > { %v801_v21 = vmax.f32 %v799_v48, %v800_v51  ;;  %v807_v53 = vrot.slane %v806_v9, 4  ;;  %v765_v28 = vadd.f32 %v2528_v5, %v764_v18  ;;  %v2638_v29 = vpop.f32.mrb[6].mxu0 }
 0x175   : > { %v816_v31 = vrot.slane %v815_v7, 2  ;;  %v822_v32 = vmax.f32 %v820_v62, %v821_v8  ;;  %v785_v36 = vmax.f32 %v773_v15, 0.0  ;;  %v776_v39 = vadd.f32 %v2638_v29, %v2528_v5  ;;  %v767_v44 = vpop.f32.mrb[7].mxu0  ;;  %v3568_v15 = vpop.permute.xlu1 %2885 }
 0x176   : > { %v802_v55 = vrot.slane %v801_v21, 2  ;;  %v808_v25 = vmax.f32 %v806_v9, %v807_v53  ;;  %v783_v13 = vmax.f32 %v765_v28, 0.0  ;;  %v768_v47 = vadd.f32 %v2528_v5, %v767_v44 }
 0x177   : > { %v817_v1 = vmax.f32 %v815_v7, %v816_v31  ;;  %v823_v2 = vrot.slane %v822_v32, 2  ;;  %v796_v48 = vsel %vm789_vm7, %v785_v36, -inf  ;;  %v786_v51 = vmax.f32 %v776_v39, 0.0 }
 0x178   : > { %v803_v18 = vmax.f32 %v801_v21, %v802_v55  ;;  %v809_v4 = vrot.slane %v808_v25, 2  ;;  %v841_v62 = vsel %vm798_vm8, %v796_v48, -inf  ;;  %v794_v8 = vsel %vm789_vm7, %v783_v13, -inf  ;;  %v3576_v13 = vpop.permute.xlu0 %2890 }
 0x179   : > { %v818_v9 = vrot.slane %v817_v1, 1  ;;  %v824_v53 = vmax.f32 %v822_v32, %v823_v2  ;;  %v842_v5 = vrot.slane %v841_v62, 4  ;;  %v827_v7 = vsel %vm798_vm8, %v794_v8, -inf }
 0x17a   : > { %v804_v28 = vrot.slane %v803_v18, 1  ;;  %v810_v29 = vmax.f32 %v808_v25, %v809_v4  ;;  %v828_v31 = vrot.slane %v827_v7, 4  ;;  %v797_v36 = vsel %vm789_vm7, %v786_v51, -inf }
 0x17b   : > { %v825_v21 = vrot.slane %v824_v53, 1  ;;  %v843_v39 = vmax.f32 %v841_v62, %v842_v5  ;;  %v848_v44 = vsel %vm798_vm8, %v797_v36, -inf  ;;  %v1164_v55 = vsel %vm624_vm3, %v3252_v41, %v2848_v45  ;;  %v3583_v41 = vpop.permute.xlu1 %2895 }
 0x17c   : > { %v811_v32 = vrot.slane %v810_v29, 1  ;;  %v829_v2 = vmax.f32 %v827_v7, %v828_v31  ;;  %v849_v48 = vrot.slane %v848_v44, 4  ;;  %v1817_v25 = vsel %vm701_vm5, %v3540_v3, %v2882_v30 }
 0x17d   : > { %v819_v4 = vmax.f32 %v817_v1, %v818_v9  ;;  %v805_v8 = vmax.f32 %v803_v18, %v804_v28  ;;  %v784_v24 = vmax.f32 %v768_v47, 0.0  ;;  %v2857_v51 = vunpack.i.l.bf16 %v3519_v49 }
 0x17e   : > { %v812_v62 = vmax.f32 %v810_v29, %v811_v32  ;;  %v830_v5 = vrot.slane %v829_v2, 2  ;;  %v850_v36 = vmax.f32 %v848_v44, %v849_v48  ;;  %v826_v45 = vmax.f32 %v824_v53, %v825_v21  ;;  %v2901_v53 = vpop.permute.xlu0 %2900 }
 0x17f   : > { %v844_v59 = vrot.slane %v843_v39, 2  ;;  %v795_v7 = vsel %vm789_vm7, %v784_v24, -inf  ;;  %v1830_v31 = vpack.c.bf16 %v1818_v61, %v1817_v25  ;;  %v2858_v29 = vunpack.i.h.bf16 %v3519_v49 }
 0x180   : > { %v873_v30 = vsel %vm872_vm9, %v812_v62, %v805_v8  ;;  %v831_v1 = vmax.f32 %v829_v2, %v830_v5  ;;  %v851_v47 = vrot.slane %v850_v36, 2  ;;  %v834_v18 = vsel %vm798_vm8, %v795_v7, -inf  ;;  %v2906_v5 = vpop.permute.xlu1 %2905 }
 0x181   : > { %v835_v9 = vrot.slane %v834_v18, 4  ;;  %v875_v28 = vsel %vm874_vm10, %v819_v4, %v873_v30  ;;  %2695 = vmatmul.mubr.bf16.gmra.mrb[12].mxu0 %v1830_v31  ;;  %v2862_v24 = vunpack.i.l.bf16 %v3517_v43  ;;  %v2867_v61 = vunpack.i.l.bf16 %v3535_v27 }
 0x182   : > { %v832_v21 = vrot.slane %v831_v1, 1  ;;  %v877_v44 = vsel %vm876_vm11, %v826_v45, %v875_v28  ;;  %v1163_v2 = vsel %vm624_vm3, %v3232_v20, %v2847_v50  ;;  %v1165_v49 = vsel %vm624_vm3, %v3255_v42, %v2857_v51 }
 0x183   : > { %v836_v32 = vmax.f32 %v834_v18, %v835_v9  ;;  %v2868_v48 = vunpack.i.h.bf16 %v3535_v27  ;;  %v845_v25 = vmax.f32 %v843_v39, %v844_v59  ;;  %v852_v8 = vmax.f32 %v850_v36, %v851_v47 }
 0x184   : > { %v833_v4 = vmax.f32 %v831_v1, %v832_v21  ;;  %v2903_v62 = vunpack.i.h.bf16 %v2901_v53  ;;  %v1166_v43 = vsel %vm624_vm3, %v3318_v16, %v2858_v29  ;;  %v3605_v7 = vsel %vm633_vm4, %v1164_v55, %v2863_v22 }
 0x185   : > { %v837_v45 = vrot.slane %v836_v32, 2  ;;  %v3609_v20 = vsel %vm633_vm4, %v1163_v2, %v2862_v24  ;;  %v3612_v42 = vsel %vm633_vm4, %v1165_v49, %v2867_v61  ;;  %v2902_v59 = vunpack.i.l.bf16 %v2901_v53  ;;  %v2931_v61 = vld [vmem:[%s4569_s6 + $0x10] sm:$0xff]  }
 0x186   : > { %v879_v40 = vsel %vm878_vm12, %v833_v4, %v877_v44  ;;  %v2908_v50 = vunpack.i.h.bf16 %v2906_v5  ;;  %v2907_v39 = vunpack.i.l.bf16 %v2906_v5  ;;  %v1820_v51 = vsel %vm701_vm5, %v3605_v7, %v2903_v62  ;;  %v2929_v44 = vld [vmem:[%s4569_s6 + $0x8] sm:$0xff]  }
 0x187   : > { %v838_v27 = vmax.f32 %v836_v32, %v837_v45  ;;  %v846_v36 = vrot.slane %v845_v25, 1  ;;  %v853_v16 = vrot.slane %v852_v8, 1  ;;  %v3617_v55 = vsel %vm633_vm4, %v1166_v43, %v2868_v48  ;;  %v2933_v32 = vld [vmem:[%s4569_s6 + $0x18] sm:$0xff]  }
 0x188   : > { %v1819_v31 = vsel %vm701_vm5, %v3609_v20, %v2902_v59  ;;  %v1821_v47 = vsel %vm701_vm5, %v3612_v42, %v2907_v39  ;;  %v1822_v18 = vsel %vm701_vm5, %v3617_v55, %v2908_v50  ;;  %v2878_v2 = vunpack.i.h.bf16 %v3558_v6 }
 0x189   : > { %v839_v30 = vrot.slane %v838_v27, 1  ;;  %v1831_v1 = vpack.c.bf16 %v1820_v51, %v1819_v31  ;;  %v1832_v9 = vpack.c.bf16 %v1822_v18, %v1821_v47  ;;  %v847_v29 = vmax.f32 %v845_v25, %v846_v36  ;;  %v2539_v18 = vld [vmem:[%s4568_s5] ss:$0 sm:$0xff] }
 0x18a   : > { %v854_v22 = vmax.f32 %v852_v8, %v853_v16  ;;  %v2877_v49 = vunpack.i.l.bf16 %v3558_v6  ;;  %v1190_v48 = vpack.c.bf16 %v3543_v19, %v3540_v3  ;;  %v1191_v52 = vpack.c.bf16 %v3605_v7, %v3609_v20 }
 0x18b   : > { %v840_v28 = vmax.f32 %v838_v27, %v839_v30  ;;  %2698 = vmatprep.mubr.bf16.mxu0 %v1831_v1  ;;  %v2892_v57 = vunpack.i.l.bf16 %v3576_v13  ;;  %v2887_v3 = vunpack.i.l.bf16 %v3568_v15  ;;  %v2898_v25 = vunpack.i.h.bf16 %v3583_v41 }
 0x18c   : > { %2699 = vmatmul.mubr.bf16.gmra.mrb[16].mxu0 %v1832_v9  ;;  %v4624_v59 = vmov 0.0  }
 0x18d   : > { %v881_v53 = vsel %vm880_vm13, %v840_v28, %v879_v40  ;;  %v1169_v4 = vsel %vm624_vm3, %v3353_v35, %v2887_v3 }
 0x18e   : > { %v883_v21 = vsel %vm882_vm14, %v847_v29, %v881_v53 }
 0x18f   : > { %v885_v24 = vsel %vm884_vm15, %v854_v22, %v883_v21 }
 0x190   : > { %2644 = vmatmul.mubr.msk.f32.vlgmr.msra.gmra.mrb[0].mxu1 %vm798_vm8, %v885_v24 }
 0x191   : > { %2647 = vmatpush3.bf16.msra.mxu1 %v3420_v0  ;;  %2658 = vmatprep.mubr.msk.bf16.mxu1 %vm701_vm5, %v1187_v58  ;;  %v2935_v0 = vld [vmem:[%s4569_s6 + $0x20] sm:$0xff]   ;;  %v4622_v58 = vpack.c.bf16 %v3480_v12, %v3477_v14  ;;  %v1168_v14 = vsel %vm624_vm3, %v3350_v34, %v2878_v2  ;;  %v1167_v12 = vsel %vm624_vm3, %v3321_v23, %v2877_v49  ;;  %v2911_v34 = vpop.permute.xlu0 %2910 }
 0x192   : > { %2648 = vmatprep.subr.bf16.mxu1 %v2929_v44  ;;  %v1183_v6 = vsel %vm633_vm4, %v1167_v12, %v2892_v57  ;;  %v1192_v23 = vpack.c.bf16 %v3617_v55, %v3612_v42  ;;  %v2913_v8 = vunpack.i.h.bf16 %v2911_v34  ;;  %v2912_v62 = vunpack.i.l.bf16 %v2911_v34 }
 0x193   : > { %v3017_v55 = vmov 1966171168  }
 0x194   : > { %v1390_v31 = vunpack.c.l.s4 %v3017_v55  ;;  %v3785_v55 = vld [vmem:[%s4572_s9] ss:$0 sm:$0xff] }
 0x195   : > { %2649 = vmatpush3.bf16.msra.mxu1 %v2929_v44  ;;  %v3711_v27 = vpop.f32.mrb[8].mxu0  ;;  %v1439_v44 = vsub.s32 0, %v3528_v54 }
 0x196   : > { %2650 = vmatprep.subr.bf16.mxu1 %v2931_v61  ;;  %v3713_v50 = vpop.f32.mrb[9].mxu0  ;;  %v1391_v30 = vunpack.c.0.s8 %v1390_v31 }
 0x198   : > { %v1394_v28 = vsub.s32 %v1391_v30, %v3528_v54 }
 0x199   : > { %2651 = vmatpush3.bf16.msra.mxu1 %v2931_v61 }
 0x19a   : > { %2652 = vmatprep.subr.bf16.mxu1 %v2933_v32 }
 0x19d   : > { %2653 = vmatpush3.bf16.msra.mxu1 %v2933_v32 }
 0x19e   : > { %2654 = vmatprep.subr.bf16.mxu1 %v2935_v0 }
 0x1a1   : > { %2655 = vmatpush3.bf16.msra.mxu1 %v2935_v0 }
 0x1a2   : > { %2656 = vmatprep.subr.bf16.mxu1 %v2937_v60 }
 0x1a5   : > { %2657 = vmatpush3.bf16.msra.mxu1 %v2937_v60 }
 0x1a6   : > { %2726 = vmatprep.subr.bf16.mxu1 %v3410_v33 }
 0x1a8   : > { %2659 = vmatmul.mubr.msk.bf16.vlgmr.msra.gmra.mrb[4].mxu1 %vm701_vm5, %v4621_v56 }
 0x1a9   : > { %2734 = vmatpush3.bf16.msra.mxu1 %v3410_v33  ;;  %2662 = vmatprep.mubr.msk.bf16.mxu1 %vm701_vm5, %v4622_v58  ;;  %v2893_v33 = vunpack.i.h.bf16 %v3576_v13 }
 0x1aa   : > { %2727 = vmatprep.subr.bf16.mxu1 %v3415_v37 }
 0x1ab   : > { %v1184_v19 = vsel %vm633_vm4, %v1168_v14, %v2893_v33 }
 0x1ac   : > { %v1193_v13 = vpack.c.bf16 %v1184_v19, %v1183_v6  ;;  %v1824_v35 = vsel %vm701_vm5, %v1184_v19, %v2913_v8 }
 0x1ad   : > { %2735 = vmatpush3.bf16.msra.mxu1 %v3415_v37  ;;  %v2888_v37 = vunpack.i.h.bf16 %v3568_v15 }
 0x1ae   : > { %2728 = vmatprep.subr.bf16.mxu1 %v3439_v10 }
 0x1af   : > { %v1170_v15 = vsel %vm624_vm3, %v3364_v46, %v2888_v37  ;;  %v2916_v46 = vpop.permute.xlu1 %2915 }
 0x1b0   : > { %2663 = vmatmul.mubr.msk.bf16.gmra.mrb[8].mxu1 %vm701_vm5, %v1190_v48  ;;  %v1186_v45 = vsel %vm633_vm4, %v1170_v15, %v2898_v25  ;;  %v2918_v43 = vunpack.i.h.bf16 %v2916_v46  ;;  %v2917_v7 = vunpack.i.l.bf16 %v2916_v46 }
 0x1b1   : > { %2736 = vmatpush3.bf16.msra.mxu1 %v3439_v10  ;;  %2666 = vmatprep.mubr.msk.bf16.mxu1 %vm701_vm5, %v1191_v52  ;;  %v2897_v10 = vunpack.i.l.bf16 %v3583_v41 }
 0x1b2   : > { %2729 = vmatprep.subr.bf16.mxu1 %v3462_v63  ;;  %v1826_v20 = vsel %vm701_vm5, %v1186_v45, %v2918_v43 }
 0x1b3   : > { %v1185_v5 = vsel %vm633_vm4, %v1169_v4, %v2897_v10  ;;  %vm1712_vm4 = vcmask 259072  }
 0x1b4   : > { %v1194_v41 = vpack.c.bf16 %v1186_v45, %v1185_v5 }
 0x1b5   : > { %2737 = vmatpush3.bf16.msra.mxu1 %v3462_v63  ;;  %v1823_v63 = vsel %vm701_vm5, %v1183_v6, %v2912_v62 }
 0x1b6   : > { %2730 = vmatprep.subr.bf16.mxu1 %v3473_v11  ;;  %v1833_v40 = vpack.c.bf16 %v1824_v35, %v1823_v63 }
 0x1b8   : > { %2667 = vmatmul.mubr.msk.bf16.gmra.mrb[12].mxu1 %vm701_vm5, %v1192_v23 }
 0x1b9   : > { %2738 = vmatpush3.bf16.msra.mxu1 %v3473_v11  ;;  %2670 = vmatprep.mubr.msk.bf16.mxu1 %vm701_vm5, %v1193_v13  ;;  %v1825_v11 = vsel %vm701_vm5, %v1185_v5, %v2917_v7 }
 0x1ba   : > { %2731 = vmatprep.subr.bf16.mxu1 %v3488_v17  ;;  %v1834_v42 = vpack.c.bf16 %v1826_v20, %v1825_v11 }
 0x1bd   : > { %2739 = vmatpush3.bf16.msra.mxu1 %v3488_v17  ;;  %v4623_v17 = vmov 0.0|0.0  }
 0x1be   : > { %2732 = vmatprep.subr.bf16.mxu1 %v3495_v26 }
 0x1c0   : > { %2671 = vmatmul.mubr.msk.bf16.gmra.mrb[16].mxu1 %vm701_vm5, %v1194_v41  ;;  %vm2373_vm5 = vcmask 23552  }
 0x1c1   : > { %2740 = vmatpush3.bf16.msra.mxu1 %v3495_v26  ;;  %2702 = vmatprep.mubr.bf16.mxu1 %v1833_v40  ;;  %v3715_v26 = vpop.f32.mrb[10].mxu0 }
 0x1c2   : > { %2733 = vmatprep.subr.bf16.mxu1 %v3502_v38  ;;  %v3717_v39 = vpop.f32.mrb[11].mxu0 }
 0x1c3   : > { %v3789_v31 = vadd.f32 %v3785_v55, %v3717_v39  ;;  %v3809_v39 = vadd.f32 %v3711_v27, %v3785_v55 }
 0x1c5   : > { %2741 = vmatpush3.bf16.msra.mxu1 %v3502_v38  ;;  %2939 = vtanh.f32 %v3809_v39 }
 0x1c6   : > { %2720 = vmatprep.subr.bf16.mxu1 %v4623_v17  ;;  %2941 = vtanh.f32 %v3789_v31 }
 0x1c8   : > { %2703 = vmatmul.mubr.bf16.vlgmr.msra.gmra.mrb[20].mxu1 %v1834_v42 }
 0x1c9   : > { %2714 = vmatprep.mubr.msk.f32.mxu1 %vm3015_vm6, %v4624_v59 }
 0x254   : > { %v3719_v51 = vpop.f32.mrb[12].mxu0 }
 0x255   : > { %v3721_v36 = vpop.f32.mrb[13].mxu0 }
 0x256   : > { %v3723_v16 = vpop.f32.mrb[14].mxu0 }
 0x257   : > { %v3725_v38 = vpop.f32.mrb[15].mxu0 }
 0x25f   : > { %v3727_v1 = vpop.f32.mrb[16].mxu0 }
 0x260   : > { %v3729_v47 = vpop.f32.mrb[17].mxu0 }
 0x261   : > { %v3734_v9 = vpop.f32.mrb[18].mxu0 }
 0x262   : > { %v3737_v29 = vpop.f32.mrb[19].mxu0 }
 0x263   : > { %v954_v22 = vpop.f32.mrb[0].mxu1 }
 0x264   : > { %v955_v53 = vadd.f32 %v2539_v18, %v954_v22  ;;  %v2645_v21 = vpop.f32.mrb[1].mxu1  ;;  %v3795_v18 = vadd.f32 %v3785_v55, %v3713_v50 }
 0x266   : > { %v1388_v24 = vcombine.high %v955_v53, %v955_v53  ;;  %v1395_v61 = vrot.slane %v955_v53, %v1394_v28  ;;  %2943 = vtanh.f32 %v3795_v18 }
 0x268   : > { %v1402_v32 = vrot.slane %v1388_v24, %v1394_v28  ;;  %v1403_v0 = vcombine.high %v1395_v61, %v1395_v61  ;;  %v1411_v60 = vrot.slane %v1395_v61, %v1394_v28  ;;  %v3824_v24 = vadd.f32 %v3785_v55, %v3725_v38 }
 0x26a   : > { %v1440_v56 = vrot.slane %v1411_v60, %v1439_v44  ;;  %v1425_v58 = vrot.slane %v1403_v0, %v1394_v28  ;;  %v1433_v2 = vcombine.high %v1411_v60, %v1411_v60  ;;  %v1404_v49 = vcombine.high %v1402_v32, %v1402_v32 }
 0x26b   : > { %v1418_v57 = vrot.slane %v1402_v32, %v1394_v28  ;;  %v3836_v32 = vadd.f32 %v3785_v55, %v3721_v36 }
 0x26c   : > { %1469 = vrot.lane.b32.xlu0 %v1440_v56, %s3018_s24  ;;  %v1444_v48 = vrot.slane %v1425_v58, %v1439_v44  ;;  %v1435_v52 = vcombine.high %v1425_v58, %v1425_v58  ;;  %v1448_v33 = vrot.slane %v1433_v2, %v1439_v44  ;;  %v1432_v12 = vrot.slane %v1404_v49, %v1394_v28 }
 0x26d   : > { %v1456_v37 = vrot.slane %v1418_v57, %v1439_v44  ;;  %v1434_v3 = vcombine.high %v1418_v57, %v1418_v57  ;;  %v3799_v28 = vadd.f32 %v3715_v26, %v3785_v55  ;;  %v3850_v56 = vadd.f32 %v3785_v55, %v3737_v29 }
 0x26e   : > { %1471 = vrot.lane.b32.xlu1 %v1444_v48, %s3018_s24  ;;  %v1452_v14 = vrot.slane %v1435_v52, %v1439_v44  ;;  %v1460_v19 = vrot.slane %v1432_v12, %v1439_v44  ;;  %v1436_v6 = vcombine.high %v1432_v12, %v1432_v12  ;;  %v3864_v49 = vadd.f32 %v3785_v55, %v3729_v47 }
 0x26f   : > { %v1464_v34 = vrot.slane %v1434_v3, %v1439_v44  ;;  %v3876_v52 = vadd.f32 %v3723_v16, %v3785_v55  ;;  %v3888_v57 = vadd.f32 %v3719_v51, %v3785_v55  ;;  %2945 = vtanh.f32 %v3799_v28 }
 0x270   : > { %1473 = vrot.lane.b32.xlu0 %v1448_v33, %s3018_s24  ;;  %v1468_v23 = vrot.slane %v1436_v6, %v1439_v44 }
 0x271   : > { %2947 = vtanh.f32 %v3888_v57 }
 0x272   : > { %1475 = vrot.lane.b32.xlu1 %v1452_v14, %s3018_s24  ;;  %2949 = vtanh.f32 %v3836_v32 }
 0x273   : > { %2951 = vtanh.f32 %v3876_v52 }
 0x274   : > { %1477 = vrot.lane.b32.xlu0 %v1456_v37, %s3018_s24  ;;  %v3902_v37 = vadd.f32 %v3734_v9, %v3785_v55  ;;  %2953 = vtanh.f32 %v3824_v24 }
 0x276   : > { %1479 = vrot.lane.b32.xlu1 %v1460_v19, %s3018_s24  ;;  %v3914_v19 = vadd.f32 %v3727_v1, %v3785_v55 }
 0x278   : > { %1481 = vrot.lane.b32.xlu0 %v1464_v34, %s3018_s24  ;;  %2955 = vtanh.f32 %v3914_v19 }
 0x279   : > { %2957 = vtanh.f32 %v3864_v49 }
 0x27a   : > { %1483 = vrot.lane.b32.xlu1 %v1468_v23, %s3018_s24  ;;  %2959 = vtanh.f32 %v3902_v37 }
 0x27b   : > { %v3748_v13 = vpop.f32.mrb[4].mxu1  ;;  %2961 = vtanh.f32 %v3850_v56 }
 0x27c   : > { %v3750_v25 = vpop.f32.mrb[5].mxu1 }
 0x27d   : > { %v3752_v10 = vpop.f32.mrb[6].mxu1 }
 0x27e   : > { %v3754_v15 = vpop.f32.mrb[7].mxu1 }
 0x283   : > { %v3756_v4 = vpop.f32.mrb[8].mxu1 }
 0x284   : > { %v3758_v8 = vpop.f32.mrb[9].mxu1 }
 0x285   : > { %v3760_v62 = vpop.f32.mrb[10].mxu1 }
 0x286   : > { %v3762_v5 = vpop.f32.mrb[11].mxu1 }
 0x28b   : > { %v3764_v45 = vpop.f32.mrb[12].mxu1 }
 0x28c   : > { %v3766_v46 = vpop.f32.mrb[13].mxu1 }
 0x28d   : > { %v3768_v63 = vpop.f32.mrb[14].mxu1 }
 0x28e   : > { %v3770_v35 = vpop.f32.mrb[15].mxu1 }
 0x293   : > { %v3772_v41 = vpop.f32.mrb[16].mxu1 }
 0x294   : > { %v3774_v43 = vpop.f32.mrb[17].mxu1 }
 0x295   : > { %v3776_v7 = vpop.f32.mrb[18].mxu1 }
 0x296   : > { %v3778_v40 = vpop.f32.mrb[19].mxu1 }
 0x29b   : > { %v3780_v11 = vpop.f32.mrb[20].mxu1 }
 0x29c   : > { %v1988_v20 = vpop.f32.mrb[21].mxu1 }
 0x29d   : > { %v2705_v42 = vpop.f32.mrb[22].mxu1 }
 0x29e   : > { %v1991_v59 = vpop.f32.mrb[23].mxu1 }
 0x29f   : > { %v3927_v23 = vadd.f32 %v3785_v55, %v1991_v59 }
 0x2de   : > { %v3791_v30 = vpop.permute.xlu0 %1469 }
 0x2df   : > { %v3803_v22 = vadd.f32 %v3789_v31, %v3791_v30  ;;  %v3818_v26 = vadd.f32 %v3795_v18, %v3791_v30  ;;  %v2940_v31 = vpop.eup %2939 }
 0x2e0   : > { %v3805_v53 = vpop.permute.xlu1 %1471  ;;  %v2942_v18 = vpop.eup %2941 }
 0x2e1   : > { %v4592_v21 = vmax.f32 %v3803_v22, 0.0  ;;  %v3814_v50 = vadd.f32 %v3799_v28, %v3805_v53  ;;  %v3832_v61 = vadd.f32 %v3809_v39, %v3805_v53  ;;  %v4588_v38 = vmax.f32 %v3818_v26, 0.0  ;;  %v2944_v39 = vpop.eup %2943 }
 0x2e2   : > { %v3820_v44 = vpop.permute.xlu0 %1473 }
 0x2e3   : > { %2069 = vrot.lane.b32.xlu0 %v4592_v21, %s3019_s27  ;;  %v4590_v27 = vmax.f32 %v3814_v50, 0.0  ;;  %v3844_v0 = vadd.f32 %v3824_v24, %v3820_v44  ;;  %v4587_v36 = vmax.f32 %v3832_v61, 0.0  ;;  %v3858_v58 = vadd.f32 %v3836_v32, %v3820_v44  ;;  %v2946_v24 = vpop.eup %2945 }
 0x2e4   : > { %v3860_v2 = vpop.permute.xlu1 %1475 }
 0x2e5   : > { %2073 = vrot.lane.b32.xlu1 %v4590_v27, %s3019_s27  ;;  %v4585_v29 = vmax.f32 %v3844_v0, 0.0  ;;  %v4583_v47 = vmax.f32 %v3858_v58, 0.0  ;;  %v3896_v14 = vadd.f32 %v3876_v52, %v3860_v2  ;;  %v3910_v3 = vadd.f32 %v3888_v57, %v3860_v2 }
 0x2e6   : > { %v3846_v60 = vpop.permute.xlu0 %1477 }
 0x2e7   : > { %2067 = vrot.lane.b32.xlu0 %v4588_v38, %s3019_s27  ;;  %v3872_v48 = vadd.f32 %v3850_v56, %v3846_v60  ;;  %v3884_v33 = vadd.f32 %v3864_v49, %v3846_v60  ;;  %v4584_v9 = vmax.f32 %v3896_v14, 0.0  ;;  %v4586_v1 = vmax.f32 %v3910_v3, 0.0  ;;  %v4228_v56 = vpop.eup %2947 }
 0x2e8   : > { %v3898_v12 = vpop.permute.xlu1 %1479  ;;  %v3968_v38 = vadd.f32 %v3780_v11, %v3785_v55  ;;  %v4633_v49 = vmax.f32 %v3803_v22, 0.0 }
 0x2e9   : > { %2071 = vrot.lane.b32.xlu1 %v4587_v36, %s3019_s27  ;;  %v4582_v16 = vmax.f32 %v3872_v48, 0.0  ;;  %v4581_v51 = vmax.f32 %v3884_v33, 0.0  ;;  %v3922_v6 = vadd.f32 %v3902_v37, %v3898_v12  ;;  %v3964_v36 = vld [vmem:[%s4570_s7] ss:$0 sm:$0xff]  ;;  %v2950_v37 = vpop.eup %2949 }
 0x2ea   : > { %v3924_v34 = vpop.permute.xlu0 %1481  ;;  %v3980_v27 = vadd.f32 %v3964_v36, %v3754_v15 }
 0x2eb   : > { %2077 = vrot.lane.b32.xlu0 %v4585_v29, %s3019_s27  ;;  %v4589_v59 = vmax.f32 %v3922_v6, 0.0  ;;  %v3951_v29 = vadd.f32 %v2705_v42, %v3785_v55 }
 0x2ec   : > { %v4000_v21 = vadd.f32 %v3791_v30, %v3980_v27 }
 0x2ed   : > { %2075 = vrot.lane.b32.xlu1 %v4583_v47, %s3019_s27  ;;  %v3946_v47 = vadd.f32 %v3927_v23, %v3924_v34 }
 0x2ef   : > { %2085 = vrot.lane.b32.xlu0 %v4582_v16, %s3019_s27  ;;  %v3938_v16 = vadd.f32 %v3785_v55, %v1988_v20  ;;  %v4593_v42 = vmax.f32 %v3946_v47, 0.0 }
 0x2f1   : > { %2083 = vrot.lane.b32.xlu1 %v4581_v51, %s3019_s27  ;;  %v3935_v51 = vadd.f32 %v3914_v19, %v3898_v12 }
 0x2f3   : > { %2081 = vrot.lane.b32.xlu0 %v4584_v9, %s3019_s27  ;;  %v3948_v9 = vpop.permute.xlu1 %1483  ;;  %v4591_v20 = vmax.f32 %v3935_v51, 0.0 }
 0x2f4   : > { %v3988_v55 = vadd.f32 %v3968_v38, %v3948_v9 }
 0x2f5   : > { %2079 = vrot.lane.b32.xlu1 %v4586_v1, %s3019_s27  ;;  %v3959_v1 = vadd.f32 %v3938_v16, %v3924_v34 }
 0x2f6   : > { %4627 = vst [vmem:[#allocation4_spill] sm:$0xff] %v3988_v55 }
 0x2f7   : > { %2089 = vrot.lane.b32.xlu0 %v4589_v59, %s3019_s27  ;;  %4625 = vst [vmem:[#allocation2_spill] sm:$0xff] %v3959_v1  ;;  %v3976_v59 = vadd.f32 %v3951_v29, %v3948_v9  ;;  %v4595_v11 = vmax.f32 %v3959_v1, 0.0 }
 0x2f9   : > { %2087 = vrot.lane.b32.xlu1 %v4591_v20, %s3019_s27  ;;  %4626 = vst [vmem:[#allocation3_spill] sm:$0xff] %v3976_v59  ;;  %v3992_v20 = vadd.f32 %v3752_v10, %v3964_v36  ;;  %v4597_v15 = vmax.f32 %v3976_v59, 0.0  ;;  %v4599_v10 = vmax.f32 %v3988_v55, 0.0 }
 0x2fb   : > { %2093 = vrot.lane.b32.xlu0 %v4593_v42, %s3019_s27  ;;  %v4004_v42 = vadd.f32 %v3964_v36, %v3750_v25  ;;  %v4012_v1 = vadd.f32 %v3805_v53, %v3992_v20  ;;  %v4600_v25 = vmax.f32 %v4000_v21, 0.0 }
 0x2fd   : > { %2091 = vrot.lane.b32.xlu1 %v4595_v11, %s3019_s27  ;;  %v4016_v11 = vadd.f32 %v3748_v13, %v3964_v36  ;;  %v4024_v59 = vadd.f32 %v3791_v30, %v4004_v42  ;;  %v4601_v13 = vmax.f32 %v4012_v1, 0.0 }
 0x2ff   : > { %2097 = vrot.lane.b32.xlu0 %v4597_v15, %s3019_s27  ;;  %4628 = vst [vmem:[#allocation5_spill] sm:$0xff] %v4024_v59  ;;  %v4028_v15 = vadd.f32 %v3964_v36, %v3762_v5  ;;  %v4036_v55 = vadd.f32 %v3805_v53, %v4016_v11  ;;  %v4603_v5 = vmax.f32 %v4024_v59, 0.0  ;;  %2963 = vtanh.f32 %v4016_v11  ;;  %v4239_v11 = vpop.eup %2951 }
 0x300   : > { %2965 = vtanh.f32 %v4004_v42 }
 0x301   : > { %2095 = vrot.lane.b32.xlu1 %v4599_v10, %s3019_s27  ;;  %v4040_v10 = vadd.f32 %v3964_v36, %v3758_v8  ;;  %v4048_v30 = vadd.f32 %v3820_v44, %v4028_v15  ;;  %v4604_v8 = vmax.f32 %v4036_v55, 0.0  ;;  %2967 = vtanh.f32 %v3992_v20 }
 0x302   : > { %2969 = vtanh.f32 %v3980_v27  ;;  %v4634_v20 = vmax.f32 %v3814_v50, 0.0  ;;  %v4635_v50 = vmax.f32 %v3818_v26, 0.0 }
 0x303   : > { %1543 = vrot.lane.b32.xlu0 %v4600_v25, %s3019_s27  ;;  %4629 = vst [vmem:[#allocation6_spill] sm:$0xff] %v4048_v30  ;;  %v4052_v25 = vadd.f32 %v3760_v62, %v3964_v36  ;;  %v4060_v53 = vadd.f32 %v3820_v44, %v4040_v10  ;;  %v4606_v62 = vmax.f32 %v4048_v30, 0.0 }
 0x305   : > { %1547 = vrot.lane.b32.xlu1 %v4601_v13, %s3019_s27  ;;  %v4064_v13 = vadd.f32 %v3756_v4, %v3964_v36  ;;  %v4072_v59 = vadd.f32 %v3860_v2, %v4052_v25  ;;  %v4607_v4 = vmax.f32 %v4060_v53, 0.0 }
 0x307   : > { %1541 = vrot.lane.b32.xlu0 %v4603_v5, %s3019_s27  ;;  %4630 = vst [vmem:[#allocation7_spill] sm:$0xff] %v4072_v59  ;;  %v4076_v5 = vadd.f32 %v3964_v36, %v3770_v35  ;;  %v4084_v44 = vadd.f32 %v3860_v2, %v4064_v13  ;;  %v4609_v35 = vmax.f32 %v4072_v59, 0.0  ;;  %2971 = vtanh.f32 %v4064_v13 }
 0x308   : > { %2973 = vtanh.f32 %v4040_v10 }
 0x309   : > { %1545 = vrot.lane.b32.xlu1 %v4604_v8, %s3019_s27  ;;  %v4088_v8 = vadd.f32 %v3964_v36, %v3766_v46  ;;  %v4096_v30 = vadd.f32 %v3846_v60, %v4076_v5  ;;  %v4610_v46 = vmax.f32 %v4084_v44, 0.0  ;;  %2975 = vtanh.f32 %v4052_v25 }
 0x30a   : > { %2977 = vtanh.f32 %v4028_v15 }
 0x30b   : > { %1551 = vrot.lane.b32.xlu0 %v4606_v62, %s3019_s27  ;;  %4631 = vst [vmem:[#allocation8_spill] sm:$0xff] %v4096_v30  ;;  %v4100_v62 = vadd.f32 %v3768_v63, %v3964_v36  ;;  %v4108_v2 = vadd.f32 %v3846_v60, %v4088_v8  ;;  %v4612_v63 = vmax.f32 %v4096_v30, 0.0 }
 0x30d   : > { %1549 = vrot.lane.b32.xlu1 %v4607_v4, %s3019_s27  ;;  %v4112_v4 = vadd.f32 %v3764_v45, %v3964_v36  ;;  %v4120_v59 = vadd.f32 %v3898_v12, %v4100_v62  ;;  %v4613_v45 = vmax.f32 %v4108_v2, 0.0 }
 0x30f   : > { %1555 = vrot.lane.b32.xlu0 %v4609_v35, %s3019_s27  ;;  %4632 = vst [vmem:[#allocation9_spill] sm:$0xff] %v4120_v59  ;;  %v4124_v35 = vadd.f32 %v3964_v36, %v3778_v40  ;;  %v4132_v60 = vadd.f32 %v3898_v12, %v4112_v4  ;;  %v4618_v40 = vmax.f32 %v4120_v59, 0.0  ;;  %2979 = vtanh.f32 %v4112_v4 }
 0x310   : > { %2981 = vtanh.f32 %v4088_v8 }
 0x311   : > { %1553 = vrot.lane.b32.xlu1 %v4610_v46, %s3019_s27  ;;  %v4136_v46 = vadd.f32 %v3964_v36, %v3774_v43  ;;  %v4144_v30 = vadd.f32 %v3924_v34, %v4124_v35  ;;  %v4615_v43 = vmax.f32 %v4132_v60, 0.0  ;;  %2983 = vtanh.f32 %v4100_v62 }
 0x312   : > { %v4639_v62 = vmax.f32 %v3872_v48, 0.0  ;;  %v4640_v48 = vmax.f32 %v3884_v33, 0.0 }
 0x313   : > { %1559 = vrot.lane.b32.xlu0 %v4612_v63, %s3019_s27  ;;  %v4148_v63 = vadd.f32 %v3776_v7, %v3964_v36  ;;  %v4156_v12 = vadd.f32 %v3924_v34, %v4136_v46  ;;  %v4617_v7 = vmax.f32 %v4144_v30, 0.0 }
 0x315   : > { %1557 = vrot.lane.b32.xlu1 %v4613_v45, %s3019_s27  ;;  %v4160_v45 = vadd.f32 %v3772_v41, %v3964_v36  ;;  %v4168_v59 = vadd.f32 %v3948_v9, %v4148_v63  ;;  %v4616_v34 = vmax.f32 %v4156_v12, 0.0 }
 0x317   : > { %1563 = vrot.lane.b32.xlu0 %v4618_v40, %s3019_s27  ;;  %v4176_v41 = vadd.f32 %v3948_v9, %v4160_v45  ;;  %v4619_v36 = vmax.f32 %v4168_v59, 0.0  ;;  %v2289_v9 = vld [vmem:[%s4573_s10] sm:$0xff] }
 0x319   : > { %1561 = vrot.lane.b32.xlu1 %v4615_v43, %s3019_s27  ;;  %v4620_v43 = vmax.f32 %v4176_v41, 0.0 }
 0x31b   : > { %1567 = vrot.lane.b32.xlu0 %v4617_v7, %s3019_s27  ;;  %v2291_v7 = vld [vmem:[%s4573_s10 + $0x10] sm:$0xff] }
 0x31d   : > { %1565 = vrot.lane.b32.xlu1 %v4616_v34, %s3019_s27  ;;  %v2290_v34 = vld [vmem:[%s4573_s10 + $0x8] sm:$0xff] }
 0x31e   : > { %v2721_v40 = vpack.c.bf16 %v2290_v34, %v2289_v9 }
 0x31f   : > { %1571 = vrot.lane.b32.xlu0 %v4619_v36, %s3019_s27  ;;  %v2292_v36 = vld [vmem:[%s4573_s10 + $0x18] sm:$0xff] }
 0x320   : > { %2722 = vmatpush3.bf16.msra.mxu1 %v2721_v40 }
 0x321   : > { %1569 = vrot.lane.b32.xlu1 %v4620_v43, %s3019_s27  ;;  %v2724_v43 = vpack.c.bf16 %v2292_v36, %v2291_v7  ;;  %2723 = vmatprep.subr.bf16.mxu1 %v4623_v17  ;;  %v4212_v17 = vadd.s32 8, %v3528_v54 }
 0x323   : > { %vm2132_vm0 = vcmp.lt.s32.totalorder %v4212_v17, 13  ;;  %vm1606_vm2 = vcmp.lt.s32.totalorder %v4212_v17, 14 }
 0x324   : > { %2725 = vmatpush3.bf16.msra.mxu1 %v2724_v43  ;;  %v2954_v43 = vpop.eup %2953  ;;  %2985 = vtanh.f32 %v3927_v23 }
 0x325   : > { %v4250_v34 = vpop.eup %2955  ;;  %2987 = vtanh.f32 %v4076_v5 }
 0x355   : > { %v2070_v28 = vpop.permute.xlu0 %2069 }
 0x356   : > { %v2116_v54 = vmul.f32 %v2942_v18, %v2070_v28  ;;  %v2958_v28 = vpop.eup %2957  ;;  %2989 = vtanh.f32 %v3938_v16 }
 0x357   : > { %v2074_v32 = vpop.permute.xlu1 %2073 }
 0x358   : > { %v2222_v52 = vsel %vm798_vm8, %v2116_v54, %v4633_v49  ;;  %v2118_v57 = vmul.f32 %v2946_v24, %v2074_v32  ;;  %v2134_v19 = vsel %vm2132_vm0, %v2116_v54, -inf  ;;  %v4260_v54 = vpop.eup %2959  ;;  %v4636_v49 = vmax.f32 %v3832_v61, 0.0 }
 0x359   : > { %2239 = vst.msk [vmem:[%s4223_s16 + $0x8] sm:$0x1f] %vm2238_vm1, %v2222_v52  ;;  %v2068_v42 = vpop.permute.xlu0 %2067  ;;  %v2150_v36 = vsel %vm798_vm8, %v2134_v19, -inf  ;;  %v4637_v61 = vmax.f32 %v3844_v0, 0.0  ;;  %2991 = vtanh.f32 %v4136_v46  ;;  %v4641_v46 = vmax.f32 %v3896_v14, 0.0 }
 0x35a   : > { %v2224_v22 = vsel %vm798_vm8, %v2118_v57, %v4634_v20  ;;  %v2115_v40 = vmul.f32 %v2944_v39, %v2068_v42  ;;  %v2136_v27 = vsel %vm2132_vm0, %v2118_v57, -inf }
 0x35b   : > { %2241 = vst.msk [vmem:[%s4223_s16 + $0x18] sm:$0x1f] %vm2238_vm1, %v2224_v22  ;;  %v2072_v7 = vpop.permute.xlu1 %2071  ;;  %v2159_v24 = vsel %vm798_vm8, %v2136_v27, -inf }
 0x35c   : > { %v2149_v13 = vsel %vm798_vm8, %v2115_v40, -inf  ;;  %v2221_v9 = vsel %vm798_vm8, %v2115_v40, %v4635_v50  ;;  %v2117_v18 = vmul.f32 %v2940_v31, %v2072_v7  ;;  %v2962_v31 = vpop.eup %2961  ;;  %2993 = vtanh.f32 %v3951_v29 }
 0x35d   : > { %v2151_v10 = vmax.f32 %v2149_v13, %v2150_v36  ;;  %2237 = vst.msk [vmem:[%s4223_s16] sm:$0xff] %vm624_vm3, %v2221_v9  ;;  %v2078_v39 = vpop.permute.xlu0 %2077  ;;  %v4270_v19 = vpop.eup %2963  ;;  %2995 = vtanh.f32 %v4148_v63 }
 0x35e   : > { %v2158_v32 = vsel %vm798_vm8, %v2117_v18, -inf  ;;  %v2223_v26 = vsel %vm798_vm8, %v2117_v18, %v4636_v49  ;;  %v2120_v52 = vmul.f32 %v2954_v43, %v2078_v39  ;;  %v4278_v40 = vpop.eup %2965  ;;  %2997 = vtanh.f32 %v3968_v38 }
 0x35f   : > { %v2160_v25 = vmax.f32 %v2158_v32, %v2159_v24  ;;  %2240 = vst.msk [vmem:[%s4223_s16 + $0x10] sm:$0xff] %vm624_vm3, %v2223_v26  ;;  %v2076_v57 = vpop.permute.xlu1 %2075  ;;  %v2152_v15 = vrot.slane %v2151_v10, 4  ;;  %v4284_v7 = vpop.eup %2967  ;;  %2999 = vtanh.f32 %v4124_v35 }
 0x360   : > { %v2138_v42 = vsel %vm2132_vm0, %v2120_v52, -inf  ;;  %v2226_v20 = vsel %vm798_vm8, %v2120_v52, %v4637_v61  ;;  %v2119_v22 = vmul.f32 %v2950_v37, %v2076_v57  ;;  %v4638_v37 = vmax.f32 %v3858_v58, 0.0  ;;  %v4291_v50 = vpop.eup %2969 }
 0x361   : > { %v2161_v43 = vrot.slane %v2160_v25, 4  ;;  %v2168_v27 = vsel %vm798_vm8, %v2138_v42, -inf  ;;  %2243 = vst.msk [vmem:[%s4223_s16 + $0x28] sm:$0x1f] %vm2238_vm1, %v2226_v20  ;;  %v2086_v4 = vpop.permute.xlu0 %2085  ;;  %v4296_v39 = vpop.eup %2971  ;;  %v2153_v23 = vmax.f32 %v2151_v10, %v2152_v15  ;;  %3001 = vtanh.f32 %v4160_v45 }
 0x362   : > { %v2167_v0 = vsel %vm798_vm8, %v2119_v22, -inf  ;;  %v2225_v36 = vsel %vm798_vm8, %v2119_v22, %v4638_v37  ;;  %v2124_v13 = vmul.f32 %v2962_v31, %v2086_v4  ;;  %v4304_v49 = vpop.eup %2973 }
 0x363   : > { %v2162_v8 = vmax.f32 %v2160_v25, %v2161_v43  ;;  %v2169_v9 = vmax.f32 %v2167_v0, %v2168_v27  ;;  %2242 = vst.msk [vmem:[%s4223_s16 + $0x20] sm:$0xff] %vm624_vm3, %v2225_v36  ;;  %v2084_v18 = vpop.permute.xlu1 %2083  ;;  %v4316_v57 = vpop.eup %2975  ;;  %v2154_v29 = vrot.slane %v2153_v23, 2  ;;  %v4642_v0 = vmax.f32 %v3910_v3, 0.0 }
 0x364   : > { %v2142_v58 = vsel %vm2132_vm0, %v2124_v13, -inf  ;;  %v2230_v24 = vsel %vm798_vm8, %v2124_v13, %v4639_v62  ;;  %v2123_v32 = vmul.f32 %v2958_v28, %v2084_v18  ;;  %v4328_v22 = vpop.eup %2977 }
 0x365   : > { %v2170_v26 = vrot.slane %v2169_v9, 4  ;;  %v2186_v52 = vsel %vm798_vm8, %v2142_v58, -inf  ;;  %2247 = vst.msk [vmem:[%s4223_s16 + $0x48] sm:$0x1f] %vm2238_vm1, %v2230_v24  ;;  %v2082_v5 = vpop.permute.xlu0 %2081  ;;  %v2163_v16 = vrot.slane %v2162_v8, 2  ;;  %v4333_v27 = vpop.eup %2979  ;;  %v4643_v24 = vmax.f32 %v3922_v6, 0.0 }
 0x366   : > { %v2185_v31 = vsel %vm798_vm8, %v2123_v32, -inf  ;;  %v2229_v28 = vsel %vm798_vm8, %v2123_v32, %v4640_v48  ;;  %v2122_v25 = vmul.f32 %v4239_v11, %v2082_v5  ;;  %v4341_v38 = vpop.eup %2981  ;;  %v2155_v35 = vmax.f32 %v2153_v23, %v2154_v29 }
 0x367   : > { %v2171_v10 = vmax.f32 %v2169_v9, %v2170_v26  ;;  %v2187_v42 = vmax.f32 %v2185_v31, %v2186_v52  ;;  %2246 = vst.msk [vmem:[%s4223_s16 + $0x40] sm:$0xff] %vm624_vm3, %v2229_v28  ;;  %v2080_v61 = vpop.permute.xlu1 %2079  ;;  %v2164_v36 = vmax.f32 %v2162_v8, %v2163_v16  ;;  %v4346_v58 = vpop.eup %2983  ;;  %v4644_v28 = vmax.f32 %v3935_v51, 0.0 }
 0x368   : > { %v2140_v33 = vsel %vm2132_vm0, %v2122_v25, -inf  ;;  %v2228_v11 = vsel %vm798_vm8, %v2122_v25, %v4641_v46  ;;  %v2121_v20 = vmul.f32 %v4228_v56, %v2080_v61  ;;  %v2986_v26 = vpop.eup %2985  ;;  %v4645_v51 = vmax.f32 %v3946_v47, 0.0 }
 0x369   : > { %v2172_v15 = vrot.slane %v2171_v10, 2  ;;  %v2188_v43 = vrot.slane %v2187_v42, 4  ;;  %2245 = vst.msk [vmem:[%s4223_s16 + $0x38] sm:$0x1f] %vm2238_vm1, %v2228_v11  ;;  %v2090_v63 = vpop.permute.xlu0 %2089  ;;  %v2177_v4 = vsel %vm798_vm8, %v2140_v33, -inf  ;;  %v4357_v31 = vpop.eup %2987  ;;  %v2165_v23 = vrot.slane %v2164_v36, 1 }
 0x36a   : > { %v2176_v14 = vsel %vm798_vm8, %v2121_v20, -inf  ;;  %v2227_v56 = vsel %vm798_vm8, %v2121_v20, %v4642_v0  ;;  %v2126_v37 = vmul.f32 %v4260_v54, %v2090_v63  ;;  %v2990_v16 = vpop.eup %2989 }
 0x36b   : > { %v2189_v13 = vmax.f32 %v2187_v42, %v2188_v43  ;;  %v2178_v9 = vmax.f32 %v2176_v14, %v2177_v4  ;;  %2244 = vst.msk [vmem:[%s4223_s16 + $0x30] sm:$0xff] %vm624_vm3, %v2227_v56  ;;  %v2088_v18 = vpop.permute.xlu1 %2087  ;;  %v2173_v62 = vmax.f32 %v2171_v10, %v2172_v15  ;;  %v4366_v33 = vpop.eup %2991  ;;  %v2156_v43 = vrot.slane %v2155_v35, 1 }
 0x36c   : > { %v2144_v3 = vsel %vm2132_vm0, %v2126_v37, -inf  ;;  %v2232_v54 = vsel %vm798_vm8, %v2126_v37, %v4643_v24  ;;  %v2125_v32 = vmul.f32 %v4250_v34, %v2088_v18  ;;  %v2994_v15 = vpop.eup %2993  ;;  %v4646_v18 = vld [vmem:[#allocation2_spill] sm:$0xff] }
 0x36d   : > { %v2190_v8 = vrot.slane %v2189_v13, 2  ;;  %v2179_v52 = vrot.slane %v2178_v9, 4  ;;  %2249 = vst.msk [vmem:[%s4223_s16 + $0x58] sm:$0x1f] %vm2238_vm1, %v2232_v54  ;;  %v2094_v5 = vpop.permute.xlu0 %2093  ;;  %v2195_v48 = vsel %vm798_vm8, %v2144_v3, -inf  ;;  %v2174_v46 = vrot.slane %v2173_v62, 1  ;;  %v4376_v56 = vpop.eup %2995 }
 0x36e   : > { %v2194_v6 = vsel %vm798_vm8, %v2125_v32, -inf  ;;  %v2231_v34 = vsel %vm798_vm8, %v2125_v32, %v4644_v28  ;;  %v2128_v25 = vmul.f32 %v2986_v26, %v2094_v5  ;;  %v4647_v47 = vmax.f32 %v4646_v18, 0.0  ;;  %v2998_v54 = vpop.eup %2997 }
 0x36f   : > { %v2180_v10 = vmax.f32 %v2178_v9, %v2179_v52  ;;  %v2196_v42 = vmax.f32 %v2194_v6, %v2195_v48  ;;  %2248 = vst.msk [vmem:[%s4223_s16 + $0x50] sm:$0xff] %vm624_vm3, %v2231_v34  ;;  %v2092_v61 = vpop.permute.xlu1 %2091  ;;  %v2191_v37 = vmax.f32 %v2189_v13, %v2190_v8  ;;  %v2166_v32 = vmax.f32 %v2164_v36, %v2165_v23  ;;  %v4648_v8 = vld [vmem:[#allocation3_spill] sm:$0xff] }
 0x370   : > { %v2146_v11 = vsel %vm2132_vm0, %v2128_v25, -inf  ;;  %v2234_v20 = vsel %vm798_vm8, %v2128_v25, %v4645_v51  ;;  %v2127_v29 = vmul.f32 %v2990_v16, %v2092_v61  ;;  %v2175_v6 = vmax.f32 %v2173_v62, %v2174_v46  ;;  %v4389_v16 = vpop.eup %2999 }
 0x371   : > { %v2181_v63 = vrot.slane %v2180_v10, 2  ;;  %v2197_v4 = vrot.slane %v2196_v42, 4  ;;  %v2204_v14 = vsel %vm798_vm8, %v2146_v11, -inf  ;;  %2251 = vst.msk [vmem:[%s4223_s16 + $0x68] sm:$0x1f] %vm2238_vm1, %v2234_v20  ;;  %v2098_v0 = vpop.permute.xlu0 %2097  ;;  %v4649_v28 = vmax.f32 %v4648_v8, 0.0 }
 0x372   : > { %v2203_v9 = vsel %vm798_vm8, %v2127_v29, -inf  ;;  %v2233_v3 = vsel %vm798_vm8, %v2127_v29, %v4647_v47  ;;  %v2130_v24 = vmul.f32 %v2994_v15, %v2098_v0  ;;  %v2192_v62 = vrot.slane %v2191_v37, 1  ;;  %v4650_v11 = vld [vmem:[#allocation4_spill] sm:$0xff] }
 0x373   : > { %v2182_v26 = vmax.f32 %v2180_v10, %v2181_v63  ;;  %v2198_v52 = vmax.f32 %v2196_v42, %v2197_v4  ;;  %v2205_v5 = vmax.f32 %v2203_v9, %v2204_v14  ;;  %2250 = vst.msk [vmem:[%s4223_s16 + $0x60] sm:$0xff] %vm624_vm3, %v2233_v3  ;;  %v2096_v48 = vpop.permute.xlu1 %2095  ;;  %v4651_v51 = vmax.f32 %v4650_v11, 0.0 }
 0x374   : > { %v2148_v13 = vsel %vm2132_vm0, %v2130_v24, -inf  ;;  %v2236_v34 = vsel %vm798_vm8, %v2130_v24, %v4649_v28  ;;  %v2129_v25 = vmul.f32 %v2998_v54, %v2096_v48  ;;  %v2157_v15 = vmax.f32 %v2155_v35, %v2156_v43 }
 0x375   : > { %v2183_v36 = vrot.slane %v2182_v26, 1  ;;  %v2199_v23 = vrot.slane %v2198_v52, 2  ;;  %v2206_v10 = vrot.slane %v2205_v5, 4  ;;  %v2213_v42 = vsel %vm798_vm8, %v2148_v13, -inf  ;;  %2253 = vst.msk [vmem:[%s4223_s16 + $0x78] sm:$0x1f] %vm2238_vm1, %v2236_v34  ;;  %v1544_v61 = vpop.permute.xlu0 %1543 }
 0x376   : > { %v2212_v46 = vsel %vm798_vm8, %v2129_v25, -inf  ;;  %v2235_v20 = vsel %vm798_vm8, %v2129_v25, %v4651_v51  ;;  %v1590_v29 = vmul.f32 %v4291_v50, %v1544_v61  ;;  %v4652_v47 = vmax.f32 %v4000_v21, 0.0 }
 0x377   : > { %v2200_v63 = vmax.f32 %v2198_v52, %v2199_v23  ;;  %v2207_v4 = vmax.f32 %v2205_v5, %v2206_v10  ;;  %v2214_v14 = vmax.f32 %v2212_v46, %v2213_v42  ;;  %2252 = vst.msk [vmem:[%s4223_s16 + $0x70] sm:$0xff] %vm624_vm3, %v2235_v20  ;;  %v1548_v0 = vpop.permute.xlu1 %1547  ;;  %v2184_v9 = vmax.f32 %v2182_v26, %v2183_v36 }
 0x378   : > { %v1608_v18 = vsel %vm1606_vm2, %v1590_v29, -inf  ;;  %v1696_v3 = vsel %vm798_vm8, %v1590_v29, %v4652_v47  ;;  %v1592_v24 = vmul.f32 %v4284_v7, %v1548_v0  ;;  %v2278_v50 = vsel %vm872_vm9, %v2166_v32, %v2157_v15 }
 0x379   : > { %v2201_v35 = vrot.slane %v2200_v63, 1  ;;  %v2208_v43 = vrot.slane %v2207_v4, 2  ;;  %v2215_v54 = vrot.slane %v2214_v14, 4  ;;  %1713 = vst.msk [vmem:[%s4399_s19 + $0x8] sm:$0x3f] %vm1712_vm4, %v1696_v3  ;;  %v1542_v52 = vpop.permute.xlu0 %1541  ;;  %v2193_v5 = vmax.f32 %v2191_v37, %v2192_v62 }
 0x37a   : > { %v4653_v26 = vmax.f32 %v4012_v1, 0.0  ;;  %v1589_v21 = vmul.f32 %v4278_v40, %v1542_v52  ;;  %v2279_v13 = vsel %vm874_vm10, %v2175_v6, %v2278_v50  ;;  %v1624_v32 = vsel %vm798_vm8, %v1608_v18, -inf  ;;  %v4654_v1 = vld [vmem:[#allocation5_spill] sm:$0xff] }
 0x37b   : > { %v2209_v8 = vmax.f32 %v2207_v4, %v2208_v43  ;;  %v2216_v7 = vmax.f32 %v2214_v14, %v2215_v54  ;;  %v1610_v28 = vsel %vm1606_vm2, %v1592_v24, -inf  ;;  %v1546_v34 = vpop.permute.xlu1 %1545  ;;  %v4655_v25 = vmax.f32 %v4654_v1, 0.0 }
 0x37c   : > { %v1698_v48 = vsel %vm798_vm8, %v1592_v24, %v4653_v26  ;;  %v1623_v37 = vsel %vm798_vm8, %v1589_v21, -inf  ;;  %v1591_v40 = vmul.f32 %v4270_v19, %v1546_v34  ;;  %v2280_v6 = vsel %vm876_vm11, %v2184_v9, %v2279_v13  ;;  %v4657_v9 = vld [vmem:[#allocation6_spill] sm:$0xff] }
 0x37d   : > { %1715 = vst.msk [vmem:[%s4399_s19 + $0x18] sm:$0x3f] %vm1712_vm4, %v1698_v48  ;;  %v1695_v36 = vsel %vm798_vm8, %v1589_v21, %v4655_v25  ;;  %v2202_v23 = vmax.f32 %v2200_v63, %v2201_v35  ;;  %v2210_v10 = vrot.slane %v2209_v8, 1  ;;  %v2217_v42 = vrot.slane %v2216_v7, 2  ;;  %v1552_v62 = vpop.permute.xlu0 %1551 }
 0x37e   : > { %v1625_v61 = vmax.f32 %v1623_v37, %v1624_v32  ;;  %1711 = vst.msk [vmem:[%s4399_s19] sm:$0xff] %vm624_vm3, %v1695_v36  ;;  %v1633_v46 = vsel %vm798_vm8, %v1610_v28, -inf  ;;  %v1632_v11 = vsel %vm798_vm8, %v1591_v40, -inf  ;;  %v4656_v51 = vmax.f32 %v4036_v55, 0.0  ;;  %v4660_v28 = vld [vmem:[#allocation7_spill] sm:$0xff] }
 0x37f   : > { %v1594_v19 = vmul.f32 %v4328_v22, %v1552_v62  ;;  %v2218_v29 = vmax.f32 %v2216_v7, %v2217_v42  ;;  %v1634_v63 = vmax.f32 %v1632_v11, %v1633_v46  ;;  %v1550_v4 = vpop.permute.xlu1 %1549  ;;  %v2281_v14 = vsel %vm878_vm12, %v2193_v5, %v2280_v6 }
 0x380   : > { %v1697_v20 = vsel %vm798_vm8, %v1591_v40, %v4656_v51  ;;  %v1626_v15 = vrot.slane %v1625_v61, 4  ;;  %v4658_v18 = vmax.f32 %v4657_v9, 0.0  ;;  %v1593_v47 = vmul.f32 %v4304_v49, %v1550_v4 }
 0x381   : > { %1714 = vst.msk [vmem:[%s4399_s19 + $0x10] sm:$0xff] %vm624_vm3, %v1697_v20  ;;  %v1612_v0 = vsel %vm1606_vm2, %v1594_v19, -inf  ;;  %v2211_v3 = vmax.f32 %v2209_v8, %v2210_v10  ;;  %v1635_v24 = vrot.slane %v1634_v63, 4  ;;  %v1556_v35 = vpop.permute.xlu0 %1555  ;;  %v2219_v43 = vrot.slane %v2218_v29, 1 }
 0x382   : > { %v1700_v55 = vsel %vm798_vm8, %v1594_v19, %v4658_v18  ;;  %v1627_v22 = vmax.f32 %v1625_v61, %v1626_v15  ;;  %v1642_v50 = vsel %vm798_vm8, %v1612_v0, -inf  ;;  %v1641_v54 = vsel %vm798_vm8, %v1593_v47, -inf  ;;  %v4663_v19 = vld [vmem:[#allocation8_spill] sm:$0xff] }
 0x383   : > { %1717 = vst.msk [vmem:[%s4399_s19 + $0x28] sm:$0x3f] %vm1712_vm4, %v1700_v55  ;;  %v4659_v52 = vmax.f32 %v4060_v53, 0.0  ;;  %v1596_v26 = vmul.f32 %v4316_v57, %v1556_v35  ;;  %v2282_v49 = vsel %vm880_vm13, %v2202_v23, %v2281_v14  ;;  %v1636_v21 = vmax.f32 %v1634_v63, %v1635_v24  ;;  %v1554_v8 = vpop.permute.xlu1 %1553 }
 0x384   : > { %v1628_v48 = vrot.slane %v1627_v22, 2  ;;  %v1643_v13 = vmax.f32 %v1641_v54, %v1642_v50  ;;  %v2220_v7 = vmax.f32 %v2218_v29, %v2219_v43  ;;  %v4661_v34 = vmax.f32 %v4660_v28, 0.0  ;;  %v4666_v54 = vld [vmem:[#allocation9_spill] sm:$0xff] }
 0x385   : > { %v1699_v5 = vsel %vm798_vm8, %v1593_v47, %v4659_v52  ;;  %v1614_v32 = vsel %vm1606_vm2, %v1596_v26, -inf  ;;  %v1595_v37 = vmul.f32 %v4296_v39, %v1554_v8  ;;  %v2283_v57 = vsel %vm882_vm14, %v2211_v3, %v2282_v49  ;;  %v1560_v6 = vpop.permute.xlu0 %1559 }
 0x386   : > { %1716 = vst.msk [vmem:[%s4399_s19 + $0x20] sm:$0xff] %vm624_vm3, %v1699_v5  ;;  %v1702_v53 = vsel %vm798_vm8, %v1596_v26, %v4661_v34  ;;  %v1629_v1 = vmax.f32 %v1627_v22, %v1628_v48  ;;  %v1637_v25 = vrot.slane %v1636_v21, 2  ;;  %v1644_v36 = vrot.slane %v1643_v13, 4 }
 0x387   : > { %v1651_v40 = vsel %vm798_vm8, %v1614_v32, -inf  ;;  %1719 = vst.msk [vmem:[%s4399_s19 + $0x38] sm:$0x3f] %vm1712_vm4, %v1702_v53  ;;  %v1650_v23 = vsel %vm798_vm8, %v1595_v37, -inf  ;;  %v4662_v10 = vmax.f32 %v4084_v44, 0.0  ;;  %v1598_v61 = vmul.f32 %v4357_v31, %v1560_v6  ;;  %v1558_v20 = vpop.permute.xlu1 %1557 }
 0x388   : > { %v2284_v39 = vsel %vm884_vm15, %v2220_v7, %v2283_v57  ;;  %v1630_v62 = vrot.slane %v1629_v1, 1  ;;  %v1638_v46 = vmax.f32 %v1636_v21, %v1637_v25  ;;  %v1645_v11 = vmax.f32 %v1643_v13, %v1644_v36 }
 0x389   : > { %v1701_v42 = vsel %vm798_vm8, %v1595_v37, %v4662_v10  ;;  %v1652_v51 = vmax.f32 %v1650_v23, %v1651_v40  ;;  %2285 = vrot.lane.b32.xlu0 %v2284_v39, %s3018_s24  ;;  %v1616_v44 = vsel %vm1606_vm2, %v1598_v61, -inf  ;;  %v4664_v29 = vmax.f32 %v4663_v19, 0.0  ;;  %v1564_v9 = vpop.permute.xlu0 %1563 }
 0x38a   : > { %1718 = vst.msk [vmem:[%s4399_s19 + $0x30] sm:$0xff] %vm624_vm3, %v1701_v42  ;;  %v1597_v15 = vmul.f32 %v4341_v38, %v1558_v20  ;;  %v1631_v63 = vmax.f32 %v1629_v1, %v1630_v62  ;;  %v1639_v4 = vrot.slane %v1638_v46, 1  ;;  %v1646_v14 = vrot.slane %v1645_v11, 2  ;;  %v3002_v42 = vpop.eup %3001 }
 0x38b   : > { %v1704_v31 = vsel %vm798_vm8, %v1598_v61, %v4664_v29  ;;  %v1653_v0 = vrot.slane %v1652_v51, 4  ;;  %v1660_v18 = vsel %vm798_vm8, %v1616_v44, -inf  ;;  %v4665_v55 = vmax.f32 %v4108_v2, 0.0  ;;  %v1562_v35 = vpop.permute.xlu1 %1561 }
 0x38c   : > { %1721 = vst.msk [vmem:[%s4399_s19 + $0x48] sm:$0x3f] %vm1712_vm4, %v1704_v31  ;;  %v1659_v45 = vsel %vm798_vm8, %v1597_v15, -inf  ;;  %v1600_v3 = vmul.f32 %v4346_v58, %v1564_v9  ;;  %v1640_v22 = vmax.f32 %v1638_v46, %v1639_v4  ;;  %v1647_v38 = vmax.f32 %v1645_v11, %v1646_v14 }
 0x38d   : > { %v1703_v47 = vsel %vm798_vm8, %v1597_v15, %v4665_v55  ;;  %v1654_v24 = vmax.f32 %v1652_v51, %v1653_v0  ;;  %v1661_v50 = vmax.f32 %v1659_v45, %v1660_v18  ;;  %v4667_v52 = vmax.f32 %v4666_v54, 0.0  ;;  %v1568_v21 = vpop.permute.xlu0 %1567 }
 0x38e   : > { %1720 = vst.msk [vmem:[%s4399_s19 + $0x40] sm:$0xff] %vm624_vm3, %v1703_v47  ;;  %v1618_v43 = vsel %vm1606_vm2, %v1600_v3, -inf  ;;  %v1599_v2 = vmul.f32 %v4333_v27, %v1562_v35  ;;  %v2262_v26 = vsel %vm872_vm9, %v1640_v22, %v1631_v63  ;;  %v1648_v58 = vrot.slane %v1647_v38, 1 }
 0x38f   : > { %v1706_v5 = vsel %vm798_vm8, %v1600_v3, %v4667_v52  ;;  %v1655_v49 = vrot.slane %v1654_v24, 2  ;;  %v1662_v48 = vrot.slane %v1661_v50, 4  ;;  %v1669_v13 = vsel %vm798_vm8, %v1618_v43, -inf  ;;  %v1566_v57 = vpop.permute.xlu1 %1565 }
 0x390   : > { %1723 = vst.msk [vmem:[%s4399_s19 + $0x58] sm:$0x3f] %vm1712_vm4, %v1706_v5  ;;  %v1668_v8 = vsel %vm798_vm8, %v1599_v2, -inf  ;;  %v4668_v7 = vmax.f32 %v4132_v60, 0.0  ;;  %v1602_v28 = vmul.f32 %v4389_v16, %v1568_v21  ;;  %v1649_v27 = vmax.f32 %v1647_v38, %v1648_v58 }
 0x391   : > { %v1656_v34 = vmax.f32 %v1654_v24, %v1655_v49  ;;  %v1663_v53 = vmax.f32 %v1661_v50, %v1662_v48  ;;  %v1670_v37 = vmax.f32 %v1668_v8, %v1669_v13  ;;  %v4669_v25 = vmax.f32 %v4144_v30, 0.0  ;;  %v1572_v10 = vpop.permute.xlu0 %1571  ;;  %v2565_v13 = vld [vmem:[%s4574_s11] ss:$0 sm:$0xff] }
 0x392   : > { %v1705_v32 = vsel %vm798_vm8, %v1599_v2, %v4668_v7  ;;  %v1620_v1 = vsel %vm1606_vm2, %v1602_v28, -inf  ;;  %v1601_v60 = vmul.f32 %v4366_v33, %v1566_v57  ;;  %v2263_v40 = vsel %vm874_vm10, %v1649_v27, %v2262_v26 }
 0x393   : > { %1722 = vst.msk [vmem:[%s4399_s19 + $0x50] sm:$0xff] %vm624_vm3, %v1705_v32  ;;  %v1708_v36 = vsel %vm798_vm8, %v1602_v28, %v4669_v25  ;;  %v1657_v16 = vrot.slane %v1656_v34, 1  ;;  %v1664_v6 = vrot.slane %v1663_v53, 2  ;;  %v1671_v23 = vrot.slane %v1670_v37, 4  ;;  %v1570_v44 = vpop.permute.xlu1 %1569 }
 0x394   : > { %1725 = vst.msk [vmem:[%s4399_s19 + $0x68] sm:$0x3f] %vm1712_vm4, %v1708_v36  ;;  %v1678_v61 = vsel %vm798_vm8, %v1620_v1, -inf  ;;  %v1677_v39 = vsel %vm798_vm8, %v1601_v60, -inf  ;;  %v4670_v30 = vmax.f32 %v4156_v12, 0.0  ;;  %v1604_v33 = vmul.f32 %v4376_v56, %v1572_v10 }
 0x395   : > { %v1658_v46 = vmax.f32 %v1656_v34, %v1657_v16  ;;  %v1665_v11 = vmax.f32 %v1663_v53, %v1664_v6  ;;  %v1672_v51 = vmax.f32 %v1670_v37, %v1671_v23  ;;  %v1679_v20 = vmax.f32 %v1677_v39, %v1678_v61 }
 0x396   : > { %v1707_v62 = vsel %vm798_vm8, %v1601_v60, %v4670_v30  ;;  %v1622_v19 = vsel %vm1606_vm2, %v1604_v33, -inf  ;;  %v4671_v29 = vmax.f32 %v4168_v59, 0.0  ;;  %v1603_v31 = vmul.f32 %v3002_v42, %v1570_v44 }
 0x397   : > { %1724 = vst.msk [vmem:[%s4399_s19 + $0x60] sm:$0xff] %vm624_vm3, %v1707_v62  ;;  %v1666_v15 = vrot.slane %v1665_v11, 1  ;;  %v1673_v63 = vrot.slane %v1672_v51, 2  ;;  %v1680_v4 = vrot.slane %v1679_v20, 4  ;;  %v1687_v56 = vsel %vm798_vm8, %v1622_v19, -inf }
 0x398   : > { %v1710_v12 = vsel %vm798_vm8, %v1604_v33, %v4671_v29  ;;  %v1686_v14 = vsel %vm798_vm8, %v1603_v31, -inf  ;;  %v4672_v0 = vmax.f32 %v4176_v41, 0.0  ;;  %v2264_v9 = vsel %vm876_vm11, %v1658_v46, %v2263_v40 }
 0x399   : > { %1727 = vst.msk [vmem:[%s4399_s19 + $0x78] sm:$0x3f] %vm1712_vm4, %v1710_v12  ;;  %v1667_v18 = vmax.f32 %v1665_v11, %v1666_v15  ;;  %v1674_v59 = vmax.f32 %v1672_v51, %v1673_v63  ;;  %v1681_v45 = vmax.f32 %v1679_v20, %v1680_v4  ;;  %v1688_v55 = vmax.f32 %v1686_v14, %v1687_v56 }
 0x39a   : > { %v1709_v17 = vsel %vm798_vm8, %v1603_v31, %v4672_v0 }
 0x39b   : > { %1726 = vst.msk [vmem:[%s4399_s19 + $0x70] sm:$0xff] %vm624_vm3, %v1709_v17  ;;  %v1675_v47 = vrot.slane %v1674_v59, 1  ;;  %v1682_v3 = vrot.slane %v1681_v45, 2  ;;  %v1689_v22 = vrot.slane %v1688_v55, 4  ;;  %v2265_v38 = vsel %vm878_vm12, %v1667_v18, %v2264_v9 }
 0x39d   : > { %v1676_v24 = vmax.f32 %v1674_v59, %v1675_v47  ;;  %v1683_v50 = vmax.f32 %v1681_v45, %v1682_v3  ;;  %v1690_v41 = vmax.f32 %v1688_v55, %v1689_v22 }
 0x39f   : > { %v1684_v35 = vrot.slane %v1683_v50, 1  ;;  %v1691_v43 = vrot.slane %v1690_v41, 2  ;;  %v2266_v54 = vsel %vm880_vm13, %v1676_v24, %v2265_v38 }
 0x3a1   : > { %v1685_v52 = vmax.f32 %v1683_v50, %v1684_v35  ;;  %v1692_v5 = vmax.f32 %v1690_v41, %v1691_v43 }
 0x3a3   : > { %v1693_v2 = vrot.slane %v1692_v5, 1  ;;  %v2267_v26 = vsel %vm882_vm14, %v1685_v52, %v2266_v54 }
 0x3a5   : > { %v1694_v58 = vmax.f32 %v1692_v5, %v1693_v2 }
 0x3a7   : > { %v2268_v49 = vsel %vm884_vm15, %v1694_v58, %v2267_v26 }
 0x3fb   : > { %v2286_v48 = vpop.permute.xlu0 %2285 }
 0x3fc   : > { %v2288_v21 = vsel %vm798_vm8, %v2268_v49, %v2286_v48 }
 0x3fd   : > { %2715 = vmatmul.mubr.msk.f32.vlgmr.msra.gmra.mrb[2].mxu1 %vm624_vm3, %v2288_v21 }
 0x4d0   : > { %v2369_v8 = vpop.f32.mrb[2].mxu1 }
 0x4d1   : > { %v2370_v7 = vadd.f32 %v2565_v13, %v2369_v8  ;;  %v2716_v32 = vpop.f32.mrb[3].mxu1 }
 0x4d3   : > { %2374 = vst.msk [vmem:[%s506_s23] sm:$0xff] %vm2373_vm5, %v2370_v7 }
 0x4d4 PF: > { %s25_s29 = sadd.s32 1, %s3009_s29  }
 0x4d5   : > { %p22_p6 = scmp.ge.s32.totalorder %s25_s29, 6  }
 0x4d7   :  { %24 = sbr.rel (!%p22_p6) target bundleno = 1 (0x1), region = 125 }

// kernel: tpu_custom_call.1
= control target key start
LH: loop header
LB: loop body
LE: loop exit
PB: predicated region body
PF: predicated region fallthrough
CT: control target
= control target key end

     0   :  { %s2951_s29 = smov 0   ;;  %s4341_s0 = inlined_call_operand.vmem [shape: f32[512,32], index: 0, kind: input, shape index: {}]   ;;  %s4342_s1 = inlined_call_operand.vmem [shape: f32[256,32], index: 1, kind: input, shape index: {}]   ;;  %s4343_s2 = inlined_call_operand.vmem [shape: bf16[96,16], index: 2, kind: input, shape index: {}]   ;;  %s4344_s3 = inlined_call_operand.vmem [shape: f32[1,16], index: 3, kind: input, shape index: {}]   ;;  %s4345_s4 = inlined_call_operand.vmem [shape: f32[16,16], index: 4, kind: input, shape index: {}]   ;;  %s4346_s5 = inlined_call_operand.vmem [shape: f32[1,16], index: 5, kind: input, shape index: {}]   ;;  %s4347_s6 = inlined_call_operand.vmem [shape: bf16[96,32], index: 6, kind: input, shape index: {}]   ;;  %s4348_s7 = inlined_call_operand.vmem [shape: f32[1,32], index: 7, kind: input, shape index: {}]   ;;  %s4349_s8 = inlined_call_operand.vmem [shape: bf16[128,32], index: 8, kind: input, shape index: {}]   ;;  %s4350_s9 = inlined_call_operand.vmem [shape: f32[1,32], index: 9, kind: input, shape index: {}]   ;;  %s4351_s10 = inlined_call_operand.vmem [shape: f32[32,3], index: 10, kind: input, shape index: {}]   ;;  %s4352_s11 = inlined_call_operand.vmem [shape: f32[1,3], index: 11, kind: input, shape index: {}]   ;;  %s4353_s12 = inlined_call_operand.vmem [shape: f32[32,3], index: 12, kind: output, shape index: {0}]   ;;  %s4354_s13 = inlined_call_operand.vmem [shape: f32[32,14,32], index: 13, kind: output, shape index: {1}]   ;;  %s4355_s14 = inlined_call_operand.vmem [shape: f32[32,13,32], index: 14, kind: output, shape index: {2}]  }
   0x1 LB: > { %s2957_s30 = sadd.s32 4294967295, %s2865_s29   ;;  %p2532_p0 = scmp.ge.s32.totalorder %s2865_s29, 1  ;;  %s2865_s29 = sphi %s2951_s29, %s25_s29  }
   0x2   : > { %p429_p1 = scmp.lt.s32.totalorder %s2865_s29, 5 }
   0x4   : > { %p430_p2 = pnand %p2532_p0, %p429_p1 }
   0x6   : > { %433 = sbr.rel (%p430_p2) target bundleno = 1245 (0x4dd), region = 68 }
   0xd   : > { %s2535_s15 = sshll.u32 %s2957_s30, 3  ;;  %vm530_vm0 = vcmask 785408   ;;  %v2867_v0 = vmov 0.0   ;;  %v2775_v1 = vld [vmem:[%s4343_s2] sm:$0xff]   ;;  %v2776_v2 = vld [vmem:[%s4343_s2 + $0x8] sm:$0xff]   ;;  %vm539_vm1 = vcmask 261120  }
   0xe   : > { %p2964_p3 = scmp.lt.s32.totalorder %s2535_s15, 31  ;;  %533 = vst.msk [vmem:[#allocation2 + $0x10] sm:$0xff] %vm530_vm0, %v2867_v0  ;;  %531 = vst.msk [vmem:[#allocation2] sm:$0xff] %vm530_vm0, %v2867_v0  ;;  %2635 = vmatprep.subr.bf16.mxu0 %v2775_v1  ;;  %v2777_v3 = vld [vmem:[%s4343_s2 + $0x10] sm:$0xff]   ;;  %s2868_s27 = smov 32   ;;  %v2778_v12 = vld [vmem:[%s4343_s2 + $0x18] sm:$0xff]  }
   0xf   : > { %532 = vst.msk [vmem:[#allocation2 + $0x8] sm:$0xff] %vm530_vm0, %v2867_v0  ;;  %534 = vst.msk [vmem:[#allocation2 + $0x18] sm:$0xff] %vm530_vm0, %v2867_v0  ;;  %2636 = vmatpush3.bf16.msra.mxu0 %v2775_v1  ;;  %v2779_v13 = vld [vmem:[%s4343_s2 + $0x20] sm:$0xff]   ;;  %s2869_s19 = smov 64   ;;  %v2780_v14 = vld [vmem:[%s4343_s2 + $0x28] sm:$0xff]   ;;  %s2533_s22 = sshll.u32 %s2957_s30, 4 }
  0x10   : > { %535 = vst.msk [vmem:[#allocation2 + $0x20] sm:$0xff] %vm530_vm0, %v2867_v0  ;;  %536 = vst.msk [vmem:[#allocation2 + $0x28] sm:$0xff] %vm530_vm0, %v2867_v0  ;;  %s4448_s15 = smov (!%p2964_p3, %s2535_s15), 31  ;;  %2637 = vmatprep.subr.bf16.mxu0 %v2776_v2  ;;  %p492_p4 = scmp.lt.s32.totalorder %s2533_s22, 63  ;;  %vm582_vm2 = vcmask 523520   ;;  %vm580_vm3 = vcmask 523521  }
  0x11   : > { %537 = vst.msk [vmem:[#allocation2 + $0x30] sm:$0xff] %vm530_vm0, %v2867_v0  ;;  %538 = vst.msk [vmem:[#allocation2 + $0x38] sm:$0xff] %vm530_vm0, %v2867_v0  ;;  %s2536_s21 = sshll.u32 %s4448_s15, 3  ;;  %s2870_s28 = smov 96   ;;  %vm614_vm4 = vcmask 785922   ;;  %vm616_vm5 = vcmask 785920  }
  0x12   : > { %964 = vst.msk [vmem:[#allocation3] sm:$0xff] %vm530_vm0, %v2867_v0  ;;  %965 = vst.msk [vmem:[#allocation3 + $0x8] sm:$0xff] %vm530_vm0, %v2867_v0  ;;  %s501_s26 = scalar_lea.vmem %s4342_s1, %s2536_s21  ;;  %s4450_s22 = smov (!%p492_p4, %s2533_s22), 63  ;;  %v844_v59 = vld [vmem:[%s4345_s4] sm:$0xff]  ;;  %v845_v60 = vld [vmem:[%s4345_s4 + $0x8] sm:$0xff]  ;;  %v4369_v62 = vmov 0.0|0.0  }
  0x13   : > { %966 = vst.msk [vmem:[#allocation3 + $0x10] sm:$0xff] %vm530_vm0, %v2867_v0  ;;  %967 = vst.msk [vmem:[#allocation3 + $0x18] sm:$0xff] %vm530_vm0, %v2867_v0  ;;  %v524_v4 = vld [vmem:[%s501_s26 + $0x10] sm:$0xff]  ;;  %v522_v5 = vld [vmem:[%s501_s26] sm:$0xff]  ;;  %2638 = vmatpush3.bf16.msra.mxu0 %v2776_v2  ;;  %s2534_s23 = sshll.u32 %s4450_s22, 3  ;;  %v2734_v61 = vpack.c.bf16 %v845_v60, %v844_v59  ;;  %2733 = vmatprep.subr.bf16.mxu1 %v4369_v62  ;;  %vm2872_vm6 = vmmov 0  }
  0x14   : > { %968 = vst.msk [vmem:[#allocation3 + $0x20] sm:$0xff] %vm530_vm0, %v2867_v0  ;;  %969 = vst.msk [vmem:[#allocation3 + $0x28] sm:$0xff] %vm530_vm0, %v2867_v0  ;;  %v525_v6 = vld [vmem:[%s501_s26 + $0x18] sm:$0xff]  ;;  %560 = vrot.lane.b32.xlu1 %v524_v4, %s2868_s27  ;;  %556 = vrot.lane.b32.xlu0 %v522_v5, %s2868_s27  ;;  %v523_v7 = vld [vmem:[%s501_s26 + $0x8] sm:$0xff]  ;;  %vm1809_vm7 = vcmask 1048323   ;;  %vm1811_vm8 = vcmask 1048320  }
  0x15   : > { %970 = vst.msk [vmem:[#allocation3 + $0x30] sm:$0xff] %vm530_vm0, %v2867_v0  ;;  %971 = vst.msk [vmem:[#allocation3 + $0x38] sm:$0xff] %vm530_vm0, %v2867_v0  ;;  %v526_v8 = vld [vmem:[%s501_s26 + $0x20] sm:$0xff]  ;;  %v528_v9 = vld [vmem:[%s501_s26 + $0x30] sm:$0xff]  ;;  %2639 = vmatprep.subr.bf16.mxu0 %v2777_v3  ;;  %2659 = vmatprep.mubr.msk.f32.mxu1 %vm2872_vm6, %v2867_v0  ;;  %vm787_vm10 = vcmask 130048   ;;  %vm861_vm11 = vcmask 1041409  }
  0x16   : > { %972 = vst.msk [vmem:[#allocation3 + $0x40] sm:$0xff] %vm530_vm0, %v2867_v0  ;;  %973 = vst.msk [vmem:[#allocation3 + $0x48] sm:$0xff] %vm530_vm0, %v2867_v0  ;;  %v527_v10 = vld [vmem:[%s501_s26 + $0x28] sm:$0xff]  ;;  %v529_v11 = vld [vmem:[%s501_s26 + $0x38] sm:$0xff]  ;;  %s3088_s26 = scalar_lea.vmem %s4341_s0, %s2534_s23  ;;  %2735 = vmatpush3.bf16.msra.mxu1 %v2734_v61  ;;  %vm863_vm12 = vcmask 1042434   ;;  %vm865_vm13 = vcmask 1043459  }
  0x17   : > { %974 = vst.msk [vmem:[#allocation3 + $0x50] sm:$0xff] %vm530_vm0, %v2867_v0  ;;  %975 = vst.msk [vmem:[#allocation3 + $0x58] sm:$0xff] %vm530_vm0, %v2867_v0  ;;  %2640 = vmatpush3.bf16.msra.mxu0 %v2777_v3  ;;  %v947_v15 = vld [vmem:[%s3088_s26] sm:$0xff]  ;;  %v948_v16 = vld [vmem:[%s3088_s26 + $0x8] sm:$0xff]  ;;  %vm867_vm14 = vcmask 1044484   ;;  %vm869_vm15 = vcmask 1045509  }
  0x18   : > { %976 = vst.msk [vmem:[#allocation3 + $0x60] sm:$0xff] %vm530_vm0, %v2867_v0  ;;  %977 = vst.msk [vmem:[#allocation3 + $0x68] sm:$0xff] %vm530_vm0, %v2867_v0  ;;  %562 = vrot.lane.b32.xlu1 %v525_v6, %s2868_s27  ;;  %558 = vrot.lane.b32.xlu0 %v523_v7, %s2868_s27  ;;  %v949_v17 = vld [vmem:[%s3088_s26 + $0x10] sm:$0xff]  ;;  %v950_v18 = vld [vmem:[%s3088_s26 + $0x18] sm:$0xff]  ;;  %s2874_s25 = smov 16   ;;  %p503_p5 = scmp.lt.s32.totalorder %s2957_s30, 3 }
  0x19   : > { %978 = vst.msk [vmem:[#allocation3 + $0x70] sm:$0xff] %vm530_vm0, %v2867_v0  ;;  %979 = vst.msk [vmem:[#allocation3 + $0x78] sm:$0xff] %vm530_vm0, %v2867_v0  ;;  %2641 = vmatprep.subr.bf16.mxu0 %v2778_v12  ;;  %v951_v19 = vld [vmem:[%s3088_s26 + $0x20] sm:$0xff]  ;;  %v952_v20 = vld [vmem:[%s3088_s26 + $0x28] sm:$0xff] }
  0x1a   : > { %1697 = vst [vmem:[#allocation4] sm:$0xff] %v2867_v0  ;;  %1698 = vst [vmem:[#allocation4 + $0x8] sm:$0xff] %v2867_v0  ;;  %v953_v21 = vld [vmem:[%s3088_s26 + $0x30] sm:$0xff]  ;;  %v3110_v22 = vld [vmem:[%s3088_s26 + $0x38] sm:$0xff]  ;;  %s4452_s30 = smov (!%p503_p5, %s2957_s30), 3 }
  0x1b   : > { %1699 = vst [vmem:[#allocation4 + $0x10] sm:$0xff] %v2867_v0  ;;  %1700 = vst [vmem:[#allocation4 + $0x18] sm:$0xff] %v2867_v0  ;;  %2642 = vmatpush3.bf16.msra.mxu0 %v2778_v12  ;;  %v3121_v23 = vld [vmem:[%s3088_s26 + $0x40] sm:$0xff]  ;;  %v3124_v24 = vld [vmem:[%s3088_s26 + $0x48] sm:$0xff] }
  0x1c   : > { %1701 = vst [vmem:[#allocation4 + $0x20] sm:$0xff] %v2867_v0  ;;  %1702 = vst [vmem:[#allocation4 + $0x28] sm:$0xff] %v2867_v0  ;;  %590 = vrot.lane.b32.xlu1 %v522_v5, %s2869_s19  ;;  %564 = vrot.lane.b32.xlu0 %v526_v8, %s2868_s27  ;;  %v3127_v25 = vld [vmem:[%s3088_s26 + $0x50] sm:$0xff]  ;;  %v3142_v26 = vld [vmem:[%s3088_s26 + $0x58] sm:$0xff] }
  0x1d   : > { %1703 = vst [vmem:[#allocation4 + $0x30] sm:$0xff] %v2867_v0  ;;  %1704 = vst [vmem:[#allocation4 + $0x38] sm:$0xff] %v2867_v0  ;;  %2643 = vmatprep.subr.bf16.mxu0 %v2779_v13  ;;  %v3145_v27 = vld [vmem:[%s3088_s26 + $0x60] sm:$0xff]  ;;  %v960_v56 = vld [vmem:[%s3088_s26 + $0x68] sm:$0xff] }
  0x1e   : > { %1705 = vst [vmem:[#allocation4 + $0x40] sm:$0xff] %v2867_v0  ;;  %1706 = vst [vmem:[#allocation4 + $0x48] sm:$0xff] %v2867_v0  ;;  %v961_v57 = vld [vmem:[%s3088_s26 + $0x70] sm:$0xff]  ;;  %v962_v58 = vld [vmem:[%s3088_s26 + $0x78] sm:$0xff] }
  0x1f   : > { %1707 = vst [vmem:[#allocation4 + $0x50] sm:$0xff] %v2867_v0  ;;  %1708 = vst [vmem:[#allocation4 + $0x58] sm:$0xff] %v2867_v0  ;;  %2644 = vmatpush3.bf16.msra.mxu0 %v2779_v13  ;;  %v3260_v2 = vld [vmem:[%s4347_s6] sm:$0xff]   ;;  %v3293_v12 = vld [vmem:[%s4349_s8 + $0x8] sm:$0xff]  }
  0x20   : > { %1709 = vst [vmem:[#allocation4 + $0x60] sm:$0xff] %v2867_v0  ;;  %1710 = vst [vmem:[#allocation4 + $0x68] sm:$0xff] %v2867_v0  ;;  %594 = vrot.lane.b32.xlu1 %v524_v4, %s2869_s19  ;;  %592 = vrot.lane.b32.xlu0 %v523_v7, %s2869_s19 }
  0x21   : > { %1711 = vst [vmem:[#allocation4 + $0x70] sm:$0xff] %v2867_v0  ;;  %1712 = vst [vmem:[#allocation4 + $0x78] sm:$0xff] %v2867_v0  ;;  %2645 = vmatprep.subr.bf16.mxu0 %v2780_v14  ;;  %2662 = vmatprep.subr.bf16.mxu1 %v3260_v2 }
  0x22   : > { %542 = vst.msk [vmem:[#allocation2 + $0x10] sm:$0xff] %vm539_vm1, %v524_v4  ;;  %540 = vst.msk [vmem:[#allocation2] sm:$0xff] %vm539_vm1, %v522_v5 }
  0x23   : > { %543 = vst.msk [vmem:[#allocation2 + $0x18] sm:$0xff] %vm539_vm1, %v525_v6  ;;  %541 = vst.msk [vmem:[#allocation2 + $0x8] sm:$0xff] %vm539_vm1, %v523_v7  ;;  %2646 = vmatpush3.bf16.msra.mxu0 %v2780_v14 }
  0x24   : > { %544 = vst.msk [vmem:[#allocation2 + $0x20] sm:$0xff] %vm539_vm1, %v526_v8  ;;  %546 = vst.msk [vmem:[#allocation2 + $0x30] sm:$0xff] %vm539_vm1, %v528_v9  ;;  %598 = vrot.lane.b32.xlu1 %v526_v8, %s2869_s19  ;;  %596 = vrot.lane.b32.xlu0 %v525_v6, %s2869_s19 }
  0x25   : > { %545 = vst.msk [vmem:[#allocation2 + $0x28] sm:$0xff] %vm539_vm1, %v527_v10  ;;  %547 = vst.msk [vmem:[#allocation2 + $0x38] sm:$0xff] %vm539_vm1, %v529_v11 }
  0x26   : > { %980 = vst.msk [vmem:[#allocation3] sm:$0xff] %vm539_vm1, %v947_v15  ;;  %1713 = vst.msk [vmem:[#allocation4] sm:$0xff] %vm539_vm1, %v947_v15 }
  0x27   : > { %981 = vst.msk [vmem:[#allocation3 + $0x8] sm:$0xff] %vm539_vm1, %v948_v16  ;;  %1714 = vst.msk [vmem:[#allocation4 + $0x8] sm:$0xff] %vm539_vm1, %v948_v16 }
  0x28   : > { %568 = vrot.lane.b32.xlu1 %v528_v9, %s2868_s27  ;;  %566 = vrot.lane.b32.xlu0 %v527_v10, %s2868_s27  ;;  %982 = vst.msk [vmem:[#allocation3 + $0x10] sm:$0xff] %vm539_vm1, %v949_v17  ;;  %1715 = vst.msk [vmem:[#allocation4 + $0x10] sm:$0xff] %vm539_vm1, %v949_v17 }
  0x29   : > { %983 = vst.msk [vmem:[#allocation3 + $0x18] sm:$0xff] %vm539_vm1, %v950_v18  ;;  %1716 = vst.msk [vmem:[#allocation4 + $0x18] sm:$0xff] %vm539_vm1, %v950_v18 }
  0x2a   : > { %984 = vst.msk [vmem:[#allocation3 + $0x20] sm:$0xff] %vm539_vm1, %v951_v19  ;;  %1717 = vst.msk [vmem:[#allocation4 + $0x20] sm:$0xff] %vm539_vm1, %v951_v19 }
  0x2b   : > { %985 = vst.msk [vmem:[#allocation3 + $0x28] sm:$0xff] %vm539_vm1, %v952_v20  ;;  %1718 = vst.msk [vmem:[#allocation4 + $0x28] sm:$0xff] %vm539_vm1, %v952_v20 }
  0x2c   : > { %600 = vrot.lane.b32.xlu1 %v527_v10, %s2869_s19  ;;  %570 = vrot.lane.b32.xlu0 %v529_v11, %s2868_s27  ;;  %986 = vst.msk [vmem:[#allocation3 + $0x30] sm:$0xff] %vm539_vm1, %v953_v21  ;;  %1719 = vst.msk [vmem:[#allocation4 + $0x30] sm:$0xff] %vm539_vm1, %v953_v21 }
  0x2d   : > { %987 = vst.msk [vmem:[#allocation3 + $0x38] sm:$0xff] %vm539_vm1, %v3110_v22  ;;  %1720 = vst.msk [vmem:[#allocation4 + $0x38] sm:$0xff] %vm539_vm1, %v3110_v22 }
  0x2e   : > { %988 = vst.msk [vmem:[#allocation3 + $0x40] sm:$0xff] %vm539_vm1, %v3121_v23  ;;  %1721 = vst.msk [vmem:[#allocation4 + $0x40] sm:$0xff] %vm539_vm1, %v3121_v23 }
  0x2f   : > { %989 = vst.msk [vmem:[#allocation3 + $0x48] sm:$0xff] %vm539_vm1, %v3124_v24  ;;  %1722 = vst.msk [vmem:[#allocation4 + $0x48] sm:$0xff] %vm539_vm1, %v3124_v24 }
  0x30   : > { %604 = vrot.lane.b32.xlu1 %v529_v11, %s2869_s19  ;;  %602 = vrot.lane.b32.xlu0 %v528_v9, %s2869_s19  ;;  %990 = vst.msk [vmem:[#allocation3 + $0x50] sm:$0xff] %vm539_vm1, %v3127_v25  ;;  %1723 = vst.msk [vmem:[#allocation4 + $0x50] sm:$0xff] %vm539_vm1, %v3127_v25  ;;  %v3282_v9 = vld [vmem:[%s4349_s8] sm:$0xff]  }
  0x31   : > { %991 = vst.msk [vmem:[#allocation3 + $0x58] sm:$0xff] %vm539_vm1, %v3142_v26  ;;  %1724 = vst.msk [vmem:[#allocation4 + $0x58] sm:$0xff] %vm539_vm1, %v3142_v26  ;;  %2690 = vmatprep.subr.bf16.mxu0 %v3282_v9 }
  0x32   : > { %992 = vst.msk [vmem:[#allocation3 + $0x60] sm:$0xff] %vm539_vm1, %v3145_v27  ;;  %1725 = vst.msk [vmem:[#allocation4 + $0x60] sm:$0xff] %vm539_vm1, %v3145_v27 }
  0x33   : > { %993 = vst.msk [vmem:[#allocation3 + $0x68] sm:$0xff] %vm539_vm1, %v960_v56  ;;  %1726 = vst.msk [vmem:[#allocation4 + $0x68] sm:$0xff] %vm539_vm1, %v960_v56 }
  0x34   : > { %1012 = vrot.lane.b32.xlu0 %v947_v15, %s2868_s27  ;;  %1014 = vrot.lane.b32.xlu1 %v948_v16, %s2868_s27  ;;  %994 = vst.msk [vmem:[#allocation3 + $0x70] sm:$0xff] %vm539_vm1, %v961_v57  ;;  %1727 = vst.msk [vmem:[#allocation4 + $0x70] sm:$0xff] %vm539_vm1, %v961_v57 }
  0x35   : > { %995 = vst.msk [vmem:[#allocation3 + $0x78] sm:$0xff] %vm539_vm1, %v962_v58  ;;  %1728 = vst.msk [vmem:[#allocation4 + $0x78] sm:$0xff] %vm539_vm1, %v962_v58 }
  0x38   : > { %1016 = vrot.lane.b32.xlu0 %v949_v17, %s2868_s27  ;;  %1018 = vrot.lane.b32.xlu1 %v950_v18, %s2868_s27 }
  0x3c   : > { %1020 = vrot.lane.b32.xlu0 %v951_v19, %s2868_s27  ;;  %1076 = vrot.lane.b32.xlu1 %v947_v15, %s2869_s19 }
  0x40   : > { %1078 = vrot.lane.b32.xlu0 %v948_v16, %s2869_s19  ;;  %1080 = vrot.lane.b32.xlu1 %v949_v17, %s2869_s19 }
  0x44   : > { %1082 = vrot.lane.b32.xlu0 %v950_v18, %s2869_s19  ;;  %1084 = vrot.lane.b32.xlu1 %v951_v19, %s2869_s19 }
  0x48   : > { %1022 = vrot.lane.b32.xlu0 %v952_v20, %s2868_s27  ;;  %1024 = vrot.lane.b32.xlu1 %v953_v21, %s2868_s27 }
  0x4c   : > { %1026 = vrot.lane.b32.xlu0 %v3110_v22, %s2868_s27  ;;  %1028 = vrot.lane.b32.xlu1 %v3121_v23, %s2868_s27 }
  0x50   : > { %1086 = vrot.lane.b32.xlu0 %v952_v20, %s2869_s19  ;;  %1088 = vrot.lane.b32.xlu1 %v953_v21, %s2869_s19 }
  0x54   : > { %1090 = vrot.lane.b32.xlu0 %v3110_v22, %s2869_s19  ;;  %1092 = vrot.lane.b32.xlu1 %v3121_v23, %s2869_s19 }
  0x58   : > { %1761 = vrot.lane.b32.xlu0 %v947_v15, %s2870_s28  ;;  %1763 = vrot.lane.b32.xlu1 %v948_v16, %s2870_s28  ;;  %v3304_v15 = vld [vmem:[%s4349_s8 + $0x10] sm:$0xff]  }
  0x5c   : > { %1765 = vrot.lane.b32.xlu0 %v949_v17, %s2870_s28  ;;  %1030 = vrot.lane.b32.xlu1 %v3124_v24, %s2868_s27 }
  0x60   : > { %1032 = vrot.lane.b32.xlu0 %v3127_v25, %s2868_s27  ;;  %1767 = vrot.lane.b32.xlu1 %v950_v18, %s2870_s28  ;;  %v3310_v18 = vld [vmem:[%s4349_s8 + $0x18] sm:$0xff]  }
  0x64   : > { %1769 = vrot.lane.b32.xlu0 %v951_v19, %s2870_s28  ;;  %1034 = vrot.lane.b32.xlu1 %v3142_v26, %s2868_s27  ;;  %v3321_v19 = vld [vmem:[%s4349_s8 + $0x20] sm:$0xff]  }
  0x68   : > { %1036 = vrot.lane.b32.xlu0 %v3145_v27, %s2868_s27  ;;  %1094 = vrot.lane.b32.xlu1 %v3124_v24, %s2869_s19 }
  0x6c   : > { %1096 = vrot.lane.b32.xlu0 %v3127_v25, %s2869_s19  ;;  %1098 = vrot.lane.b32.xlu1 %v3142_v26, %s2869_s19 }
  0x70   : > { %1100 = vrot.lane.b32.xlu0 %v3145_v27, %s2869_s19  ;;  %1771 = vrot.lane.b32.xlu1 %v952_v20, %s2870_s28 }
  0x74   : > { %1773 = vrot.lane.b32.xlu0 %v953_v21, %s2870_s28  ;;  %1038 = vrot.lane.b32.xlu1 %v960_v56, %s2868_s27 }
  0x78   : > { %1040 = vrot.lane.b32.xlu0 %v961_v57, %s2868_s27  ;;  %1775 = vrot.lane.b32.xlu1 %v3110_v22, %s2870_s28  ;;  %v3332_v22 = vld [vmem:[%s4349_s8 + $0x28] sm:$0xff]  }
  0x7c   : > { %1777 = vrot.lane.b32.xlu0 %v3121_v23, %s2870_s28  ;;  %1042 = vrot.lane.b32.xlu1 %v962_v58, %s2868_s27  ;;  %s2875_s27 = smov 112  }
  0x80   : > { %1102 = vrot.lane.b32.xlu0 %v960_v56, %s2869_s19  ;;  %1104 = vrot.lane.b32.xlu1 %v961_v57, %s2869_s19 }
  0x84   : > { %1106 = vrot.lane.b32.xlu0 %v962_v58, %s2869_s19  ;;  %1779 = vrot.lane.b32.xlu1 %v3124_v24, %s2870_s28 }
  0x86   : > { %v561_v28 = vpop.permute.xlu1 %560  ;;  %v557_v29 = vpop.permute.xlu0 %556 }
  0x87   : > { %584 = vst.msk [vmem:[#allocation2 + $0xf] sm:$0xff] %vm582_vm2, %v561_v28  ;;  %v3351_v28 = vld [vmem:[%s4349_s8 + $0x38] sm:$0xff]  }
  0x88   : > { %581 = vst.msk [vmem:[#allocation2 - $0x1] sm:$0xfe] %vm580_vm3, %v557_v29  ;;  %1781 = vrot.lane.b32.xlu0 %v3127_v25, %s2870_s28  ;;  %1783 = vrot.lane.b32.xlu1 %v3142_v26, %s2870_s28  ;;  %v3343_v25 = vld [vmem:[%s4349_s8 + $0x30] sm:$0xff]  }
  0x8a   : > { %v563_v30 = vpop.permute.xlu1 %562  ;;  %v559_v31 = vpop.permute.xlu0 %558 }
  0x8b   : > { %585 = vst.msk [vmem:[#allocation2 + $0x17] sm:$0xff] %vm582_vm2, %v563_v30  ;;  %583 = vst.msk [vmem:[#allocation2 + $0x7] sm:$0xff] %vm582_vm2, %v559_v31 }
  0x8c   : > { %1785 = vrot.lane.b32.xlu0 %v3145_v27, %s2870_s28  ;;  %1787 = vrot.lane.b32.xlu1 %v960_v56, %s2870_s28 }
  0x8e   : > { %v591_v32 = vpop.permute.xlu1 %590  ;;  %v565_v33 = vpop.permute.xlu0 %564 }
  0x8f   : > { %615 = vst.msk [vmem:[#allocation2 - $0x2] sm:$0xfc] %vm614_vm4, %v591_v32 }
  0x90   : > { %586 = vst.msk [vmem:[#allocation2 + $0x1f] sm:$0xff] %vm582_vm2, %v565_v33  ;;  %1789 = vrot.lane.b32.xlu0 %v961_v57, %s2870_s28  ;;  %1791 = vrot.lane.b32.xlu1 %v962_v58, %s2870_s28  ;;  %v3388_v57 = vld [vmem:[%s4344_s3] ss:$0 sm:$0xff]  ;;  %s2585_s28 = sshll.u32 %s4448_s15, 4  ;;  %s2537_s15 = sshll.u32 %s4452_s30, 3 }
  0x91   : > { %s4001_s17 = scalar_lea.vmem %s4355_s14, %s2585_s28  ;;  %s4177_s20 = scalar_lea.vmem %s4354_s13, %s2585_s28 }
  0x92   : > { %v595_v34 = vpop.permute.xlu1 %594  ;;  %v593_v35 = vpop.permute.xlu0 %592  ;;  %s506_s24 = scalar_lea.vmem %s4353_s12, %s2537_s15 }
  0x93   : > { %618 = vst.msk [vmem:[#allocation2 + $0xe] sm:$0xff] %vm616_vm5, %v595_v34  ;;  %617 = vst.msk [vmem:[#allocation2 + $0x6] sm:$0xff] %vm616_vm5, %v593_v35 }
  0x96   : > { %v599_v36 = vpop.permute.xlu1 %598  ;;  %v597_v37 = vpop.permute.xlu0 %596 }
  0x97   : > { %620 = vst.msk [vmem:[#allocation2 + $0x1e] sm:$0xff] %vm616_vm5, %v599_v36  ;;  %619 = vst.msk [vmem:[#allocation2 + $0x16] sm:$0xff] %vm616_vm5, %v597_v37 }
  0x9a   : > { %v569_v38 = vpop.permute.xlu1 %568  ;;  %v567_v39 = vpop.permute.xlu0 %566  ;;  %v624_v40 = vld [vmem:[#allocation2] sm:$0xff]  ;;  %v625_v41 = vld [vmem:[#allocation2 + $0x8] sm:$0xff] }
  0x9b   : > { %588 = vst.msk [vmem:[#allocation2 + $0x2f] sm:$0xff] %vm582_vm2, %v569_v38  ;;  %587 = vst.msk [vmem:[#allocation2 + $0x27] sm:$0xff] %vm582_vm2, %v567_v39  ;;  %v632_v42 = vpack.c.bf16 %v625_v41, %v624_v40 }
  0x9d   : > { %2647 = vmatprep.mubr.msk.bf16.mxu0 %vm530_vm0, %v632_v42 }
  0x9e   : > { %v601_v43 = vpop.permute.xlu1 %600  ;;  %v571_v44 = vpop.permute.xlu0 %570  ;;  %v626_v45 = vld [vmem:[#allocation2 + $0x10] sm:$0xff]  ;;  %v627_v46 = vld [vmem:[#allocation2 + $0x18] sm:$0xff] }
  0x9f   : > { %621 = vst.msk [vmem:[#allocation2 + $0x26] sm:$0xff] %vm616_vm5, %v601_v43  ;;  %v633_v47 = vpack.c.bf16 %v627_v46, %v626_v45 }
  0xa0   : > { %589 = vst.msk [vmem:[#allocation2 + $0x37] sm:$0xff] %vm582_vm2, %v571_v44 }
  0xa1   : > { %2648 = vmatmul.mubr.msk.bf16.vlgmr.msra.gmra.mrb[0].mxu0 %vm530_vm0, %v633_v47 }
  0xa2   : > { %v605_v48 = vpop.permute.xlu1 %604  ;;  %v603_v49 = vpop.permute.xlu0 %602  ;;  %2691 = vmatpush3.bf16.msra.mxu0 %v3282_v9 }
  0xa3   : > { %623 = vst.msk [vmem:[#allocation2 + $0x36] sm:$0xff] %vm616_vm5, %v605_v48  ;;  %622 = vst.msk [vmem:[#allocation2 + $0x2e] sm:$0xff] %vm616_vm5, %v603_v49  ;;  %2692 = vmatprep.subr.bf16.mxu0 %v3293_v12 }
  0xa6   : > { %v628_v50 = vld [vmem:[#allocation2 + $0x20] sm:$0xff]  ;;  %v1013_v63 = vpop.permute.xlu0 %1012  ;;  %v1015_v1 = vpop.permute.xlu1 %1014  ;;  %2693 = vmatpush3.bf16.msra.mxu0 %v3293_v12 }
  0xa7   : > { %1060 = vst.msk [vmem:[#allocation3 - $0x1] sm:$0xfe] %vm580_vm3, %v1013_v63  ;;  %1729 = vst.msk [vmem:[#allocation4 - $0x1] sm:$0xfe] %vm580_vm3, %v1013_v63  ;;  %2694 = vmatprep.subr.bf16.mxu0 %v3304_v15  ;;  %vm873_vm3 = vcmask 1047559  }
  0xa8   : > { %1061 = vst.msk [vmem:[#allocation3 + $0x7] sm:$0xff] %vm582_vm2, %v1015_v1  ;;  %1730 = vst.msk [vmem:[#allocation4 + $0x7] sm:$0xff] %vm582_vm2, %v1015_v1 }
  0xaa   : > { %v629_v51 = vld [vmem:[#allocation2 + $0x28] sm:$0xff]  ;;  %v630_v52 = vld [vmem:[#allocation2 + $0x30] sm:$0xff]  ;;  %v631_v53 = vld [vmem:[#allocation2 + $0x38] sm:$0xff]  ;;  %v1017_v3 = vpop.permute.xlu0 %1016  ;;  %v1019_v4 = vpop.permute.xlu1 %1018  ;;  %2695 = vmatpush3.bf16.msra.mxu0 %v3304_v15 }
  0xab   : > { %v634_v54 = vpack.c.bf16 %v629_v51, %v628_v50  ;;  %v635_v55 = vpack.c.bf16 %v631_v53, %v630_v52  ;;  %1062 = vst.msk [vmem:[#allocation3 + $0xf] sm:$0xff] %vm582_vm2, %v1017_v3  ;;  %1731 = vst.msk [vmem:[#allocation4 + $0xf] sm:$0xff] %vm582_vm2, %v1017_v3  ;;  %2696 = vmatprep.subr.bf16.mxu0 %v3310_v18 }
  0xac   : > { %1063 = vst.msk [vmem:[#allocation3 + $0x17] sm:$0xff] %vm582_vm2, %v1019_v4  ;;  %1732 = vst.msk [vmem:[#allocation4 + $0x17] sm:$0xff] %vm582_vm2, %v1019_v4 }
  0xad   : > { %2651 = vmatprep.mubr.msk.bf16.mxu0 %vm530_vm0, %v634_v54  ;;  %v776_v54 = vlaneseq }
  0xae   : > { %2652 = vmatmul.mubr.msk.bf16.gmra.mrb[4].mxu0 %vm530_vm0, %v635_v55  ;;  %v1021_v5 = vpop.permute.xlu0 %1020  ;;  %v1077_v6 = vpop.permute.xlu1 %1076 }
  0xaf   : > { %1064 = vst.msk [vmem:[#allocation3 + $0x1f] sm:$0xff] %vm582_vm2, %v1021_v5  ;;  %1733 = vst.msk [vmem:[#allocation4 + $0x1f] sm:$0xff] %vm582_vm2, %v1021_v5  ;;  %2697 = vmatpush3.bf16.msra.mxu0 %v3310_v18  ;;  %v3390_v58 = vshrl.u32 %v776_v54, 7 }
  0xb0   : > { %1124 = vst.msk [vmem:[#allocation3 - $0x2] sm:$0xfc] %vm614_vm4, %v1077_v6  ;;  %1745 = vst.msk [vmem:[#allocation4 - $0x2] sm:$0xfc] %vm614_vm4, %v1077_v6  ;;  %2698 = vmatprep.subr.bf16.mxu0 %v3321_v19  ;;  %vm2254_vm4 = vcmask 258048  }
  0xb1   : > { %vm778_vm9 = vcmp.lt.s32.totalorder %v3390_v58, 4 }
  0xb2   : > { %v1079_v7 = vpop.permute.xlu0 %1078  ;;  %v1081_v8 = vpop.permute.xlu1 %1080 }
  0xb3   : > { %1125 = vst.msk [vmem:[#allocation3 + $0x6] sm:$0xff] %vm616_vm5, %v1079_v7  ;;  %1746 = vst.msk [vmem:[#allocation4 + $0x6] sm:$0xff] %vm616_vm5, %v1079_v7  ;;  %2699 = vmatpush3.bf16.msra.mxu0 %v3321_v19 }
  0xb4   : > { %1126 = vst.msk [vmem:[#allocation3 + $0xe] sm:$0xff] %vm616_vm5, %v1081_v8  ;;  %1747 = vst.msk [vmem:[#allocation4 + $0xe] sm:$0xff] %vm616_vm5, %v1081_v8  ;;  %2700 = vmatprep.subr.bf16.mxu0 %v3332_v22 }
  0xb6   : > { %v1083_v10 = vpop.permute.xlu0 %1082  ;;  %v1085_v11 = vpop.permute.xlu1 %1084 }
  0xb7   : > { %1127 = vst.msk [vmem:[#allocation3 + $0x16] sm:$0xff] %vm616_vm5, %v1083_v10  ;;  %1748 = vst.msk [vmem:[#allocation4 + $0x16] sm:$0xff] %vm616_vm5, %v1083_v10  ;;  %2701 = vmatpush3.bf16.msra.mxu0 %v3332_v22 }
  0xb8   : > { %1128 = vst.msk [vmem:[#allocation3 + $0x1e] sm:$0xff] %vm616_vm5, %v1085_v11  ;;  %1749 = vst.msk [vmem:[#allocation4 + $0x1e] sm:$0xff] %vm616_vm5, %v1085_v11  ;;  %2702 = vmatprep.subr.bf16.mxu0 %v3343_v25 }
  0xba   : > { %v1023_v13 = vpop.permute.xlu0 %1022  ;;  %v1025_v14 = vpop.permute.xlu1 %1024 }
  0xbb   : > { %1065 = vst.msk [vmem:[#allocation3 + $0x27] sm:$0xff] %vm582_vm2, %v1023_v13  ;;  %1734 = vst.msk [vmem:[#allocation4 + $0x27] sm:$0xff] %vm582_vm2, %v1023_v13  ;;  %2703 = vmatpush3.bf16.msra.mxu0 %v3343_v25 }
  0xbc   : > { %1066 = vst.msk [vmem:[#allocation3 + $0x2f] sm:$0xff] %vm582_vm2, %v1025_v14  ;;  %1735 = vst.msk [vmem:[#allocation4 + $0x2f] sm:$0xff] %vm582_vm2, %v1025_v14  ;;  %2704 = vmatprep.subr.bf16.mxu0 %v3351_v28 }
  0xbe   : > { %v1027_v16 = vpop.permute.xlu0 %1026  ;;  %v1029_v17 = vpop.permute.xlu1 %1028 }
  0xbf   : > { %1067 = vst.msk [vmem:[#allocation3 + $0x37] sm:$0xff] %vm582_vm2, %v1027_v16  ;;  %1736 = vst.msk [vmem:[#allocation4 + $0x37] sm:$0xff] %vm582_vm2, %v1027_v16  ;;  %2705 = vmatpush3.bf16.msra.mxu0 %v3351_v28 }
  0xc0   : > { %1068 = vst.msk [vmem:[#allocation3 + $0x3f] sm:$0xff] %vm582_vm2, %v1029_v17  ;;  %1737 = vst.msk [vmem:[#allocation4 + $0x3f] sm:$0xff] %vm582_vm2, %v1029_v17 }
  0xc2   : > { %v1087_v20 = vpop.permute.xlu0 %1086  ;;  %v1089_v21 = vpop.permute.xlu1 %1088 }
  0xc3   : > { %1129 = vst.msk [vmem:[#allocation3 + $0x26] sm:$0xff] %vm616_vm5, %v1087_v20  ;;  %1750 = vst.msk [vmem:[#allocation4 + $0x26] sm:$0xff] %vm616_vm5, %v1087_v20 }
  0xc4   : > { %1130 = vst.msk [vmem:[#allocation3 + $0x2e] sm:$0xff] %vm616_vm5, %v1089_v21  ;;  %1751 = vst.msk [vmem:[#allocation4 + $0x2e] sm:$0xff] %vm616_vm5, %v1089_v21 }
  0xc6   : > { %v1091_v23 = vpop.permute.xlu0 %1090  ;;  %v1093_v24 = vpop.permute.xlu1 %1092 }
  0xc7   : > { %1131 = vst.msk [vmem:[#allocation3 + $0x36] sm:$0xff] %vm616_vm5, %v1091_v23  ;;  %1752 = vst.msk [vmem:[#allocation4 + $0x36] sm:$0xff] %vm616_vm5, %v1091_v23 }
  0xc8   : > { %1132 = vst.msk [vmem:[#allocation3 + $0x3e] sm:$0xff] %vm616_vm5, %v1093_v24  ;;  %1753 = vst.msk [vmem:[#allocation4 + $0x3e] sm:$0xff] %vm616_vm5, %v1093_v24 }
  0xca   : > { %v1762_v26 = vpop.permute.xlu0 %1761  ;;  %v1764_v27 = vpop.permute.xlu1 %1763 }
  0xcb   : > { %1810 = vst.msk [vmem:[#allocation4 - $0x3] sm:$0xf8] %vm1809_vm7, %v1762_v26  ;;  %vm2389_vm7 = vcmask 23552  }
  0xcc   : > { %1812 = vst.msk [vmem:[#allocation4 + $0x5] sm:$0xff] %vm1811_vm8, %v1764_v27 }
  0xce   : > { %v1766_v29 = vpop.permute.xlu0 %1765  ;;  %v1031_v30 = vpop.permute.xlu1 %1030 }
  0xcf   : > { %1813 = vst.msk [vmem:[#allocation4 + $0xd] sm:$0xff] %vm1811_vm8, %v1766_v29 }
  0xd0   : > { %1069 = vst.msk [vmem:[#allocation3 + $0x47] sm:$0xff] %vm582_vm2, %v1031_v30  ;;  %1738 = vst.msk [vmem:[#allocation4 + $0x47] sm:$0xff] %vm582_vm2, %v1031_v30 }
  0xd2   : > { %v1033_v31 = vpop.permute.xlu0 %1032  ;;  %v1768_v32 = vpop.permute.xlu1 %1767 }
  0xd3   : > { %1070 = vst.msk [vmem:[#allocation3 + $0x4f] sm:$0xff] %vm582_vm2, %v1033_v31  ;;  %1739 = vst.msk [vmem:[#allocation4 + $0x4f] sm:$0xff] %vm582_vm2, %v1033_v31  ;;  %v1827_v33 = vld [vmem:[#allocation4] sm:$0xff] }
  0xd4   : > { %1814 = vst.msk [vmem:[#allocation4 + $0x15] sm:$0xff] %vm1811_vm8, %v1768_v32 }
  0xd6   : > { %v1770_v34 = vpop.permute.xlu0 %1769  ;;  %v1035_v35 = vpop.permute.xlu1 %1034  ;;  %v1828_v36 = vld [vmem:[#allocation4 + $0x8] sm:$0xff] }
  0xd7   : > { %1815 = vst.msk [vmem:[#allocation4 + $0x1d] sm:$0xff] %vm1811_vm8, %v1770_v34  ;;  %v1843_v37 = vpack.c.bf16 %v1828_v36, %v1827_v33 }
  0xd8   : > { %1071 = vst.msk [vmem:[#allocation3 + $0x57] sm:$0xff] %vm582_vm2, %v1035_v35  ;;  %1740 = vst.msk [vmem:[#allocation4 + $0x57] sm:$0xff] %vm582_vm2, %v1035_v35 }
  0xd9   : > { %2706 = vmatprep.mubr.bf16.mxu0 %v1843_v37 }
  0xda   : > { %v1037_v38 = vpop.permute.xlu0 %1036  ;;  %v1095_v39 = vpop.permute.xlu1 %1094 }
  0xdb   : > { %1072 = vst.msk [vmem:[#allocation3 + $0x5f] sm:$0xff] %vm582_vm2, %v1037_v38  ;;  %1741 = vst.msk [vmem:[#allocation4 + $0x5f] sm:$0xff] %vm582_vm2, %v1037_v38  ;;  %v1829_v40 = vld [vmem:[#allocation4 + $0x10] sm:$0xff] }
  0xdc   : > { %1133 = vst.msk [vmem:[#allocation3 + $0x46] sm:$0xff] %vm616_vm5, %v1095_v39  ;;  %1754 = vst.msk [vmem:[#allocation4 + $0x46] sm:$0xff] %vm616_vm5, %v1095_v39 }
  0xde   : > { %v1097_v41 = vpop.permute.xlu0 %1096  ;;  %v1099_v42 = vpop.permute.xlu1 %1098  ;;  %v1830_v43 = vld [vmem:[#allocation4 + $0x18] sm:$0xff] }
  0xdf   : > { %1134 = vst.msk [vmem:[#allocation3 + $0x4e] sm:$0xff] %vm616_vm5, %v1097_v41  ;;  %1755 = vst.msk [vmem:[#allocation4 + $0x4e] sm:$0xff] %vm616_vm5, %v1097_v41  ;;  %v1844_v44 = vpack.c.bf16 %v1830_v43, %v1829_v40 }
  0xe0   : > { %1135 = vst.msk [vmem:[#allocation3 + $0x56] sm:$0xff] %vm616_vm5, %v1099_v42  ;;  %1756 = vst.msk [vmem:[#allocation4 + $0x56] sm:$0xff] %vm616_vm5, %v1099_v42 }
  0xe1   : > { %2707 = vmatmul.mubr.bf16.vlgmr.msra.gmra.mrb[8].mxu0 %v1844_v44 }
  0xe2   : > { %v1101_v45 = vpop.permute.xlu0 %1100  ;;  %v1772_v46 = vpop.permute.xlu1 %1771 }
  0xe3   : > { %1136 = vst.msk [vmem:[#allocation3 + $0x5e] sm:$0xff] %vm616_vm5, %v1101_v45  ;;  %1757 = vst.msk [vmem:[#allocation4 + $0x5e] sm:$0xff] %vm616_vm5, %v1101_v45 }
  0xe4   : > { %1816 = vst.msk [vmem:[#allocation4 + $0x25] sm:$0xff] %vm1811_vm8, %v1772_v46 }
  0xe6   : > { %v1774_v47 = vpop.permute.xlu0 %1773  ;;  %v1039_v51 = vpop.permute.xlu1 %1038 }
  0xe7   : > { %1817 = vst.msk [vmem:[#allocation4 + $0x2d] sm:$0xff] %vm1811_vm8, %v1774_v47 }
  0xe8   : > { %1073 = vst.msk [vmem:[#allocation3 + $0x67] sm:$0xff] %vm582_vm2, %v1039_v51  ;;  %1742 = vst.msk [vmem:[#allocation4 + $0x67] sm:$0xff] %vm582_vm2, %v1039_v51 }
  0xea   : > { %v1041_v52 = vpop.permute.xlu0 %1040  ;;  %v1776_v53 = vpop.permute.xlu1 %1775 }
  0xeb   : > { %v1831_v48 = vld [vmem:[#allocation4 + $0x20] sm:$0xff]  ;;  %1074 = vst.msk [vmem:[#allocation3 + $0x6f] sm:$0xff] %vm582_vm2, %v1041_v52  ;;  %1743 = vst.msk [vmem:[#allocation4 + $0x6f] sm:$0xff] %vm582_vm2, %v1041_v52 }
  0xec   : > { %1818 = vst.msk [vmem:[#allocation4 + $0x35] sm:$0xff] %vm1811_vm8, %v1776_v53 }
  0xee   : > { %v1832_v49 = vld [vmem:[#allocation4 + $0x28] sm:$0xff]  ;;  %v1778_v55 = vpop.permute.xlu0 %1777  ;;  %v1043_v56 = vpop.permute.xlu1 %1042 }
  0xef   : > { %v1845_v50 = vpack.c.bf16 %v1832_v49, %v1831_v48  ;;  %1819 = vst.msk [vmem:[#allocation4 + $0x3d] sm:$0xff] %vm1811_vm8, %v1778_v55 }
  0xf0   : > { %1075 = vst.msk [vmem:[#allocation3 + $0x77] sm:$0xff] %vm582_vm2, %v1043_v56  ;;  %1744 = vst.msk [vmem:[#allocation4 + $0x77] sm:$0xff] %vm582_vm2, %v1043_v56  ;;  %vm871_vm2 = vcmask 1046534  }
  0xf1   : > { %2710 = vmatprep.mubr.bf16.mxu0 %v1845_v50 }
  0xf2   : > { %v1103_v59 = vpop.permute.xlu0 %1102  ;;  %v1105_v60 = vpop.permute.xlu1 %1104 }
  0xf3   : > { %1137 = vst.msk [vmem:[#allocation3 + $0x66] sm:$0xff] %vm616_vm5, %v1103_v59  ;;  %1758 = vst.msk [vmem:[#allocation4 + $0x66] sm:$0xff] %vm616_vm5, %v1103_v59  ;;  %v1833_v63 = vld [vmem:[#allocation4 + $0x30] sm:$0xff] }
  0xf4   : > { %1138 = vst.msk [vmem:[#allocation3 + $0x6e] sm:$0xff] %vm616_vm5, %v1105_v60  ;;  %1759 = vst.msk [vmem:[#allocation4 + $0x6e] sm:$0xff] %vm616_vm5, %v1105_v60 }
  0xf6   : > { %v1107_v6 = vpop.permute.xlu0 %1106  ;;  %v1834_v7 = vld [vmem:[#allocation4 + $0x38] sm:$0xff]  ;;  %v1780_v13 = vpop.permute.xlu1 %1779 }
  0xf7   : > { %1139 = vst.msk [vmem:[#allocation3 + $0x76] sm:$0xff] %vm616_vm5, %v1107_v6  ;;  %1760 = vst.msk [vmem:[#allocation4 + $0x76] sm:$0xff] %vm616_vm5, %v1107_v6  ;;  %v1846_v14 = vpack.c.bf16 %v1834_v7, %v1833_v63 }
  0xf8   : > { %1820 = vst.msk [vmem:[#allocation4 + $0x45] sm:$0xff] %vm1811_vm8, %v1780_v13 }
  0xf9   : > { %2711 = vmatmul.mubr.bf16.gmra.mrb[12].mxu0 %v1846_v14 }
  0xfa   : > { %v1782_v27 = vpop.permute.xlu0 %1781  ;;  %v1784_v32 = vpop.permute.xlu1 %1783 }
  0xfb   : > { %1821 = vst.msk [vmem:[#allocation4 + $0x4d] sm:$0xff] %vm1811_vm8, %v1782_v27  ;;  %1822 = vst.msk [vmem:[#allocation4 + $0x55] sm:$0xff] %vm1811_vm8, %v1784_v32 }
  0xfe   : > { %v1786_v41 = vpop.permute.xlu0 %1785  ;;  %v1788_v44 = vpop.permute.xlu1 %1787 }
  0xff   : > { %1823 = vst.msk [vmem:[#allocation4 + $0x5d] sm:$0xff] %vm1811_vm8, %v1786_v41  ;;  %1824 = vst.msk [vmem:[#allocation4 + $0x65] sm:$0xff] %vm1811_vm8, %v1788_v44  ;;  %v1835_v47 = vld [vmem:[#allocation4 + $0x40] sm:$0xff] }
 0x102   : > { %v1790_v55 = vpop.permute.xlu0 %1789  ;;  %v1836_v56 = vld [vmem:[#allocation4 + $0x48] sm:$0xff] }
 0x103   : > { %1825 = vst.msk [vmem:[#allocation4 + $0x6d] sm:$0xff] %vm1811_vm8, %v1790_v55 }
 0x174   : > { %v2649_v61 = vpop.f32.mrb[0].mxu0 }
 0x175   : > { %v746_v1 = vadd.f32 %v2649_v61, %v3388_v57  ;;  %v737_v3 = vpop.f32.mrb[1].mxu0 }
 0x176   : > { %v738_v4 = vadd.f32 %v3388_v57, %v737_v3  ;;  %v2650_v5 = vpop.f32.mrb[2].mxu0  ;;  %v1847_v3 = vpack.c.bf16 %v1836_v56, %v1835_v47 }
 0x177   : > { %v770_v8 = vmax.f32 %v746_v1, 0.0  ;;  %v749_v10 = vadd.f32 %v2650_v5, %v3388_v57  ;;  %v740_v11 = vpop.f32.mrb[3].mxu0  ;;  %v1792_v1 = vpop.permute.xlu1 %1791 }
 0x178   : > { %v768_v16 = vmax.f32 %v738_v4, 0.0  ;;  %v741_v17 = vadd.f32 %v3388_v57, %v740_v11  ;;  %1826 = vst.msk [vmem:[#allocation4 + $0x75] sm:$0xff] %vm1811_vm8, %v1792_v1  ;;  %2714 = vmatprep.mubr.bf16.mxu0 %v1847_v3  ;;  %v1140_v1 = vld [vmem:[#allocation3] sm:$0xff]  ;;  %v1141_v3 = vld [vmem:[#allocation3 + $0x8] sm:$0xff] }
 0x179   : > { %v781_v20 = vsel %vm778_vm9, %v770_v8, -inf  ;;  %v771_v21 = vmax.f32 %v749_v10, 0.0 }
 0x17a   : > { %v802_v23 = vsel %vm787_vm10, %v781_v20, -inf  ;;  %v779_v24 = vsel %vm778_vm9, %v768_v16, -inf  ;;  %v769_v26 = vmax.f32 %v741_v17, 0.0 }
 0x17b   : > { %v803_v29 = vrot.slane %v802_v23, 4  ;;  %v788_v30 = vsel %vm787_vm10, %v779_v24, -inf  ;;  %v782_v31 = vsel %vm778_vm9, %v771_v21, -inf  ;;  %v1838_v24 = vld [vmem:[#allocation4 + $0x58] sm:$0xff] }
 0x17c   : > { %v789_v33 = vrot.slane %v788_v30, 4  ;;  %v809_v34 = vsel %vm787_vm10, %v782_v31, -inf  ;;  %v780_v35 = vsel %vm778_vm9, %v769_v26, -inf }
 0x17d   : > { %v804_v36 = vmax.f32 %v802_v23, %v803_v29  ;;  %v810_v37 = vrot.slane %v809_v34, 4  ;;  %v795_v38 = vsel %vm787_vm10, %v780_v35, -inf  ;;  %v1837_v23 = vld [vmem:[#allocation4 + $0x50] sm:$0xff] }
 0x17e   : > { %v790_v39 = vmax.f32 %v788_v30, %v789_v33  ;;  %v796_v40 = vrot.slane %v795_v38, 4 }
 0x17f   : > { %v805_v42 = vrot.slane %v804_v36, 2  ;;  %v811_v43 = vmax.f32 %v809_v34, %v810_v37  ;;  %v1848_v37 = vpack.c.bf16 %v1838_v24, %v1837_v23  ;;  %v1143_v23 = vld [vmem:[#allocation3 + $0x18] sm:$0xff]  ;;  %v1144_v24 = vld [vmem:[#allocation3 + $0x20] sm:$0xff] }
 0x180   : > { %v791_v45 = vrot.slane %v790_v39, 2  ;;  %v797_v46 = vmax.f32 %v795_v38, %v796_v40 }
 0x181   : > { %v806_v48 = vmax.f32 %v804_v36, %v805_v42  ;;  %v812_v49 = vrot.slane %v811_v43, 2  ;;  %v2653_v50 = vpop.f32.mrb[4].mxu0  ;;  %2715 = vmatmul.mubr.bf16.gmra.mrb[16].mxu0 %v1848_v37  ;;  %v1153_v37 = vld [vmem:[#allocation3 + $0x68] sm:$0xff] }
 0x182   : > { %v792_v51 = vmax.f32 %v790_v39, %v791_v45  ;;  %v798_v52 = vrot.slane %v797_v46, 2  ;;  %v762_v53 = vadd.f32 %v2653_v50, %v3388_v57  ;;  %v753_v54 = vpop.f32.mrb[5].mxu0 }
 0x183   : > { %v807_v59 = vrot.slane %v806_v48, 1  ;;  %v813_v60 = vmax.f32 %v811_v43, %v812_v49  ;;  %v754_v61 = vadd.f32 %v3388_v57, %v753_v54  ;;  %v2654_v63 = vpop.f32.mrb[6].mxu0 }
 0x184   : > { %v793_v4 = vrot.slane %v792_v51, 1  ;;  %v799_v5 = vmax.f32 %v797_v46, %v798_v52  ;;  %v774_v6 = vmax.f32 %v762_v53, 0.0  ;;  %v765_v7 = vadd.f32 %v2654_v63, %v3388_v57  ;;  %v756_v8 = vpop.f32.mrb[7].mxu0 }
 0x185   : > { %v808_v10 = vmax.f32 %v806_v48, %v807_v59  ;;  %v814_v11 = vrot.slane %v813_v60, 1  ;;  %v772_v13 = vmax.f32 %v754_v61, 0.0  ;;  %v757_v14 = vadd.f32 %v3388_v57, %v756_v8 }
 0x186   : > { %v794_v16 = vmax.f32 %v792_v51, %v793_v4  ;;  %v800_v17 = vrot.slane %v799_v5, 1  ;;  %v785_v20 = vsel %vm778_vm9, %v774_v6, -inf  ;;  %v775_v21 = vmax.f32 %v765_v7, 0.0 }
 0x187   : > { %v815_v26 = vmax.f32 %v813_v60, %v814_v11  ;;  %v830_v27 = vsel %vm787_vm10, %v785_v20, -inf  ;;  %v783_v29 = vsel %vm778_vm9, %v772_v13, -inf  ;;  %v773_v30 = vmax.f32 %v757_v14, 0.0  ;;  %v2782_v13 = vld [vmem:[%s4347_s6 + $0x8] sm:$0xff]   ;;  %v2785_v20 = vld [vmem:[%s4347_s6 + $0x20] sm:$0xff]  }
 0x188   : > { %v801_v31 = vmax.f32 %v799_v5, %v800_v17  ;;  %v831_v32 = vrot.slane %v830_v27, 4  ;;  %v816_v57 = vsel %vm787_vm10, %v783_v29, -inf  ;;  %v786_v33 = vsel %vm778_vm9, %v775_v21, -inf  ;;  %v2784_v17 = vld [vmem:[%s4347_s6 + $0x18] sm:$0xff]   ;;  %v1142_v21 = vld [vmem:[#allocation3 + $0x10] sm:$0xff] }
 0x189   : > { %v817_v34 = vrot.slane %v816_v57, 4  ;;  %v837_v35 = vsel %vm787_vm10, %v786_v33, -inf  ;;  %v784_v36 = vsel %vm778_vm9, %v773_v30, -inf  ;;  %v1146_v30 = vld [vmem:[#allocation3 + $0x30] sm:$0xff] }
 0x18a   : > { %v862_v38 = vsel %vm861_vm11, %v801_v31, %v794_v16  ;;  %v832_v39 = vmax.f32 %v830_v27, %v831_v32  ;;  %v838_v40 = vrot.slane %v837_v35, 4  ;;  %v823_v41 = vsel %vm787_vm10, %v784_v36, -inf  ;;  %v2783_v16 = vld [vmem:[%s4347_s6 + $0x10] sm:$0xff]   ;;  %v1147_v31 = vld [vmem:[#allocation3 + $0x38] sm:$0xff]  ;;  %v1148_v32 = vld [vmem:[#allocation3 + $0x40] sm:$0xff] }
 0x18b   : > { %v818_v42 = vmax.f32 %v816_v57, %v817_v34  ;;  %v824_v43 = vrot.slane %v823_v41, 4  ;;  %v864_v44 = vsel %vm863_vm12, %v808_v10, %v862_v38  ;;  %v1156_v10 = vpack.c.bf16 %v1141_v3, %v1140_v1  ;;  %v1149_v57 = vld [vmem:[#allocation3 + $0x48] sm:$0xff]  ;;  %v1151_v36 = vld [vmem:[#allocation3 + $0x58] sm:$0xff] }
 0x18c   : > { %v833_v45 = vrot.slane %v832_v39, 2  ;;  %v839_v46 = vmax.f32 %v837_v35, %v838_v40  ;;  %v866_v47 = vsel %vm865_vm13, %v815_v26, %v864_v44  ;;  %v1145_v26 = vld [vmem:[#allocation3 + $0x28] sm:$0xff]  ;;  %v1157_v27 = vpack.c.bf16 %v1143_v23, %v1142_v21  ;;  %v1150_v35 = vld [vmem:[#allocation3 + $0x50] sm:$0xff]  ;;  %v1839_v40 = vld [vmem:[#allocation4 + $0x60] sm:$0xff] }
 0x18d   : > { %v819_v48 = vrot.slane %v818_v42, 2  ;;  %v825_v49 = vmax.f32 %v823_v41, %v824_v43  ;;  %v1158_v29 = vpack.c.bf16 %v1145_v26, %v1144_v24  ;;  %v1159_v33 = vpack.c.bf16 %v1147_v31, %v1146_v30  ;;  %v1840_v41 = vld [vmem:[#allocation4 + $0x68] sm:$0xff] }
 0x18e   : > { %v834_v50 = vmax.f32 %v832_v39, %v833_v45  ;;  %v840_v51 = vrot.slane %v839_v46, 2  ;;  %v1160_v34 = vpack.c.bf16 %v1149_v57, %v1148_v32  ;;  %v1161_v38 = vpack.c.bf16 %v1151_v36, %v1150_v35 }
 0x18f   : > { %v820_v52 = vmax.f32 %v818_v42, %v819_v48  ;;  %v826_v53 = vrot.slane %v825_v49, 2  ;;  %v1849_v43 = vpack.c.bf16 %v1840_v41, %v1839_v40  ;;  %v1408_v1 = vsub.s32 0, %v3390_v58 }
 0x190   : > { %v841_v54 = vmax.f32 %v839_v46, %v840_v51  ;;  %v835_v59 = vrot.slane %v834_v50, 1 }
 0x191   : > { %v821_v55 = vrot.slane %v820_v52, 1  ;;  %v827_v56 = vmax.f32 %v825_v49, %v826_v53 }
 0x192   : > { %v842_v61 = vrot.slane %v841_v54, 1  ;;  %v836_v6 = vmax.f32 %v834_v50, %v835_v59  ;;  %v2873_v50 = vmov 1966171168  }
 0x193   : > { %v822_v60 = vmax.f32 %v820_v52, %v821_v55  ;;  %v828_v63 = vrot.slane %v827_v56, 1  ;;  %v1359_v51 = vunpack.c.l.s4 %v2873_v50  ;;  %v3563_v50 = vld [vmem:[%s4350_s9] ss:$0 sm:$0xff] }
 0x194   : > { %v843_v7 = vmax.f32 %v841_v54, %v842_v61  ;;  %v2555_v54 = vld [vmem:[%s4346_s5] ss:$0 sm:$0xff] }
 0x195   : > { %v829_v4 = vmax.f32 %v827_v56, %v828_v63  ;;  %v868_v5 = vsel %vm867_vm14, %v822_v60, %v866_v47  ;;  %v1360_v52 = vunpack.c.0.s8 %v1359_v51 }
 0x197   : > { %v870_v8 = vsel %vm869_vm15, %v829_v4, %v868_v5  ;;  %v1363_v56 = vsub.s32 %v1360_v52, %v3390_v58 }
 0x198   : > { %v872_v11 = vsel %vm871_vm2, %v836_v6, %v870_v8 }
 0x199   : > { %v874_v14 = vsel %vm873_vm3, %v843_v7, %v872_v11 }
 0x19a   : > { %2660 = vmatmul.mubr.msk.f32.vlgmr.msra.gmra.mrb[0].mxu1 %vm787_vm10, %v874_v14 }
 0x19b   : > { %2663 = vmatpush3.bf16.msra.mxu1 %v3260_v2  ;;  %2674 = vmatprep.mubr.msk.bf16.mxu1 %vm530_vm0, %v1156_v10  ;;  %v2787_v2 = vld [vmem:[%s4347_s6 + $0x28] sm:$0xff]  }
 0x19c   : > { %2664 = vmatprep.subr.bf16.mxu1 %v2782_v13 }
 0x19f   : > { %2665 = vmatpush3.bf16.msra.mxu1 %v2782_v13 }
 0x1a0   : > { %2666 = vmatprep.subr.bf16.mxu1 %v2783_v16 }
 0x1a3   : > { %2667 = vmatpush3.bf16.msra.mxu1 %v2783_v16 }
 0x1a4   : > { %2668 = vmatprep.subr.bf16.mxu1 %v2784_v17 }
 0x1a7   : > { %2669 = vmatpush3.bf16.msra.mxu1 %v2784_v17 }
 0x1a8   : > { %2670 = vmatprep.subr.bf16.mxu1 %v2785_v20 }
 0x1ab   : > { %2671 = vmatpush3.bf16.msra.mxu1 %v2785_v20 }
 0x1ac   : > { %2672 = vmatprep.subr.bf16.mxu1 %v2787_v2 }
 0x1af   : > { %2673 = vmatpush3.bf16.msra.mxu1 %v2787_v2 }
 0x1b0   : > { %2742 = vmatprep.subr.bf16.mxu1 %v3282_v9 }
 0x1b2   : > { %2675 = vmatmul.mubr.msk.bf16.vlgmr.msra.gmra.mrb[4].mxu1 %vm530_vm0, %v1157_v27 }
 0x1b3   : > { %2678 = vmatprep.mubr.msk.bf16.mxu1 %vm530_vm0, %v1158_v29  ;;  %2750 = vmatpush3.bf16.msra.mxu1 %v3282_v9  ;;  %v1152_v9 = vld [vmem:[#allocation3 + $0x60] sm:$0xff] }
 0x1b4   : > { %2743 = vmatprep.subr.bf16.mxu1 %v3293_v12  ;;  %v1162_v39 = vpack.c.bf16 %v1153_v37, %v1152_v9 }
 0x1b7   : > { %2751 = vmatpush3.bf16.msra.mxu1 %v3293_v12  ;;  %v1154_v12 = vld [vmem:[#allocation3 + $0x70] sm:$0xff] }
 0x1b8   : > { %2744 = vmatprep.subr.bf16.mxu1 %v3304_v15 }
 0x1ba   : > { %2679 = vmatmul.mubr.msk.bf16.gmra.mrb[8].mxu1 %vm530_vm0, %v1159_v33 }
 0x1bb   : > { %2682 = vmatprep.mubr.msk.bf16.mxu1 %vm530_vm0, %v1160_v34  ;;  %2752 = vmatpush3.bf16.msra.mxu1 %v3304_v15  ;;  %v1155_v15 = vld [vmem:[#allocation3 + $0x78] sm:$0xff] }
 0x1bc   : > { %2745 = vmatprep.subr.bf16.mxu1 %v3310_v18  ;;  %v1163_v42 = vpack.c.bf16 %v1155_v15, %v1154_v12 }
 0x1bf   : > { %2753 = vmatpush3.bf16.msra.mxu1 %v3310_v18  ;;  %v1841_v18 = vld [vmem:[#allocation4 + $0x70] sm:$0xff] }
 0x1c0   : > { %2746 = vmatprep.subr.bf16.mxu1 %v3321_v19 }
 0x1c2   : > { %2683 = vmatmul.mubr.msk.bf16.gmra.mrb[12].mxu1 %vm530_vm0, %v1161_v38 }
 0x1c3   : > { %2754 = vmatpush3.bf16.msra.mxu1 %v3321_v19  ;;  %2686 = vmatprep.mubr.msk.bf16.mxu1 %vm530_vm0, %v1162_v39  ;;  %v1842_v19 = vld [vmem:[#allocation4 + $0x78] sm:$0xff] }
 0x1c4   : > { %2747 = vmatprep.subr.bf16.mxu1 %v3332_v22  ;;  %v1850_v44 = vpack.c.bf16 %v1842_v19, %v1841_v18 }
 0x1c7   : > { %2755 = vmatpush3.bf16.msra.mxu1 %v3332_v22  ;;  %v3489_v22 = vpop.f32.mrb[8].mxu0 }
 0x1c8   : > { %2748 = vmatprep.subr.bf16.mxu1 %v3343_v25  ;;  %v3491_v45 = vpop.f32.mrb[9].mxu0 }
 0x1c9   : > { %v3493_v46 = vpop.f32.mrb[10].mxu0 }
 0x1ca   : > { %2687 = vmatmul.mubr.msk.bf16.gmra.mrb[16].mxu1 %vm530_vm0, %v1163_v42 }
 0x1cb   : > { %2756 = vmatpush3.bf16.msra.mxu1 %v3343_v25  ;;  %2718 = vmatprep.mubr.bf16.mxu1 %v1849_v43  ;;  %v3495_v25 = vpop.f32.mrb[11].mxu0 }
 0x1cc   : > { %2749 = vmatprep.subr.bf16.mxu1 %v3351_v28  ;;  %v3497_v47 = vpop.f32.mrb[12].mxu0  ;;  %v3567_v51 = vadd.f32 %v3563_v50, %v3495_v25  ;;  %v3587_v25 = vadd.f32 %v3489_v22, %v3563_v50 }
 0x1cd   : > { %v3499_v48 = vpop.f32.mrb[13].mxu0 }
 0x1ce   : > { %v3501_v49 = vpop.f32.mrb[14].mxu0  ;;  %2795 = vtanh.f32 %v3587_v25 }
 0x1cf   : > { %2757 = vmatpush3.bf16.msra.mxu1 %v3351_v28  ;;  %v3503_v28 = vpop.f32.mrb[15].mxu0  ;;  %2797 = vtanh.f32 %v3567_v51 }
 0x1d0   : > { %2736 = vmatprep.subr.bf16.mxu1 %v4369_v62 }
 0x1d2   : > { %2719 = vmatmul.mubr.bf16.vlgmr.msra.gmra.mrb[20].mxu1 %v1850_v44 }
 0x1d3   : > { %2730 = vmatprep.mubr.msk.f32.mxu1 %vm2872_vm6, %v2867_v0  ;;  %vm1681_vm6 = vcmask 259072  }
 0x254   : > { %v3505_v0 = vpop.f32.mrb[16].mxu0 }
 0x255   : > { %v3507_v53 = vpop.f32.mrb[17].mxu0 }
 0x256   : > { %v3512_v55 = vpop.f32.mrb[18].mxu0 }
 0x257   : > { %v3515_v59 = vpop.f32.mrb[19].mxu0 }
 0x26d   : > { %v943_v60 = vpop.f32.mrb[0].mxu1 }
 0x26e   : > { %v944_v61 = vadd.f32 %v2555_v54, %v943_v60  ;;  %v2661_v63 = vpop.f32.mrb[1].mxu1  ;;  %v3573_v54 = vadd.f32 %v3563_v50, %v3491_v45 }
 0x270   : > { %v1357_v3 = vcombine.high %v944_v61, %v944_v61  ;;  %v1364_v4 = vrot.slane %v944_v61, %v1363_v56  ;;  %2799 = vtanh.f32 %v3573_v54 }
 0x272   : > { %v1371_v5 = vrot.slane %v1357_v3, %v1363_v56  ;;  %v1372_v6 = vcombine.high %v1364_v4, %v1364_v4  ;;  %v1380_v7 = vrot.slane %v1364_v4, %v1363_v56  ;;  %v3602_v3 = vadd.f32 %v3563_v50, %v3503_v28 }
 0x274   : > { %v1409_v8 = vrot.slane %v1380_v7, %v1408_v1  ;;  %v1394_v10 = vrot.slane %v1372_v6, %v1363_v56  ;;  %v1402_v11 = vcombine.high %v1380_v7, %v1380_v7  ;;  %v1373_v13 = vcombine.high %v1371_v5, %v1371_v5 }
 0x275   : > { %v1387_v20 = vrot.slane %v1371_v5, %v1363_v56  ;;  %v3614_v5 = vadd.f32 %v3563_v50, %v3499_v48 }
 0x276   : > { %1438 = vrot.lane.b32.xlu0 %v1409_v8, %s2874_s25  ;;  %v1413_v14 = vrot.slane %v1394_v10, %v1408_v1  ;;  %v1404_v16 = vcombine.high %v1394_v10, %v1394_v10  ;;  %v1417_v17 = vrot.slane %v1402_v11, %v1408_v1  ;;  %v1401_v21 = vrot.slane %v1373_v13, %v1363_v56 }
 0x277   : > { %v1425_v23 = vrot.slane %v1387_v20, %v1408_v1  ;;  %v1403_v24 = vcombine.high %v1387_v20, %v1387_v20  ;;  %v3577_v56 = vadd.f32 %v3493_v46, %v3563_v50  ;;  %v3628_v8 = vadd.f32 %v3563_v50, %v3515_v59 }
 0x278   : > { %1440 = vrot.lane.b32.xlu1 %v1413_v14, %s2874_s25  ;;  %v1421_v2 = vrot.slane %v1404_v16, %v1408_v1  ;;  %v1429_v26 = vrot.slane %v1401_v21, %v1408_v1  ;;  %v1405_v27 = vcombine.high %v1401_v21, %v1401_v21  ;;  %v3642_v13 = vadd.f32 %v3563_v50, %v3507_v53 }
 0x279   : > { %v1433_v29 = vrot.slane %v1403_v24, %v1408_v1  ;;  %v3654_v16 = vadd.f32 %v3501_v49, %v3563_v50  ;;  %v3666_v20 = vadd.f32 %v3497_v47, %v3563_v50  ;;  %2801 = vtanh.f32 %v3577_v56 }
 0x27a   : > { %1442 = vrot.lane.b32.xlu0 %v1417_v17, %s2874_s25  ;;  %v1437_v30 = vrot.slane %v1405_v27, %v1408_v1 }
 0x27b   : > { %2803 = vtanh.f32 %v3666_v20 }
 0x27c   : > { %1444 = vrot.lane.b32.xlu1 %v1421_v2, %s2874_s25  ;;  %2805 = vtanh.f32 %v3614_v5 }
 0x27d   : > { %2807 = vtanh.f32 %v3654_v16 }
 0x27e   : > { %1446 = vrot.lane.b32.xlu0 %v1425_v23, %s2874_s25  ;;  %v3680_v23 = vadd.f32 %v3512_v55, %v3563_v50  ;;  %2809 = vtanh.f32 %v3602_v3 }
 0x280   : > { %1448 = vrot.lane.b32.xlu1 %v1429_v26, %s2874_s25  ;;  %v3692_v26 = vadd.f32 %v3505_v0, %v3563_v50 }
 0x282   : > { %1450 = vrot.lane.b32.xlu0 %v1433_v29, %s2874_s25  ;;  %2811 = vtanh.f32 %v3692_v26 }
 0x283   : > { %2813 = vtanh.f32 %v3642_v13 }
 0x284   : > { %1452 = vrot.lane.b32.xlu1 %v1437_v30, %s2874_s25  ;;  %2815 = vtanh.f32 %v3680_v23 }
 0x285   : > { %v3526_v31 = vpop.f32.mrb[4].mxu1  ;;  %2817 = vtanh.f32 %v3628_v8 }
 0x286   : > { %v3528_v32 = vpop.f32.mrb[5].mxu1 }
 0x287   : > { %v3530_v57 = vpop.f32.mrb[6].mxu1 }
 0x288   : > { %v3532_v33 = vpop.f32.mrb[7].mxu1 }
 0x28d   : > { %v3534_v34 = vpop.f32.mrb[8].mxu1 }
 0x28e   : > { %v3536_v35 = vpop.f32.mrb[9].mxu1 }
 0x28f   : > { %v3538_v36 = vpop.f32.mrb[10].mxu1 }
 0x290   : > { %v3540_v9 = vpop.f32.mrb[11].mxu1 }
 0x295   : > { %v3542_v37 = vpop.f32.mrb[12].mxu1 }
 0x296   : > { %v3544_v38 = vpop.f32.mrb[13].mxu1 }
 0x297   : > { %v3546_v39 = vpop.f32.mrb[14].mxu1 }
 0x298   : > { %v3548_v12 = vpop.f32.mrb[15].mxu1 }
 0x29d   : > { %v3550_v15 = vpop.f32.mrb[16].mxu1 }
 0x29e   : > { %v3552_v40 = vpop.f32.mrb[17].mxu1 }
 0x29f   : > { %v3554_v41 = vpop.f32.mrb[18].mxu1 }
 0x2a0   : > { %v3556_v42 = vpop.f32.mrb[19].mxu1 }
 0x2a5   : > { %v3558_v43 = vpop.f32.mrb[20].mxu1 }
 0x2a6   : > { %v2004_v18 = vpop.f32.mrb[21].mxu1 }
 0x2a7   : > { %v2721_v19 = vpop.f32.mrb[22].mxu1 }
 0x2a8   : > { %v2007_v44 = vpop.f32.mrb[23].mxu1 }
 0x2a9   : > { %v3705_v30 = vadd.f32 %v3563_v50, %v2007_v44 }
 0x2e8   : > { %v3569_v52 = vpop.permute.xlu0 %1438 }
 0x2e9   : > { %v3581_v60 = vadd.f32 %v3567_v51, %v3569_v52  ;;  %v3596_v46 = vadd.f32 %v3573_v54, %v3569_v52  ;;  %v2796_v51 = vpop.eup %2795 }
 0x2ea   : > { %v3583_v61 = vpop.permute.xlu1 %1440  ;;  %v2798_v54 = vpop.eup %2797 }
 0x2eb   : > { %v4367_v63 = vmax.f32 %v3581_v60, 0.0  ;;  %v3592_v45 = vadd.f32 %v3577_v56, %v3583_v61  ;;  %v3610_v4 = vadd.f32 %v3587_v25, %v3583_v61  ;;  %v4363_v28 = vmax.f32 %v3596_v46, 0.0  ;;  %v2800_v25 = vpop.eup %2799 }
 0x2ec   : > { %v3598_v1 = vpop.permute.xlu0 %1442 }
 0x2ed   : > { %2085 = vrot.lane.b32.xlu0 %v4367_v63, %s2875_s27  ;;  %v4365_v22 = vmax.f32 %v3592_v45, 0.0  ;;  %v3622_v6 = vadd.f32 %v3602_v3, %v3598_v1  ;;  %v4362_v48 = vmax.f32 %v3610_v4, 0.0  ;;  %v3636_v10 = vadd.f32 %v3614_v5, %v3598_v1  ;;  %v2802_v3 = vpop.eup %2801 }
 0x2ee   : > { %v3638_v11 = vpop.permute.xlu1 %1444 }
 0x2ef   : > { %2089 = vrot.lane.b32.xlu1 %v4365_v22, %s2875_s27  ;;  %v4360_v59 = vmax.f32 %v3622_v6, 0.0  ;;  %v4358_v53 = vmax.f32 %v3636_v10, 0.0  ;;  %v3674_v2 = vadd.f32 %v3654_v16, %v3638_v11  ;;  %v3688_v24 = vadd.f32 %v3666_v20, %v3638_v11 }
 0x2f0   : > { %v3624_v7 = vpop.permute.xlu0 %1446 }
 0x2f1   : > { %2083 = vrot.lane.b32.xlu0 %v4363_v28, %s2875_s27  ;;  %v3650_v14 = vadd.f32 %v3628_v8, %v3624_v7  ;;  %v3662_v17 = vadd.f32 %v3642_v13, %v3624_v7  ;;  %v4359_v55 = vmax.f32 %v3674_v2, 0.0  ;;  %v4361_v0 = vmax.f32 %v3688_v24, 0.0  ;;  %v4006_v8 = vpop.eup %2803 }
 0x2f2   : > { %v3676_v21 = vpop.permute.xlu1 %1448  ;;  %v3746_v28 = vadd.f32 %v3558_v43, %v3563_v50  ;;  %v4407_v13 = vmax.f32 %v3581_v60, 0.0 }
 0x2f3   : > { %2087 = vrot.lane.b32.xlu1 %v4362_v48, %s2875_s27  ;;  %v4357_v49 = vmax.f32 %v3650_v14, 0.0  ;;  %v4356_v47 = vmax.f32 %v3662_v17, 0.0  ;;  %v3700_v27 = vadd.f32 %v3680_v23, %v3676_v21  ;;  %v3742_v48 = vld [vmem:[%s4348_s7] ss:$0 sm:$0xff]  ;;  %v2806_v23 = vpop.eup %2805 }
 0x2f4   : > { %v3702_v29 = vpop.permute.xlu0 %1450  ;;  %v3758_v22 = vadd.f32 %v3742_v48, %v3532_v33 }
 0x2f5   : > { %2093 = vrot.lane.b32.xlu0 %v4360_v59, %s2875_s27  ;;  %v4364_v44 = vmax.f32 %v3700_v27, 0.0  ;;  %v3729_v59 = vadd.f32 %v2721_v19, %v3563_v50 }
 0x2f6   : > { %v3778_v63 = vadd.f32 %v3569_v52, %v3758_v22 }
 0x2f7   : > { %2091 = vrot.lane.b32.xlu1 %v4358_v53, %s2875_s27  ;;  %v3724_v53 = vadd.f32 %v3705_v30, %v3702_v29 }
 0x2f9   : > { %2101 = vrot.lane.b32.xlu0 %v4357_v49, %s2875_s27  ;;  %v3716_v49 = vadd.f32 %v3563_v50, %v2004_v18  ;;  %v4368_v19 = vmax.f32 %v3724_v53, 0.0 }
 0x2fb   : > { %2099 = vrot.lane.b32.xlu1 %v4356_v47, %s2875_s27  ;;  %v3713_v47 = vadd.f32 %v3692_v26, %v3676_v21 }
 0x2fd   : > { %2097 = vrot.lane.b32.xlu0 %v4359_v55, %s2875_s27  ;;  %v3726_v55 = vpop.permute.xlu1 %1452  ;;  %v4366_v18 = vmax.f32 %v3713_v47, 0.0 }
 0x2fe   : > { %v3766_v50 = vadd.f32 %v3746_v28, %v3726_v55 }
 0x2ff   : > { %2095 = vrot.lane.b32.xlu1 %v4361_v0, %s2875_s27  ;;  %v3737_v0 = vadd.f32 %v3716_v49, %v3702_v29 }
 0x300   : > { %4399 = vst [vmem:[#allocation6_spill] sm:$0xff] %v3766_v50 }
 0x301   : > { %2105 = vrot.lane.b32.xlu0 %v4364_v44, %s2875_s27  ;;  %v3754_v44 = vadd.f32 %v3729_v59, %v3726_v55  ;;  %v4370_v43 = vmax.f32 %v3737_v0, 0.0 }
 0x303   : > { %2103 = vrot.lane.b32.xlu1 %v4366_v18, %s2875_s27  ;;  %4398 = vst [vmem:[#allocation5_spill] sm:$0xff] %v3754_v44  ;;  %v3770_v18 = vadd.f32 %v3530_v57, %v3742_v48  ;;  %v4372_v33 = vmax.f32 %v3754_v44, 0.0  ;;  %v4374_v57 = vmax.f32 %v3766_v50, 0.0 }
 0x305   : > { %2109 = vrot.lane.b32.xlu0 %v4368_v19, %s2875_s27  ;;  %v3782_v19 = vadd.f32 %v3742_v48, %v3528_v32  ;;  %v3790_v62 = vadd.f32 %v3583_v61, %v3770_v18  ;;  %v4375_v32 = vmax.f32 %v3778_v63, 0.0 }
 0x307   : > { %2107 = vrot.lane.b32.xlu1 %v4370_v43, %s2875_s27  ;;  %v3794_v43 = vadd.f32 %v3526_v31, %v3742_v48  ;;  %v3802_v44 = vadd.f32 %v3569_v52, %v3782_v19  ;;  %v4376_v31 = vmax.f32 %v3790_v62, 0.0 }
 0x309   : > { %2113 = vrot.lane.b32.xlu0 %v4372_v33, %s2875_s27  ;;  %4400 = vst [vmem:[#allocation7_spill] sm:$0xff] %v3802_v44  ;;  %v3806_v33 = vadd.f32 %v3742_v48, %v3540_v9  ;;  %v3814_v50 = vadd.f32 %v3583_v61, %v3794_v43  ;;  %v4378_v9 = vmax.f32 %v3802_v44, 0.0  ;;  %2819 = vtanh.f32 %v3794_v43  ;;  %v4017_v43 = vpop.eup %2807 }
 0x30a   : > { %2821 = vtanh.f32 %v3782_v19 }
 0x30b   : > { %2111 = vrot.lane.b32.xlu1 %v4374_v57, %s2875_s27  ;;  %v3818_v57 = vadd.f32 %v3742_v48, %v3536_v35  ;;  %v3826_v52 = vadd.f32 %v3598_v1, %v3806_v33  ;;  %v4379_v35 = vmax.f32 %v3814_v50, 0.0  ;;  %2823 = vtanh.f32 %v3770_v18 }
 0x30c   : > { %2825 = vtanh.f32 %v3758_v22  ;;  %v4408_v18 = vmax.f32 %v3592_v45, 0.0  ;;  %v4409_v45 = vmax.f32 %v3596_v46, 0.0 }
 0x30d   : > { %1512 = vrot.lane.b32.xlu0 %v4375_v32, %s2875_s27  ;;  %4401 = vst [vmem:[#allocation8_spill] sm:$0xff] %v3826_v52  ;;  %v3830_v32 = vadd.f32 %v3538_v36, %v3742_v48  ;;  %v3838_v61 = vadd.f32 %v3598_v1, %v3818_v57  ;;  %v4381_v36 = vmax.f32 %v3826_v52, 0.0 }
 0x30f   : > { %1516 = vrot.lane.b32.xlu1 %v4376_v31, %s2875_s27  ;;  %4402 = vst [vmem:[#allocation9_spill] sm:$0xff] %v3838_v61  ;;  %v3842_v31 = vadd.f32 %v3534_v34, %v3742_v48  ;;  %v3850_v44 = vadd.f32 %v3638_v11, %v3830_v32  ;;  %v4382_v34 = vmax.f32 %v3838_v61, 0.0 }
 0x311   : > { %1510 = vrot.lane.b32.xlu0 %v4378_v9, %s2875_s27  ;;  %v3854_v9 = vadd.f32 %v3742_v48, %v3548_v12  ;;  %v3862_v1 = vadd.f32 %v3638_v11, %v3842_v31  ;;  %v4384_v12 = vmax.f32 %v3850_v44, 0.0  ;;  %2827 = vtanh.f32 %v3842_v31 }
 0x312   : > { %2829 = vtanh.f32 %v3818_v57 }
 0x313   : > { %1514 = vrot.lane.b32.xlu1 %v4379_v35, %s2875_s27  ;;  %4403 = vst [vmem:[#allocation10_spill] sm:$0xff] %v3862_v1  ;;  %v3866_v35 = vadd.f32 %v3742_v48, %v3544_v38  ;;  %v3874_v52 = vadd.f32 %v3624_v7, %v3854_v9  ;;  %v4386_v38 = vmax.f32 %v3862_v1, 0.0  ;;  %v3914_v1 = vadd.f32 %v3742_v48, %v3552_v40 }
 0x314   : > { %2831 = vtanh.f32 %v3830_v32 }
 0x315   : > { %1520 = vrot.lane.b32.xlu0 %v4381_v36, %s2875_s27  ;;  %4404 = vst [vmem:[#allocation11_spill] sm:$0xff] %v3874_v52  ;;  %v3878_v36 = vadd.f32 %v3546_v39, %v3742_v48  ;;  %v3886_v11 = vadd.f32 %v3624_v7, %v3866_v35  ;;  %v4387_v39 = vmax.f32 %v3874_v52, 0.0  ;;  %v3931_v40 = vadd.f32 %v3702_v29, %v3914_v1 }
 0x316   : > { %v3938_v52 = vadd.f32 %v3550_v15, %v3742_v48  ;;  %2833 = vtanh.f32 %v3806_v33 }
 0x317   : > { %1518 = vrot.lane.b32.xlu1 %v4382_v34, %s2875_s27  ;;  %v3890_v34 = vadd.f32 %v3542_v37, %v3742_v48  ;;  %v3894_v61 = vadd.f32 %v3676_v21, %v3878_v36  ;;  %v4389_v37 = vmax.f32 %v3886_v11, 0.0 }
 0x319   : > { %1524 = vrot.lane.b32.xlu0 %v4384_v12, %s2875_s27  ;;  %4405 = vst [vmem:[#allocation12_spill] sm:$0xff] %v3894_v61  ;;  %v3902_v12 = vadd.f32 %v3742_v48, %v3556_v42  ;;  %v3906_v7 = vadd.f32 %v3676_v21, %v3890_v34  ;;  %v3926_v21 = vadd.f32 %v3554_v41, %v3742_v48  ;;  %2835 = vtanh.f32 %v3890_v34 }
 0x31a   : > { %2837 = vtanh.f32 %v3866_v35 }
 0x31b   : > { %1522 = vrot.lane.b32.xlu1 %v4386_v38, %s2875_s27  ;;  %v4396_v38 = vmax.f32 %v3894_v61, 0.0  ;;  %v3919_v42 = vadd.f32 %v3702_v29, %v3902_v12  ;;  %v3943_v41 = vadd.f32 %v3726_v55, %v3926_v21  ;;  %v4392_v29 = vmax.f32 %v3931_v40, 0.0 }
 0x31c   : > { %v3951_v61 = vadd.f32 %v3726_v55, %v3938_v52  ;;  %v2305_v55 = vld [vmem:[%s4351_s10] sm:$0xff]  ;;  %2839 = vtanh.f32 %v3878_v36  ;;  %v4413_v36 = vmax.f32 %v3650_v14, 0.0  ;;  %v4414_v14 = vmax.f32 %v3662_v17, 0.0 }
 0x31d   : > { %1528 = vrot.lane.b32.xlu0 %v4387_v39, %s2875_s27  ;;  %v4393_v39 = vmax.f32 %v3906_v7, 0.0  ;;  %v4394_v15 = vmax.f32 %v3943_v41, 0.0 }
 0x31e   : > { %v4395_v48 = vmax.f32 %v3951_v61, 0.0 }
 0x31f   : > { %1526 = vrot.lane.b32.xlu1 %v4389_v37, %s2875_s27  ;;  %v4391_v37 = vmax.f32 %v3919_v42, 0.0 }
 0x321   : > { %1532 = vrot.lane.b32.xlu0 %v4396_v38, %s2875_s27  ;;  %v4406_v38 = vmov 0.0|0.0  }
 0x323   : > { %1530 = vrot.lane.b32.xlu1 %v4393_v39, %s2875_s27 }
 0x325   : > { %1536 = vrot.lane.b32.xlu0 %v4391_v37, %s2875_s27  ;;  %v2306_v37 = vld [vmem:[%s4351_s10 + $0x8] sm:$0xff] }
 0x326   : > { %v2737_v39 = vpack.c.bf16 %v2306_v37, %v2305_v55  ;;  %v2810_v37 = vpop.eup %2809  ;;  %2841 = vtanh.f32 %v3705_v30 }
 0x327   : > { %1534 = vrot.lane.b32.xlu1 %v4392_v29, %s2875_s27  ;;  %v2307_v29 = vld [vmem:[%s4351_s10 + $0x10] sm:$0xff] }
 0x328   : > { %2738 = vmatpush3.bf16.msra.mxu1 %v2737_v39 }
 0x329   : > { %1540 = vrot.lane.b32.xlu0 %v4394_v15, %s2875_s27  ;;  %v2308_v15 = vld [vmem:[%s4351_s10 + $0x18] sm:$0xff]  ;;  %2739 = vmatprep.subr.bf16.mxu1 %v4406_v38  ;;  %v3990_v38 = vadd.s32 8, %v3390_v58 }
 0x32b   : > { %1538 = vrot.lane.b32.xlu1 %v4395_v48, %s2875_s27  ;;  %v2740_v48 = vpack.c.bf16 %v2308_v15, %v2307_v29  ;;  %vm2148_vm0 = vcmp.lt.s32.totalorder %v3990_v38, 13  ;;  %v4028_v15 = vpop.eup %2811  ;;  %2843 = vtanh.f32 %v3854_v9  ;;  %vm1575_vm5 = vcmp.lt.s32.totalorder %v3990_v38, 14 }
 0x32d   : > { %2741 = vmatpush3.bf16.msra.mxu1 %v2740_v48 }
 0x35f   : > { %v2086_v56 = vpop.permute.xlu0 %2085 }
 0x360   : > { %v2132_v58 = vmul.f32 %v2798_v54, %v2086_v56  ;;  %v2814_v56 = vpop.eup %2813  ;;  %2845 = vtanh.f32 %v3716_v49 }
 0x361   : > { %v2090_v5 = vpop.permute.xlu1 %2089 }
 0x362   : > { %v2238_v16 = vsel %vm787_vm10, %v2132_v58, %v4407_v13  ;;  %v2134_v20 = vmul.f32 %v2802_v3, %v2090_v5  ;;  %v2150_v26 = vsel %vm2148_vm0, %v2132_v58, -inf  ;;  %v4038_v58 = vpop.eup %2815  ;;  %v4410_v13 = vmax.f32 %v3610_v4, 0.0 }
 0x363   : > { %2255 = vst.msk [vmem:[%s4001_s17 + $0x8] sm:$0x1f] %vm2254_vm4, %v2238_v16  ;;  %v2084_v19 = vpop.permute.xlu0 %2083  ;;  %v2166_v48 = vsel %vm787_vm10, %v2150_v26, -inf  ;;  %v4411_v4 = vmax.f32 %v3622_v6, 0.0  ;;  %2847 = vtanh.f32 %v3914_v1  ;;  %v4415_v1 = vmax.f32 %v3674_v2, 0.0 }
 0x364   : > { %v2240_v60 = vsel %vm787_vm10, %v2134_v20, %v4408_v18  ;;  %v2131_v39 = vmul.f32 %v2800_v25, %v2084_v19  ;;  %v2152_v22 = vsel %vm2148_vm0, %v2134_v20, -inf }
 0x365   : > { %2257 = vst.msk [vmem:[%s4001_s17 + $0x18] sm:$0x1f] %vm2254_vm4, %v2240_v60  ;;  %v2088_v29 = vpop.permute.xlu1 %2087  ;;  %v2175_v3 = vsel %vm787_vm10, %v2152_v22, -inf }
 0x366   : > { %v2165_v31 = vsel %vm787_vm10, %v2131_v39, -inf  ;;  %v2237_v55 = vsel %vm787_vm10, %v2131_v39, %v4409_v45  ;;  %v2133_v54 = vmul.f32 %v2796_v51, %v2088_v29  ;;  %v2818_v51 = vpop.eup %2817  ;;  %2849 = vtanh.f32 %v3729_v59 }
 0x367   : > { %v2167_v57 = vmax.f32 %v2165_v31, %v2166_v48  ;;  %2253 = vst.msk [vmem:[%s4001_s17] sm:$0xff] %vm539_vm1, %v2237_v55  ;;  %v2094_v25 = vpop.permute.xlu0 %2093  ;;  %v4048_v26 = vpop.eup %2819  ;;  %2851 = vtanh.f32 %v3926_v21 }
 0x368   : > { %v2174_v5 = vsel %vm787_vm10, %v2133_v54, -inf  ;;  %v2239_v46 = vsel %vm787_vm10, %v2133_v54, %v4410_v13  ;;  %v2136_v16 = vmul.f32 %v2810_v37, %v2094_v25  ;;  %v4056_v39 = vpop.eup %2821  ;;  %2853 = vtanh.f32 %v3746_v28 }
 0x369   : > { %v2176_v32 = vmax.f32 %v2174_v5, %v2175_v3  ;;  %2256 = vst.msk [vmem:[%s4001_s17 + $0x10] sm:$0xff] %vm539_vm1, %v2239_v46  ;;  %v2092_v20 = vpop.permute.xlu1 %2091  ;;  %v2168_v33 = vrot.slane %v2167_v57, 4  ;;  %v4062_v29 = vpop.eup %2823  ;;  %2855 = vtanh.f32 %v3902_v12 }
 0x36a   : > { %v2154_v19 = vsel %vm2148_vm0, %v2136_v16, -inf  ;;  %v2242_v18 = vsel %vm787_vm10, %v2136_v16, %v4411_v4  ;;  %v2135_v60 = vmul.f32 %v2806_v23, %v2092_v20  ;;  %v4412_v23 = vmax.f32 %v3636_v10, 0.0  ;;  %v4069_v45 = vpop.eup %2825 }
 0x36b   : > { %v2177_v37 = vrot.slane %v2176_v32, 4  ;;  %v2184_v22 = vsel %vm787_vm10, %v2154_v19, -inf  ;;  %2259 = vst.msk [vmem:[%s4001_s17 + $0x28] sm:$0x1f] %vm2254_vm4, %v2242_v18  ;;  %v2102_v34 = vpop.permute.xlu0 %2101  ;;  %v4074_v25 = vpop.eup %2827  ;;  %v2169_v30 = vmax.f32 %v2167_v57, %v2168_v33  ;;  %2857 = vtanh.f32 %v3938_v52 }
 0x36c   : > { %v2183_v6 = vsel %vm787_vm10, %v2135_v60, -inf  ;;  %v2241_v48 = vsel %vm787_vm10, %v2135_v60, %v4412_v23  ;;  %v2140_v31 = vmul.f32 %v2818_v51, %v2102_v34  ;;  %v4082_v13 = vpop.eup %2829 }
 0x36d   : > { %v2178_v35 = vmax.f32 %v2176_v32, %v2177_v37  ;;  %v2185_v55 = vmax.f32 %v2183_v6, %v2184_v22  ;;  %2258 = vst.msk [vmem:[%s4001_s17 + $0x20] sm:$0xff] %vm539_vm1, %v2241_v48  ;;  %v2100_v54 = vpop.permute.xlu1 %2099  ;;  %v4094_v20 = vpop.eup %2831  ;;  %v2170_v59 = vrot.slane %v2169_v30, 2  ;;  %v4416_v6 = vmax.f32 %v3688_v24, 0.0 }
 0x36e   : > { %v2158_v10 = vsel %vm2148_vm0, %v2140_v31, -inf  ;;  %v2246_v3 = vsel %vm787_vm10, %v2140_v31, %v4413_v36  ;;  %v2139_v5 = vmul.f32 %v2814_v56, %v2100_v54  ;;  %v4106_v60 = vpop.eup %2833 }
 0x36f   : > { %v2186_v46 = vrot.slane %v2185_v55, 4  ;;  %v2202_v16 = vsel %vm787_vm10, %v2158_v10, -inf  ;;  %2263 = vst.msk [vmem:[%s4001_s17 + $0x48] sm:$0x1f] %vm2254_vm4, %v2246_v3  ;;  %v2098_v9 = vpop.permute.xlu0 %2097  ;;  %v2179_v49 = vrot.slane %v2178_v35, 2  ;;  %v4111_v22 = vpop.eup %2835  ;;  %v4417_v3 = vmax.f32 %v3700_v27, 0.0 }
 0x370   : > { %v2201_v51 = vsel %vm787_vm10, %v2139_v5, -inf  ;;  %v2245_v56 = vsel %vm787_vm10, %v2139_v5, %v4414_v14  ;;  %v2138_v32 = vmul.f32 %v4017_v43, %v2098_v9  ;;  %v4119_v28 = vpop.eup %2837  ;;  %v2171_v12 = vmax.f32 %v2169_v30, %v2170_v59 }
 0x371   : > { %v2187_v57 = vmax.f32 %v2185_v55, %v2186_v46  ;;  %v2203_v19 = vmax.f32 %v2201_v51, %v2202_v16  ;;  %2262 = vst.msk [vmem:[%s4001_s17 + $0x40] sm:$0xff] %vm539_vm1, %v2245_v56  ;;  %v2096_v4 = vpop.permute.xlu1 %2095  ;;  %v2180_v48 = vmax.f32 %v2178_v35, %v2179_v49  ;;  %v4124_v10 = vpop.eup %2839  ;;  %v4418_v56 = vmax.f32 %v3713_v47, 0.0 }
 0x372   : > { %v2156_v17 = vsel %vm2148_vm0, %v2138_v32, -inf  ;;  %v2244_v43 = vsel %vm787_vm10, %v2138_v32, %v4415_v1  ;;  %v2137_v18 = vmul.f32 %v4006_v8, %v2096_v4  ;;  %v2842_v46 = vpop.eup %2841  ;;  %v4419_v47 = vmax.f32 %v3724_v53, 0.0 }
 0x373   : > { %v2188_v33 = vrot.slane %v2187_v57, 2  ;;  %v2204_v37 = vrot.slane %v2203_v19, 4  ;;  %2261 = vst.msk [vmem:[%s4001_s17 + $0x38] sm:$0x1f] %vm2254_vm4, %v2244_v43  ;;  %v2106_v21 = vpop.permute.xlu0 %2105  ;;  %v2193_v34 = vsel %vm787_vm10, %v2156_v17, -inf  ;;  %v4135_v51 = vpop.eup %2843  ;;  %v2181_v30 = vrot.slane %v2180_v48, 1 }
 0x374   : > { %v2192_v2 = vsel %vm787_vm10, %v2137_v18, -inf  ;;  %v2243_v8 = vsel %vm787_vm10, %v2137_v18, %v4416_v6  ;;  %v2142_v23 = vmul.f32 %v4038_v58, %v2106_v21  ;;  %v2846_v49 = vpop.eup %2845  ;;  %v4420_v53 = vmax.f32 %v3737_v0, 0.0 }
 0x375   : > { %v2205_v31 = vmax.f32 %v2203_v19, %v2204_v37  ;;  %v2194_v55 = vmax.f32 %v2192_v2, %v2193_v34  ;;  %2260 = vst.msk [vmem:[%s4001_s17 + $0x30] sm:$0xff] %vm539_vm1, %v2243_v8  ;;  %v2104_v54 = vpop.permute.xlu1 %2103  ;;  %v2189_v36 = vmax.f32 %v2187_v57, %v2188_v33  ;;  %v4144_v17 = vpop.eup %2847  ;;  %v2172_v37 = vrot.slane %v2171_v12, 1 }
 0x376   : > { %v2160_v24 = vsel %vm2148_vm0, %v2142_v23, -inf  ;;  %v2248_v58 = vsel %vm787_vm10, %v2142_v23, %v4417_v3  ;;  %v2141_v5 = vmul.f32 %v4028_v15, %v2104_v54  ;;  %v2850_v33 = vpop.eup %2849 }
 0x377   : > { %v2206_v35 = vrot.slane %v2205_v31, 2  ;;  %v2195_v16 = vrot.slane %v2194_v55, 4  ;;  %2265 = vst.msk [vmem:[%s4001_s17 + $0x58] sm:$0x1f] %vm2254_vm4, %v2248_v58  ;;  %v2110_v9 = vpop.permute.xlu0 %2109  ;;  %v2211_v14 = vsel %vm787_vm10, %v2160_v24, -inf  ;;  %v2190_v1 = vrot.slane %v2189_v36, 1  ;;  %v4153_v8 = vpop.eup %2851 }
 0x378   : > { %v2210_v27 = vsel %vm787_vm10, %v2141_v5, -inf  ;;  %v2247_v15 = vsel %vm787_vm10, %v2141_v5, %v4418_v56  ;;  %v2144_v32 = vmul.f32 %v2842_v46, %v2110_v9  ;;  %v2854_v3 = vpop.eup %2853  ;;  %v2182_v58 = vmax.f32 %v2180_v48, %v2181_v30 }
 0x379   : > { %v2196_v57 = vmax.f32 %v2194_v55, %v2195_v16  ;;  %v2212_v19 = vmax.f32 %v2210_v27, %v2211_v14  ;;  %2264 = vst.msk [vmem:[%s4001_s17 + $0x50] sm:$0xff] %vm539_vm1, %v2247_v15  ;;  %v2108_v4 = vpop.permute.xlu1 %2107  ;;  %v2207_v21 = vmax.f32 %v2205_v31, %v2206_v35  ;;  %v2191_v16 = vmax.f32 %v2189_v36, %v2190_v1  ;;  %v4421_v14 = vld [vmem:[#allocation5_spill] sm:$0xff]  ;;  %v4167_v15 = vpop.eup %2855 }
 0x37a   : > { %v2162_v43 = vsel %vm2148_vm0, %v2144_v32, -inf  ;;  %v2250_v18 = vsel %vm787_vm10, %v2144_v32, %v4419_v47  ;;  %v2143_v59 = vmul.f32 %v2846_v49, %v2108_v4  ;;  %v4422_v27 = vmax.f32 %v4421_v14, 0.0  ;;  %v4423_v4 = vld [vmem:[#allocation6_spill] sm:$0xff] }
 0x37b   : > { %v2197_v34 = vrot.slane %v2196_v57, 2  ;;  %v2213_v2 = vrot.slane %v2212_v19, 4  ;;  %2267 = vst.msk [vmem:[%s4001_s17 + $0x68] sm:$0x1f] %vm2254_vm4, %v2250_v18  ;;  %v2114_v6 = vpop.permute.xlu0 %2113  ;;  %v2220_v23 = vsel %vm787_vm10, %v2162_v43, -inf  ;;  %v2208_v36 = vrot.slane %v2207_v21, 1 }
 0x37c   : > { %v2219_v55 = vsel %vm787_vm10, %v2143_v59, -inf  ;;  %v2249_v54 = vsel %vm787_vm10, %v2143_v59, %v4420_v53  ;;  %v2146_v24 = vmul.f32 %v2850_v33, %v2114_v6  ;;  %v4424_v1 = vmax.f32 %v4423_v4, 0.0 }
 0x37d   : > { %v2198_v31 = vmax.f32 %v2196_v57, %v2197_v34  ;;  %v2214_v5 = vmax.f32 %v2212_v19, %v2213_v2  ;;  %v2221_v46 = vmax.f32 %v2219_v55, %v2220_v23  ;;  %2266 = vst.msk [vmem:[%s4001_s17 + $0x60] sm:$0xff] %vm539_vm1, %v2249_v54  ;;  %v2112_v35 = vpop.permute.xlu1 %2111  ;;  %v2173_v18 = vmax.f32 %v2171_v12, %v2172_v37 }
 0x37e   : > { %v2164_v9 = vsel %vm2148_vm0, %v2146_v24, -inf  ;;  %v2252_v0 = vsel %vm787_vm10, %v2146_v24, %v4422_v27  ;;  %v2145_v56 = vmul.f32 %v2854_v3, %v2112_v35  ;;  %v4425_v55 = vmax.f32 %v3778_v63, 0.0 }
 0x37f   : > { %v2199_v48 = vrot.slane %v2198_v31, 1  ;;  %v2215_v32 = vrot.slane %v2214_v5, 2  ;;  %v2222_v49 = vrot.slane %v2221_v46, 4  ;;  %v2229_v30 = vsel %vm787_vm10, %v2164_v9, -inf  ;;  %2269 = vst.msk [vmem:[%s4001_s17 + $0x78] sm:$0x1f] %vm2254_vm4, %v2252_v0  ;;  %v1513_v57 = vpop.permute.xlu0 %1512 }
 0x380   : > { %v2228_v19 = vsel %vm787_vm10, %v2145_v56, -inf  ;;  %v2251_v43 = vsel %vm787_vm10, %v2145_v56, %v4424_v1  ;;  %v1559_v47 = vmul.f32 %v4069_v45, %v1513_v57  ;;  %v2294_v45 = vsel %vm861_vm11, %v2182_v58, %v2173_v18 }
 0x381   : > { %v2216_v59 = vmax.f32 %v2214_v5, %v2215_v32  ;;  %v2223_v33 = vmax.f32 %v2221_v46, %v2222_v49  ;;  %v2230_v34 = vmax.f32 %v2228_v19, %v2229_v30  ;;  %2268 = vst.msk [vmem:[%s4001_s17 + $0x70] sm:$0xff] %vm539_vm1, %v2251_v43  ;;  %v1517_v2 = vpop.permute.xlu1 %1516  ;;  %v2200_v6 = vmax.f32 %v2198_v31, %v2199_v48 }
 0x382   : > { %v1577_v23 = vsel %vm1575_vm5, %v1559_v47, -inf  ;;  %v1665_v53 = vsel %vm787_vm10, %v1559_v47, %v4425_v55  ;;  %v1561_v54 = vmul.f32 %v4062_v29, %v1517_v2  ;;  %v2295_v31 = vsel %vm863_vm12, %v2191_v16, %v2294_v45 }
 0x383   : > { %v2217_v12 = vrot.slane %v2216_v59, 1  ;;  %v2224_v37 = vrot.slane %v2223_v33, 2  ;;  %v2231_v24 = vrot.slane %v2230_v34, 4  ;;  %1682 = vst.msk [vmem:[%s4177_s20 + $0x8] sm:$0x3f] %vm1681_vm6, %v1665_v53  ;;  %v1511_v3 = vpop.permute.xlu0 %1510  ;;  %v2209_v5 = vmax.f32 %v2207_v21, %v2208_v36  ;;  %v4427_v21 = vld [vmem:[#allocation7_spill] sm:$0xff] }
 0x384   : > { %v4426_v46 = vmax.f32 %v3790_v62, 0.0  ;;  %v1558_v35 = vmul.f32 %v4056_v39, %v1511_v3  ;;  %v1593_v58 = vsel %vm787_vm10, %v1577_v23, -inf  ;;  %v1579_v14 = vsel %vm1575_vm5, %v1561_v54, -inf }
 0x385   : > { %v2225_v9 = vmax.f32 %v2223_v33, %v2224_v37  ;;  %v2232_v29 = vmax.f32 %v2230_v34, %v2231_v24  ;;  %v1515_v27 = vpop.permute.xlu1 %1514  ;;  %v4428_v0 = vmax.f32 %v4427_v21, 0.0  ;;  %v2296_v39 = vsel %vm865_vm13, %v2200_v6, %v2295_v31  ;;  %v4430_v6 = vld [vmem:[#allocation8_spill] sm:$0xff]  ;;  %v4432_v24 = vld [vmem:[#allocation9_spill] sm:$0xff] }
 0x386   : > { %v1667_v63 = vsel %vm787_vm10, %v1561_v54, %v4426_v46  ;;  %v1592_v16 = vsel %vm787_vm10, %v1558_v35, -inf  ;;  %v1560_v56 = vmul.f32 %v4048_v26, %v1515_v27  ;;  %v2218_v48 = vmax.f32 %v2216_v59, %v2217_v12 }
 0x387   : > { %1684 = vst.msk [vmem:[%s4177_s20 + $0x18] sm:$0x3f] %vm1681_vm6, %v1667_v63  ;;  %v1664_v62 = vsel %vm787_vm10, %v1558_v35, %v4428_v0  ;;  %v2226_v32 = vrot.slane %v2225_v9, 1  ;;  %v2233_v49 = vrot.slane %v2232_v29, 2  ;;  %v1594_v30 = vmax.f32 %v1592_v16, %v1593_v58  ;;  %v1521_v57 = vpop.permute.xlu0 %1520 }
 0x388   : > { %1680 = vst.msk [vmem:[%s4177_s20] sm:$0xff] %vm539_vm1, %v1664_v62  ;;  %v1602_v36 = vsel %vm787_vm10, %v1579_v14, -inf  ;;  %v1601_v19 = vsel %vm787_vm10, %v1560_v56, -inf  ;;  %v4429_v4 = vmax.f32 %v3814_v50, 0.0  ;;  %v1563_v26 = vmul.f32 %v4106_v60, %v1521_v57 }
 0x389   : > { %v2234_v43 = vmax.f32 %v2232_v29, %v2233_v49  ;;  %v1595_v47 = vrot.slane %v1594_v30, 4  ;;  %v1603_v18 = vmax.f32 %v1601_v19, %v1602_v36  ;;  %v1519_v59 = vpop.permute.xlu1 %1518  ;;  %v2297_v33 = vsel %vm867_vm14, %v2209_v5, %v2296_v39 }
 0x38a   : > { %v1666_v1 = vsel %vm787_vm10, %v1560_v56, %v4429_v4  ;;  %v2227_v34 = vmax.f32 %v2225_v9, %v2226_v32  ;;  %v1581_v2 = vsel %vm1575_vm5, %v1563_v26, -inf  ;;  %v4431_v23 = vmax.f32 %v4430_v6, 0.0  ;;  %v4435_v32 = vld [vmem:[#allocation10_spill] sm:$0xff] }
 0x38b   : > { %1683 = vst.msk [vmem:[%s4177_s20 + $0x10] sm:$0xff] %vm539_vm1, %v1666_v1  ;;  %v1562_v55 = vmul.f32 %v4082_v13, %v1519_v59  ;;  %v2235_v60 = vrot.slane %v2234_v43, 1  ;;  %v1596_v53 = vmax.f32 %v1594_v30, %v1595_v47  ;;  %v1604_v54 = vrot.slane %v1603_v18, 4  ;;  %v1525_v12 = vpop.permute.xlu0 %1524 }
 0x38c   : > { %v1669_v50 = vsel %vm787_vm10, %v1563_v26, %v4431_v23  ;;  %v1611_v45 = vsel %vm787_vm10, %v1581_v2, -inf  ;;  %v4433_v3 = vmax.f32 %v4432_v24, 0.0  ;;  %v1565_v5 = vmul.f32 %v4094_v20, %v1525_v12  ;;  %v4440_v24 = vld [vmem:[#allocation12_spill] sm:$0xff] }
 0x38d   : > { %1686 = vst.msk [vmem:[%s4177_s20 + $0x28] sm:$0x3f] %vm1681_vm6, %v1669_v50  ;;  %v1610_v37 = vsel %vm787_vm10, %v1562_v55, -inf  ;;  %v2298_v46 = vsel %vm869_vm15, %v2218_v48, %v2297_v33  ;;  %v1597_v13 = vrot.slane %v1596_v53, 2  ;;  %v1605_v63 = vmax.f32 %v1603_v18, %v1604_v54  ;;  %v1523_v9 = vpop.permute.xlu1 %1522 }
 0x38e   : > { %v1668_v31 = vsel %vm787_vm10, %v1562_v55, %v4433_v3  ;;  %v1612_v35 = vmax.f32 %v1610_v37, %v1611_v45  ;;  %v2236_v29 = vmax.f32 %v2234_v43, %v2235_v60  ;;  %v1583_v58 = vsel %vm1575_vm5, %v1565_v5, -inf  ;;  %v4437_v43 = vld [vmem:[#allocation11_spill] sm:$0xff] }
 0x38f   : > { %1685 = vst.msk [vmem:[%s4177_s20 + $0x20] sm:$0xff] %vm539_vm1, %v1668_v31  ;;  %v4434_v14 = vmax.f32 %v3850_v44, 0.0  ;;  %v1564_v16 = vmul.f32 %v4074_v25, %v1523_v9  ;;  %v2299_v20 = vsel %vm871_vm2, %v2227_v34, %v2298_v46  ;;  %v1598_v21 = vmax.f32 %v1596_v53, %v1597_v13  ;;  %v1529_v39 = vpop.permute.xlu0 %1528 }
 0x390   : > { %v1606_v0 = vrot.slane %v1605_v63, 2  ;;  %v1613_v62 = vrot.slane %v1612_v35, 4  ;;  %v1620_v56 = vsel %vm787_vm10, %v1583_v58, -inf  ;;  %v4436_v49 = vmax.f32 %v4435_v32, 0.0 }
 0x391   : > { %v1671_v27 = vsel %vm787_vm10, %v1565_v5, %v4434_v14  ;;  %v1619_v48 = vsel %vm787_vm10, %v1564_v16, -inf  ;;  %v1567_v30 = vmul.f32 %v4135_v51, %v1529_v39  ;;  %v2300_v25 = vsel %vm873_vm3, %v2236_v29, %v2299_v20  ;;  %v1527_v1 = vpop.permute.xlu1 %1526 }
 0x392   : > { %1688 = vst.msk [vmem:[%s4177_s20 + $0x38] sm:$0x3f] %vm1681_vm6, %v1671_v27  ;;  %v1670_v44 = vsel %vm787_vm10, %v1564_v16, %v4436_v49  ;;  %v1599_v57 = vrot.slane %v1598_v21, 1  ;;  %v1607_v36 = vmax.f32 %v1605_v63, %v1606_v0  ;;  %v1614_v19 = vmax.f32 %v1612_v35, %v1613_v62  ;;  %2301 = vrot.lane.b32.xlu0 %v2300_v25, %s2874_s25 }
 0x393   : > { %v1621_v4 = vmax.f32 %v1619_v48, %v1620_v56  ;;  %1687 = vst.msk [vmem:[%s4177_s20 + $0x30] sm:$0xff] %vm539_vm1, %v1670_v44  ;;  %v1585_v26 = vsel %vm1575_vm5, %v1567_v30, -inf  ;;  %v4438_v47 = vmax.f32 %v4437_v43, 0.0  ;;  %v1566_v18 = vmul.f32 %v4119_v28, %v1527_v1  ;;  %v1533_v6 = vpop.permute.xlu0 %1532  ;;  %v2858_v44 = vpop.eup %2857 }
 0x394   : > { %v1600_v59 = vmax.f32 %v1598_v21, %v1599_v57  ;;  %v1608_v33 = vrot.slane %v1607_v36, 1  ;;  %v1615_v34 = vrot.slane %v1614_v19, 2  ;;  %v1629_v23 = vsel %vm787_vm10, %v1585_v26, -inf }
 0x395   : > { %v1673_v51 = vsel %vm787_vm10, %v1567_v30, %v4438_v47  ;;  %v1622_v2 = vrot.slane %v1621_v4, 4  ;;  %v1628_v52 = vsel %vm787_vm10, %v1566_v18, -inf  ;;  %v4439_v50 = vmax.f32 %v3886_v11, 0.0  ;;  %v1531_v12 = vpop.permute.xlu1 %1530 }
 0x396   : > { %1690 = vst.msk [vmem:[%s4177_s20 + $0x48] sm:$0x3f] %vm1681_vm6, %v1673_v51  ;;  %v1569_v60 = vmul.f32 %v4124_v10, %v1533_v6  ;;  %v1609_v53 = vmax.f32 %v1607_v36, %v1608_v33  ;;  %v1616_v28 = vmax.f32 %v1614_v19, %v1615_v34  ;;  %v1630_v45 = vmax.f32 %v1628_v52, %v1629_v23 }
 0x397   : > { %v1672_v55 = vsel %vm787_vm10, %v1566_v18, %v4439_v50  ;;  %v1623_v54 = vmax.f32 %v1621_v4, %v1622_v2  ;;  %v4441_v3 = vmax.f32 %v4440_v24, 0.0  ;;  %v1568_v11 = vmul.f32 %v4111_v22, %v1531_v12  ;;  %v1537_v63 = vpop.permute.xlu0 %1536 }
 0x398   : > { %1689 = vst.msk [vmem:[%s4177_s20 + $0x40] sm:$0xff] %vm539_vm1, %v1672_v55  ;;  %v1587_v37 = vsel %vm1575_vm5, %v1569_v60, -inf  ;;  %v2278_v5 = vsel %vm861_vm11, %v1609_v53, %v1600_v59  ;;  %v1617_v10 = vrot.slane %v1616_v28, 1  ;;  %v1631_v13 = vrot.slane %v1630_v45, 4 }
 0x399   : > { %v1675_v31 = vsel %vm787_vm10, %v1569_v60, %v4441_v3  ;;  %v1624_v46 = vrot.slane %v1623_v54, 2  ;;  %v1638_v35 = vsel %vm787_vm10, %v1587_v37, -inf  ;;  %v1637_v9 = vsel %vm787_vm10, %v1568_v11, -inf  ;;  %v1535_v21 = vpop.permute.xlu1 %1534 }
 0x39a   : > { %1692 = vst.msk [vmem:[%s4177_s20 + $0x58] sm:$0x3f] %vm1681_vm6, %v1675_v31  ;;  %v4442_v29 = vmax.f32 %v3906_v7, 0.0  ;;  %v1571_v14 = vmul.f32 %v4167_v15, %v1537_v63  ;;  %v1618_v22 = vmax.f32 %v1616_v28, %v1617_v10  ;;  %v1632_v16 = vmax.f32 %v1630_v45, %v1631_v13 }
 0x39b   : > { %v1625_v27 = vmax.f32 %v1623_v54, %v1624_v46  ;;  %v1639_v20 = vmax.f32 %v1637_v9, %v1638_v35  ;;  %v4443_v62 = vmax.f32 %v3919_v42, 0.0  ;;  %v1570_v7 = vmul.f32 %v4144_v17, %v1535_v21  ;;  %v1541_v49 = vpop.permute.xlu0 %1540  ;;  %v2581_v35 = vld [vmem:[%s4352_s11] ss:$0 sm:$0xff] }
 0x39c   : > { %v1674_v58 = vsel %vm787_vm10, %v1568_v11, %v4442_v29  ;;  %v1589_v0 = vsel %vm1575_vm5, %v1571_v14, -inf  ;;  %v2279_v39 = vsel %vm863_vm12, %v1618_v22, %v2278_v5  ;;  %v1633_v48 = vrot.slane %v1632_v16, 2 }
 0x39d   : > { %1691 = vst.msk [vmem:[%s4177_s20 + $0x50] sm:$0xff] %vm539_vm1, %v1674_v58  ;;  %v1677_v56 = vsel %vm787_vm10, %v1571_v14, %v4443_v62  ;;  %v1626_v15 = vrot.slane %v1625_v27, 1  ;;  %v1640_v32 = vrot.slane %v1639_v20, 4  ;;  %v1647_v30 = vsel %vm787_vm10, %v1589_v0, -inf  ;;  %v1539_v26 = vpop.permute.xlu1 %1538 }
 0x39e   : > { %1694 = vst.msk [vmem:[%s4177_s20 + $0x68] sm:$0x3f] %vm1681_vm6, %v1677_v56  ;;  %v1646_v25 = vsel %vm787_vm10, %v1570_v7, -inf  ;;  %v4444_v42 = vmax.f32 %v3931_v40, 0.0  ;;  %v1573_v17 = vmul.f32 %v4153_v8, %v1541_v49  ;;  %v1634_v19 = vmax.f32 %v1632_v16, %v1633_v48 }
 0x39f   : > { %v1627_v36 = vmax.f32 %v1625_v27, %v1626_v15  ;;  %v1641_v4 = vmax.f32 %v1639_v20, %v1640_v32  ;;  %v1648_v1 = vmax.f32 %v1646_v25, %v1647_v30  ;;  %v4445_v47 = vmax.f32 %v3943_v41, 0.0 }
 0x3a0   : > { %v1676_v57 = vsel %vm787_vm10, %v1570_v7, %v4444_v42  ;;  %v1591_v43 = vsel %vm1575_vm5, %v1573_v17, -inf  ;;  %v1572_v51 = vmul.f32 %v2858_v44, %v1539_v26  ;;  %v1635_v18 = vrot.slane %v1634_v19, 1 }
 0x3a1   : > { %1693 = vst.msk [vmem:[%s4177_s20 + $0x60] sm:$0xff] %vm539_vm1, %v1676_v57  ;;  %v1679_v40 = vsel %vm787_vm10, %v1573_v17, %v4445_v47  ;;  %v1642_v59 = vrot.slane %v1641_v4, 2  ;;  %v1649_v33 = vrot.slane %v1648_v1, 4  ;;  %v1656_v8 = vsel %vm787_vm10, %v1591_v43, -inf }
 0x3a2   : > { %1696 = vst.msk [vmem:[%s4177_s20 + $0x78] sm:$0x3f] %vm1681_vm6, %v1679_v40  ;;  %v1655_v34 = vsel %vm787_vm10, %v1572_v51, -inf  ;;  %v4446_v2 = vmax.f32 %v3951_v61, 0.0  ;;  %v2280_v6 = vsel %vm865_vm13, %v1627_v36, %v2279_v39  ;;  %v1636_v23 = vmax.f32 %v1634_v19, %v1635_v18 }
 0x3a3   : > { %v1643_v41 = vmax.f32 %v1641_v4, %v1642_v59  ;;  %v1650_v52 = vmax.f32 %v1648_v1, %v1649_v33  ;;  %v1657_v50 = vmax.f32 %v1655_v34, %v1656_v8 }
 0x3a4   : > { %v1678_v38 = vsel %vm787_vm10, %v1572_v51, %v4446_v2  ;;  %v2281_v28 = vsel %vm867_vm14, %v1636_v23, %v2280_v6 }
 0x3a5   : > { %1695 = vst.msk [vmem:[%s4177_s20 + $0x70] sm:$0xff] %vm539_vm1, %v1678_v38  ;;  %v1644_v55 = vrot.slane %v1643_v41, 1  ;;  %v1651_v60 = vrot.slane %v1650_v52, 2  ;;  %v1658_v53 = vrot.slane %v1657_v50, 4 }
 0x3a7   : > { %v1645_v54 = vmax.f32 %v1643_v41, %v1644_v55  ;;  %v1652_v45 = vmax.f32 %v1650_v52, %v1651_v60  ;;  %v1659_v61 = vmax.f32 %v1657_v50, %v1658_v53 }
 0x3a9   : > { %v1653_v12 = vrot.slane %v1652_v45, 1  ;;  %v1660_v37 = vrot.slane %v1659_v61, 2  ;;  %v2282_v24 = vsel %vm869_vm15, %v1645_v54, %v2281_v28 }
 0x3ab   : > { %v1654_v3 = vmax.f32 %v1652_v45, %v1653_v12  ;;  %v1661_v31 = vmax.f32 %v1659_v61, %v1660_v37 }
 0x3ad   : > { %v1662_v11 = vrot.slane %v1661_v31, 1  ;;  %v2283_v5 = vsel %vm871_vm2, %v1654_v3, %v2282_v24 }
 0x3af   : > { %v1663_v10 = vmax.f32 %v1661_v31, %v1662_v11 }
 0x3b1   : > { %v2284_v46 = vsel %vm873_vm3, %v1663_v10, %v2283_v5 }
 0x404   : > { %v2302_v13 = vpop.permute.xlu0 %2301 }
 0x405   : > { %v2304_v63 = vsel %vm787_vm10, %v2284_v46, %v2302_v13 }
 0x406   : > { %2731 = vmatmul.mubr.msk.f32.vlgmr.msra.gmra.mrb[2].mxu1 %vm539_vm1, %v2304_v63 }
 0x4d9   : > { %v2385_v9 = vpop.f32.mrb[2].mxu1 }
 0x4da   : > { %v2386_v29 = vadd.f32 %v2581_v35, %v2385_v9  ;;  %v2732_v58 = vpop.f32.mrb[3].mxu1 }
 0x4dc   : > { %2390 = vst.msk [vmem:[%s506_s24] sm:$0xff] %vm2389_vm7, %v2386_v29 }
 0x4dd PF: > { %s25_s29 = sadd.s32 1, %s2865_s29  }
 0x4de   : > { %p22_p6 = scmp.ge.s32.totalorder %s25_s29, 6  }
 0x4e0   :  { %24 = sbr.rel (!%p22_p6) target bundleno = 1 (0x1), region = 125 }

</bundles_post_ra>
